<compile_context>
chip_gen: v7x
topology: tpu7x:2x2x1
jax: 0.10.0
libtpu: 0.0.40
codegen_flags: <defaults>
</compile_context>

<pallas_src>
import numpy as np
import jax
import jax.numpy as jnp
from jax import lax
from jax.experimental import pallas as pl
from jax.experimental.pallas import tpu as pltpu

# ----------------------------- model hyper-parameters (from the PyTorch script) ------------
max_seq_length = 32
emb_dim = 32
vocab_size = 256
text_heads = 8
text_layers = 4
text_width = 32

_LN_EPS = 1e-5
_NEG = -1e30          # additive mask value (safer than -inf: no NaN if a row is fully masked)
_B_PAD = 8            # output rows padded to a full sublane tile
_E_PAD = 128          # output cols padded to a full lane tile


def _vmem():
    return pl.BlockSpec(memory_space=pltpu.MemorySpace.VMEM)


# ----------------------------- in-kernel math helpers ---------------------------------------
def _layernorm(x, g, b):
    mu = jnp.mean(x, axis=-1, keepdims=True)
    xc = x - mu
    var = jnp.mean(xc * xc, axis=-1, keepdims=True)
    return xc * lax.rsqrt(var + _LN_EPS) * g + b


def _gelu(x):
    # TODO(synk): nn.GELU uses exact erf; no reliable erf lowering in Mosaic, so we use the
    # tanh approximation (EUP tanh, ~1e-3 max deviation from exact-erf GELU).
    c = 0.7978845608028654  # sqrt(2/pi)
    return 0.5 * x * (1.0 + jnp.tanh(c * (x + 0.044715 * x * x * x)))


# ----------------------------- fused TextEncoder kernel -------------------------------------
def text_encoder_kernel(
    x_ref,        # (BS, W)      token embedding + positional embedding, batch flattened
    bias_ref,     # (BS, H*BS)   additive attention bias (block-diag + padding), tiled per head
    sel_ref,      # (B_PAD, BS)  one-hot last-valid-token selector (zero-padded rows)
    hmask_ref,    # (H, W)       hmask[h, w] = 1 iff column w belongs to head h
    seg_ref,      # (H*BS, H)    seg[h*BS+n, h'] = 1 iff h == h'
    ln1g_ref, ln1b_ref,          # (L, 1, W)
    wqkv_ref, bqkv_ref,          # (L, W, 3W), (L, 1, 3W)   Q columns pre-scaled by 1/sqrt(hs)
    wo_ref, bo_ref,              # (L, W, W),  (L, 1, W)
    ln2g_ref, ln2b_ref,          # (L, 1, W)
    w1_ref, b1_ref,              # (L, W, 4W), (L, 1, 4W)
    w2_ref, b2_ref,              # (L, 4W, W), (L, 1, W)
    proj_ref,                    # (W, E_PAD)  zero-padded projection
    out_ref,                     # (B_PAD, E_PAD)
):
    BS, W = x_ref.shape
    H = hmask_ref.shape[0]
    L = wqkv_ref.shape[0]

    bias = bias_ref[...]         # (BS, H*BS), loop-invariant
    hmask = hmask_ref[...]       # (H, W)
    seg = seg_ref[...]           # (H*BS, H)

    def layer(l, x):
        # --- attention block ---
        xn = _layernorm(x, ln1g_ref[l], ln1b_ref[l])
        qkv = jnp.dot(xn, wqkv_ref[l], preferred_element_type=jnp.float32) + bqkv_ref[l]
        q = qkv[:, 0 * W:1 * W]                    # (BS, W), already scaled by 1/sqrt(hs)
        k = qkv[:, 1 * W:2 * W]
        v = qkv[:, 2 * W:3 * W]
        # block-diagonal K / V: slab h keeps only head h's columns -> (H*BS, W)
        k_pad = (k[None, :, :] * hmask[:, None, :]).reshape(H * BS, W)
        v_pad = (v[None, :, :] * hmask[:, None, :]).reshape(H * BS, W)
        # ALL heads' scores in one lane-dense matmul: column block h = head h's (BS, BS) scores
        s = lax.dot_general(q, k_pad, (((1,), (1,)), ((), ())),
                            preferred_element_type=jnp.float32) + bias   # (BS, H*BS)
        # per-row max over all head blocks (softmax is shift-invariant within each block)
        m = jnp.max(s, axis=-1, keepdims=True)
        e = jnp.exp(s - m)
        denom = jnp.dot(e, seg, preferred_element_type=jnp.float32)      # (BS, H) per-head sums
        inv = jnp.dot(1.0 / denom, hmask, preferred_element_type=jnp.float32)   # (BS, W)
        # weighted sum: heads land already concatenated along lanes, then per-head normalize
        att = jnp.dot(e, v_pad, preferred_element_type=jnp.float32) * inv       # (BS, W)
        x = x + jnp.dot(att, wo_ref[l], preferred_element_type=jnp.float32) + bo_ref[l]

        # --- MLP block ---
        xn2 = _layernorm(x, ln2g_ref[l], ln2b_ref[l])
        h1 = _gelu(jnp.dot(xn2, w1_ref[l], preferred_element_type=jnp.float32) + b1_ref[l])
        return x + jnp.dot(h1, w2_ref[l], preferred_element_type=jnp.float32) + b2_ref[l]

    x = lax.fori_loop(0, L, layer, x_ref[...])

    # Last-valid-token gather (one-hot matmul), final projection, L2 normalize (lane-dense).
    last = jnp.dot(sel_ref[...], x, preferred_element_type=jnp.float32)      # (B_PAD, W)
    y = jnp.dot(last, proj_ref[...], preferred_element_type=jnp.float32)     # (B_PAD, E_PAD)
    ss = jnp.sum(y * y, axis=-1, keepdims=True)
    out_ref[...] = y * lax.rsqrt(jnp.maximum(ss, jnp.float32(1e-30)))


def run_text_encoder(x_flat, bias_wide, sel, hmask, seg, layers, proj_pad):
    args = (
        x_flat, bias_wide, sel, hmask, seg,
        layers["ln1_g"], layers["ln1_b"],
        layers["w_qkv"], layers["b_qkv"],
        layers["w_o"], layers["b_o"],
        layers["ln2_g"], layers["ln2_b"],
        layers["w1"], layers["b1"], layers["w2"], layers["b2"],
        proj_pad,
    )
    return pl.pallas_call(
        text_encoder_kernel,
        out_shape=jax.ShapeDtypeStruct((sel.shape[0], proj_pad.shape[1]), jnp.float32),
        in_specs=[_vmem()] * len(args),
        out_specs=_vmem(),
    )(*args)


# ----------------------------- parameter construction ----------------------------------------
def positional_embedding(width, max_len):
    pe = np.zeros((max_len, width), dtype=np.float32)
    for pos in range(max_len):
        for i in range(width):
            if i % 2 == 0:
                pe[pos, i] = np.sin(pos / 10000 ** (i / width))
            else:
                pe[pos, i] = np.cos(pos / 10000 ** ((i - 1) / width))
    return jnp.asarray(pe)[None]  # (1, max_len, width)


def init_encoder_layer(key, width, n_heads):
    ks = jax.random.split(key, 4)
    s = 1.0 / np.sqrt(width)
    hs = width // n_heads
    w_qkv = jax.random.normal(ks[0], (width, 3 * width), jnp.float32) * s   # fused Q|K|V
    b_qkv = jnp.zeros((1, 3 * width), jnp.float32)
    # fold the attention scale 1/sqrt(head_size) into the Q projection (first `width` columns)
    q_scale = jnp.concatenate([jnp.full((width,), 1.0 / np.sqrt(hs), jnp.float32),
                               jnp.ones((2 * width,), jnp.float32)])
    w_qkv = w_qkv * q_scale[None, :]
    b_qkv = b_qkv * q_scale[None, :]
    return dict(
        ln1_g=jnp.ones((1, width), jnp.float32),
        ln1_b=jnp.zeros((1, width), jnp.float32),
        w_qkv=w_qkv, b_qkv=b_qkv,
        w_o=jax.random.normal(ks[1], (width, width), jnp.float32) * s,
        b_o=jnp.zeros((1, width), jnp.float32),
        ln2_g=jnp.ones((1, width), jnp.float32),
        ln2_b=jnp.zeros((1, width), jnp.float32),
        w1=jax.random.normal(ks[2], (width, 4 * width), jnp.float32) * s,
        b1=jnp.zeros((1, 4 * width), jnp.float32),
        w2=jax.random.normal(ks[3], (4 * width, width), jnp.float32) * (1.0 / np.sqrt(4 * width)),
        b2=jnp.zeros((1, width), jnp.float32),
    )


def init_text_params(key):
    ks = jax.random.split(key, text_layers + 2)
    per_layer = [init_encoder_layer(ks[1 + l], text_width, text_heads) for l in range(text_layers)]
    # stack per-layer params on a leading L axis so the fused kernel indexes them dynamically
    stacked = {k: jnp.stack([lp[k] for lp in per_layer], axis=0) for k in per_layer[0]}
    return dict(
        emb=jax.random.normal(ks[0], (vocab_size, text_width), jnp.float32),
        pe=positional_embedding(text_width, max_seq_length),
        layers=stacked,
        proj=jax.random.normal(ks[1 + text_layers], (text_width, emb_dim), jnp.float32),
    )


# ----------------------------- forward pass (glue + one fused kernel) -------------------------
def text_encoder_forward(text, mask, params):
    B, S = text.shape
    W = params["emb"].shape[1]
    E = params["proj"].shape[1]
    H = text_heads
    hs = W // H
    BS = B * S

    # TODO(synk): token-embedding table gather stays in plain JAX (no clean in-kernel gather).
    x = jnp.take(params["emb"], text, axis=0) + params["pe"][0]          # (B, S, W)
    x_flat = x.reshape(BS, W)                                            # batch fused into rows

    # additive attention bias: block-diagonal over batch + user key-padding mask, tiled per head
    allow = (jnp.eye(B, dtype=jnp.float32)[:, None, :, None]
             * (mask != 0).astype(jnp.float32)[:, :, None, :])           # (B, S, B, S)
    bias = jnp.where(allow > 0, 0.0, _NEG).astype(jnp.float32).reshape(BS, BS)
    bias_wide = jnp.tile(bias, (1, H))                                   # (BS, H*BS)

    # last valid token per row: torch.sum(mask[:, 0], dim=1) - 1  ->  padded one-hot selector
    lengths = jnp.sum(mask[:, 0, :], axis=1).astype(jnp.int32)           # (B,)
    onehot = (jnp.arange(S)[None, :] == (lengths - 1)[:, None]).astype(jnp.float32)   # (B, S)
    sel_b = (jnp.eye(B, dtype=jnp.float32)[:, :, None] * onehot[:, None, :]).reshape(B, BS)
    sel = jnp.zeros((_B_PAD, BS), jnp.float32).at[:B].set(sel_b)         # (B_PAD, BS)

    # static head bookkeeping for the block-diagonal-K attention formulation
    hmask = (jnp.arange(W)[None, :] // hs == jnp.arange(H)[:, None]).astype(jnp.float32)   # (H, W)
    seg = jnp.repeat(jnp.eye(H, dtype=jnp.float32), BS, axis=0)                            # (H*BS, H)

    # projection padded to a lane-dense 128-wide slab (extra columns are zero)
    proj_pad = jnp.zeros((W, _E_PAD), jnp.float32).at[:, :E].set(params["proj"])

    out = run_text_encoder(x_flat, bias_wide, sel, hmask, seg, params["layers"], proj_pad)
    return out[:B, :E]


# ----------------------------- main -----------------------------------------------------------
if __name__ == "__main__":
    key = jax.random.PRNGKey(0)
    kp, ktok = jax.random.split(key)

    params = init_text_params(kp)

    B = 2
    text = jax.random.randint(ktok, (B, max_seq_length), 0, vocab_size, jnp.int32)

    # key-padding mask (B, S, S): mask[b, q, k] = 1 if k < length[b] else 0
    lengths = jnp.array([5, 12], jnp.int32)
    col = jnp.arange(max_seq_length)
    row_mask = (col[None, :] < lengths[:, None]).astype(jnp.float32)             # (B, S)
    mask = jnp.array(jnp.broadcast_to(row_mask[:, None, :],
                                      (B, max_seq_length, max_seq_length)))      # (B, S, S)

    forward = jax.jit(text_encoder_forward)
    out = forward(text, mask, params)
    out = jax.block_until_ready(out)

    out_np = np.asarray(out)
    assert out_np.shape == (B, emb_dim)
    assert np.isfinite(out_np).all()
    # outputs are L2-normalized
    assert np.allclose(np.linalg.norm(out_np, axis=-1), 1.0, atol=1e-4)
    print("KERNEL_OK")
</pallas_src>

<mosaic_0001>
module attributes {stable_mosaic.version = 11 : i64} {
  func.func @text_encoder_kernel(%arg0: memref<64x32xf32, #tpu.memory_space<vmem>>, %arg1: memref<64x512xf32, #tpu.memory_space<vmem>>, %arg2: memref<8x64xf32, #tpu.memory_space<vmem>>, %arg3: memref<8x32xf32, #tpu.memory_space<vmem>>, %arg4: memref<512x8xf32, #tpu.memory_space<vmem>>, %arg5: memref<4x1x32xf32, #tpu.memory_space<vmem>>, %arg6: memref<4x1x32xf32, #tpu.memory_space<vmem>>, %arg7: memref<4x32x96xf32, #tpu.memory_space<vmem>>, %arg8: memref<4x1x96xf32, #tpu.memory_space<vmem>>, %arg9: memref<4x32x32xf32, #tpu.memory_space<vmem>>, %arg10: memref<4x1x32xf32, #tpu.memory_space<vmem>>, %arg11: memref<4x1x32xf32, #tpu.memory_space<vmem>>, %arg12: memref<4x1x32xf32, #tpu.memory_space<vmem>>, %arg13: memref<4x32x128xf32, #tpu.memory_space<vmem>>, %arg14: memref<4x1x128xf32, #tpu.memory_space<vmem>>, %arg15: memref<4x128x32xf32, #tpu.memory_space<vmem>>, %arg16: memref<4x1x32xf32, #tpu.memory_space<vmem>>, %arg17: memref<32x128xf32, #tpu.memory_space<vmem>>, %arg18: memref<8x128xf32, #tpu.memory_space<vmem>>) attributes {dimension_semantics = [], scalar_prefetch = 0 : i64, scratch_operands = 0 : i64, tpu.core_type = #tpu.core_type<tc>} {
    %c0 = arith.constant 0 : index
    %c0_0 = arith.constant 0 : index
    %0 = vector.load %arg1[%c0, %c0_0] : memref<64x512xf32, #tpu.memory_space<vmem>>, vector<64x512xf32>
    %c0_1 = arith.constant 0 : index
    %c0_2 = arith.constant 0 : index
    %1 = vector.load %arg3[%c0_1, %c0_2] : memref<8x32xf32, #tpu.memory_space<vmem>>, vector<8x32xf32>
    %c0_3 = arith.constant 0 : index
    %c0_4 = arith.constant 0 : index
    %2 = vector.load %arg4[%c0_3, %c0_4] : memref<512x8xf32, #tpu.memory_space<vmem>>, vector<512x8xf32>
    %c0_5 = arith.constant 0 : index
    %c0_6 = arith.constant 0 : index
    %3 = vector.load %arg0[%c0_5, %c0_6] : memref<64x32xf32, #tpu.memory_space<vmem>>, vector<64x32xf32>
    %c0_i32 = arith.constant 0 : i32
    %c4_i32 = arith.constant 4 : i32
    %4 = arith.addi %c0_i32, %c4_i32 : i32
    %c1_i32 = arith.constant 1 : i32
    %5 = scf.for %arg19 = %c0_i32 to %4 step %c1_i32 iter_args(%arg20 = %3) -> (vector<64x32xf32>)  : i32 {
      %19 = arith.index_cast %arg19 : i32 to index
      %c0_17 = arith.constant 0 : index
      %c0_18 = arith.constant 0 : index
      %20 = vector.load %arg5[%19, %c0_17, %c0_18] : memref<4x1x32xf32, #tpu.memory_space<vmem>>, vector<1x1x32xf32>
      %21 = vector.shape_cast %20 : vector<1x1x32xf32> to vector<1x32xf32>
      %22 = arith.index_cast %arg19 : i32 to index
      %c0_19 = arith.constant 0 : index
      %c0_20 = arith.constant 0 : index
      %23 = vector.load %arg6[%22, %c0_19, %c0_20] : memref<4x1x32xf32, #tpu.memory_space<vmem>>, vector<1x1x32xf32>
      %24 = vector.shape_cast %23 : vector<1x1x32xf32> to vector<1x32xf32>
      %cst_21 = arith.constant dense<0.000000e+00> : vector<64xf32>
      %25 = vector.multi_reduction <add>, %arg20, %cst_21 [1] : vector<64x32xf32> to vector<64xf32>
      %26 = vector.shape_cast %25 : vector<64xf32> to vector<64x1xf32>
      %cst_22 = arith.constant 3.200000e+01 : f32
      %27 = vector.broadcast %cst_22 : f32 to vector<64x1xf32>
      %28 = arith.divf %26, %27 : vector<64x1xf32>
      %29 = vector.broadcast %28 : vector<64x1xf32> to vector<64x32xf32>
      %30 = arith.subf %arg20, %29 : vector<64x32xf32>
      %31 = arith.mulf %30, %30 : vector<64x32xf32>
      %cst_23 = arith.constant dense<0.000000e+00> : vector<64xf32>
      %32 = vector.multi_reduction <add>, %31, %cst_23 [1] : vector<64x32xf32> to vector<64xf32>
      %33 = vector.shape_cast %32 : vector<64xf32> to vector<64x1xf32>
      %cst_24 = arith.constant 3.200000e+01 : f32
      %34 = vector.broadcast %cst_24 : f32 to vector<64x1xf32>
      %35 = arith.divf %33, %34 : vector<64x1xf32>
      %cst_25 = arith.constant 9.99999974E-6 : f32
      %36 = vector.broadcast %cst_25 : f32 to vector<64x1xf32>
      %37 = arith.addf %35, %36 : vector<64x1xf32>
      %38 = math.rsqrt %37 : vector<64x1xf32>
      %39 = vector.broadcast %38 : vector<64x1xf32> to vector<64x32xf32>
      %40 = arith.mulf %30, %39 : vector<64x32xf32>
      %41 = vector.broadcast %21 : vector<1x32xf32> to vector<64x32xf32>
      %42 = arith.mulf %40, %41 : vector<64x32xf32>
      %43 = vector.broadcast %24 : vector<1x32xf32> to vector<64x32xf32>
      %44 = arith.addf %42, %43 : vector<64x32xf32>
      %45 = arith.index_cast %arg19 : i32 to index
      %c0_26 = arith.constant 0 : index
      %c0_27 = arith.constant 0 : index
      %46 = vector.load %arg7[%45, %c0_26, %c0_27] : memref<4x32x96xf32, #tpu.memory_space<vmem>>, vector<1x32x96xf32>
      %47 = vector.shape_cast %46 : vector<1x32x96xf32> to vector<32x96xf32>
      %cst_28 = arith.constant dense<0.000000e+00> : vector<64x96xf32>
      %48 = tpu.matmul %44, %47, %cst_28 {dimension_numbers = #tpu.dot_dimension_numbers<[1], [0], [0], [1], [0, 0, 1, 1], [], []>} : vector<64x32xf32>, vector<32x96xf32>, vector<64x96xf32> -> vector<64x96xf32>
      %49 = arith.index_cast %arg19 : i32 to index
      %c0_29 = arith.constant 0 : index
      %c0_30 = arith.constant 0 : index
      %50 = vector.load %arg8[%49, %c0_29, %c0_30] : memref<4x1x96xf32, #tpu.memory_space<vmem>>, vector<1x1x96xf32>
      %51 = vector.shape_cast %50 : vector<1x1x96xf32> to vector<1x96xf32>
      %52 = vector.broadcast %51 : vector<1x96xf32> to vector<64x96xf32>
      %53 = arith.addf %48, %52 : vector<64x96xf32>
      %54 = vector.extract_strided_slice %53 {offsets = [0, 0], sizes = [64, 32], strides = [1, 1]} : vector<64x96xf32> to vector<64x32xf32>
      %55 = vector.extract_strided_slice %53 {offsets = [0, 32], sizes = [64, 32], strides = [1, 1]} : vector<64x96xf32> to vector<64x32xf32>
      %56 = vector.extract_strided_slice %53 {offsets = [0, 64], sizes = [64, 32], strides = [1, 1]} : vector<64x96xf32> to vector<64x32xf32>
      %57 = vector.shape_cast %55 : vector<64x32xf32> to vector<1x64x32xf32>
      %58 = vector.shape_cast %1 : vector<8x32xf32> to vector<8x1x32xf32>
      %59 = vector.broadcast %57 : vector<1x64x32xf32> to vector<8x64x32xf32>
      %60 = vector.broadcast %58 : vector<8x1x32xf32> to vector<8x64x32xf32>
      %61 = arith.mulf %59, %60 : vector<8x64x32xf32>
      %62 = vector.shape_cast %61 : vector<8x64x32xf32> to vector<512x32xf32>
      %63 = vector.shape_cast %56 : vector<64x32xf32> to vector<1x64x32xf32>
      %64 = vector.shape_cast %1 : vector<8x32xf32> to vector<8x1x32xf32>
      %65 = vector.broadcast %63 : vector<1x64x32xf32> to vector<8x64x32xf32>
      %66 = vector.broadcast %64 : vector<8x1x32xf32> to vector<8x64x32xf32>
      %67 = arith.mulf %65, %66 : vector<8x64x32xf32>
      %68 = vector.shape_cast %67 : vector<8x64x32xf32> to vector<512x32xf32>
      %cst_31 = arith.constant dense<0.000000e+00> : vector<64x512xf32>
      %69 = tpu.matmul %54, %62, %cst_31 {dimension_numbers = #tpu.dot_dimension_numbers<[1], [1], [0], [0], [0, 0, 1, 0], [], []>} : vector<64x32xf32>, vector<512x32xf32>, vector<64x512xf32> -> vector<64x512xf32>
      %70 = arith.addf %69, %0 : vector<64x512xf32>
      %cst_32 = arith.constant dense<0xFF800000> : vector<64xf32>
      %71 = vector.multi_reduction <maximumf>, %70, %cst_32 [1] : vector<64x512xf32> to vector<64xf32>
      %72 = vector.shape_cast %71 : vector<64xf32> to vector<64x1xf32>
      %73 = vector.broadcast %72 : vector<64x1xf32> to vector<64x512xf32>
      %74 = arith.subf %70, %73 : vector<64x512xf32>
      %75 = math.exp %74 : vector<64x512xf32>
      %cst_33 = arith.constant dense<0.000000e+00> : vector<64x8xf32>
      %76 = tpu.matmul %75, %2, %cst_33 {dimension_numbers = #tpu.dot_dimension_numbers<[1], [0], [0], [1], [0, 0, 1, 1], [], []>} : vector<64x512xf32>, vector<512x8xf32>, vector<64x8xf32> -> vector<64x8xf32>
      %cst_34 = arith.constant 1.000000e+00 : f32
      %77 = vector.broadcast %cst_34 : f32 to vector<64x8xf32>
      %78 = arith.divf %77, %76 : vector<64x8xf32>
      %cst_35 = arith.constant dense<0.000000e+00> : vector<64x32xf32>
      %79 = tpu.matmul %78, %1, %cst_35 {dimension_numbers = #tpu.dot_dimension_numbers<[1], [0], [0], [1], [0, 0, 1, 1], [], []>} : vector<64x8xf32>, vector<8x32xf32>, vector<64x32xf32> -> vector<64x32xf32>
      %cst_36 = arith.constant dense<0.000000e+00> : vector<64x32xf32>
      %80 = tpu.matmul %75, %68, %cst_36 {dimension_numbers = #tpu.dot_dimension_numbers<[1], [0], [0], [1], [0, 0, 1, 1], [], []>} : vector<64x512xf32>, vector<512x32xf32>, vector<64x32xf32> -> vector<64x32xf32>
      %81 = arith.mulf %80, %79 : vector<64x32xf32>
      %82 = arith.index_cast %arg19 : i32 to index
      %c0_37 = arith.constant 0 : index
      %c0_38 = arith.constant 0 : index
      %83 = vector.load %arg9[%82, %c0_37, %c0_38] : memref<4x32x32xf32, #tpu.memory_space<vmem>>, vector<1x32x32xf32>
      %84 = vector.shape_cast %83 : vector<1x32x32xf32> to vector<32x32xf32>
      %cst_39 = arith.constant dense<0.000000e+00> : vector<64x32xf32>
      %85 = tpu.matmul %81, %84, %cst_39 {dimension_numbers = #tpu.dot_dimension_numbers<[1], [0], [0], [1], [0, 0, 1, 1], [], []>} : vector<64x32xf32>, vector<32x32xf32>, vector<64x32xf32> -> vector<64x32xf32>
      %86 = arith.addf %arg20, %85 : vector<64x32xf32>
      %87 = arith.index_cast %arg19 : i32 to index
      %c0_40 = arith.constant 0 : index
      %c0_41 = arith.constant 0 : index
      %88 = vector.load %arg10[%87, %c0_40, %c0_41] : memref<4x1x32xf32, #tpu.memory_space<vmem>>, vector<1x1x32xf32>
      %89 = vector.shape_cast %88 : vector<1x1x32xf32> to vector<1x32xf32>
      %90 = vector.broadcast %89 : vector<1x32xf32> to vector<64x32xf32>
      %91 = arith.addf %86, %90 : vector<64x32xf32>
      %92 = arith.index_cast %arg19 : i32 to index
      %c0_42 = arith.constant 0 : index
      %c0_43 = arith.constant 0 : index
      %93 = vector.load %arg11[%92, %c0_42, %c0_43] : memref<4x1x32xf32, #tpu.memory_space<vmem>>, vector<1x1x32xf32>
      %94 = vector.shape_cast %93 : vector<1x1x32xf32> to vector<1x32xf32>
      %95 = arith.index_cast %arg19 : i32 to index
      %c0_44 = arith.constant 0 : index
      %c0_45 = arith.constant 0 : index
      %96 = vector.load %arg12[%95, %c0_44, %c0_45] : memref<4x1x32xf32, #tpu.memory_space<vmem>>, vector<1x1x32xf32>
      %97 = vector.shape_cast %96 : vector<1x1x32xf32> to vector<1x32xf32>
      %cst_46 = arith.constant dense<0.000000e+00> : vector<64xf32>
      %98 = vector.multi_reduction <add>, %91, %cst_46 [1] : vector<64x32xf32> to vector<64xf32>
      %99 = vector.shape_cast %98 : vector<64xf32> to vector<64x1xf32>
      %cst_47 = arith.constant 3.200000e+01 : f32
      %100 = vector.broadcast %cst_47 : f32 to vector<64x1xf32>
      %101 = arith.divf %99, %100 : vector<64x1xf32>
      %102 = vector.broadcast %101 : vector<64x1xf32> to vector<64x32xf32>
      %103 = arith.subf %91, %102 : vector<64x32xf32>
      %104 = arith.mulf %103, %103 : vector<64x32xf32>
      %cst_48 = arith.constant dense<0.000000e+00> : vector<64xf32>
      %105 = vector.multi_reduction <add>, %104, %cst_48 [1] : vector<64x32xf32> to vector<64xf32>
      %106 = vector.shape_cast %105 : vector<64xf32> to vector<64x1xf32>
      %cst_49 = arith.constant 3.200000e+01 : f32
      %107 = vector.broadcast %cst_49 : f32 to vector<64x1xf32>
      %108 = arith.divf %106, %107 : vector<64x1xf32>
      %cst_50 = arith.constant 9.99999974E-6 : f32
      %109 = vector.broadcast %cst_50 : f32 to vector<64x1xf32>
      %110 = arith.addf %108, %109 : vector<64x1xf32>
      %111 = math.rsqrt %110 : vector<64x1xf32>
      %112 = vector.broadcast %111 : vector<64x1xf32> to vector<64x32xf32>
      %113 = arith.mulf %103, %112 : vector<64x32xf32>
      %114 = vector.broadcast %94 : vector<1x32xf32> to vector<64x32xf32>
      %115 = arith.mulf %113, %114 : vector<64x32xf32>
      %116 = vector.broadcast %97 : vector<1x32xf32> to vector<64x32xf32>
      %117 = arith.addf %115, %116 : vector<64x32xf32>
      %118 = arith.index_cast %arg19 : i32 to index
      %c0_51 = arith.constant 0 : index
      %c0_52 = arith.constant 0 : index
      %119 = vector.load %arg13[%118, %c0_51, %c0_52] : memref<4x32x128xf32, #tpu.memory_space<vmem>>, vector<1x32x128xf32>
      %120 = vector.shape_cast %119 : vector<1x32x128xf32> to vector<32x128xf32>
      %cst_53 = arith.constant dense<0.000000e+00> : vector<64x128xf32>
      %121 = tpu.matmul %117, %120, %cst_53 {dimension_numbers = #tpu.dot_dimension_numbers<[1], [0], [0], [1], [0, 0, 1, 1], [], []>} : vector<64x32xf32>, vector<32x128xf32>, vector<64x128xf32> -> vector<64x128xf32>
      %122 = arith.index_cast %arg19 : i32 to index
      %c0_54 = arith.constant 0 : index
      %c0_55 = arith.constant 0 : index
      %123 = vector.load %arg14[%122, %c0_54, %c0_55] : memref<4x1x128xf32, #tpu.memory_space<vmem>>, vector<1x1x128xf32>
      %124 = vector.shape_cast %123 : vector<1x1x128xf32> to vector<1x128xf32>
      %125 = vector.broadcast %124 : vector<1x128xf32> to vector<64x128xf32>
      %126 = arith.addf %121, %125 : vector<64x128xf32>
      %cst_56 = arith.constant 5.000000e-01 : f32
      %127 = vector.broadcast %cst_56 : f32 to vector<64x128xf32>
      %128 = arith.mulf %127, %126 : vector<64x128xf32>
      %cst_57 = arith.constant 4.471500e-02 : f32
      %129 = vector.broadcast %cst_57 : f32 to vector<64x128xf32>
      %130 = arith.mulf %129, %126 : vector<64x128xf32>
      %131 = arith.mulf %130, %126 : vector<64x128xf32>
      %132 = arith.mulf %131, %126 : vector<64x128xf32>
      %133 = arith.addf %126, %132 : vector<64x128xf32>
      %cst_58 = arith.constant 0.797884583 : f32
      %134 = vector.broadcast %cst_58 : f32 to vector<64x128xf32>
      %135 = arith.mulf %134, %133 : vector<64x128xf32>
      %136 = math.tanh %135 : vector<64x128xf32>
      %cst_59 = arith.constant 1.000000e+00 : f32
      %137 = vector.broadcast %cst_59 : f32 to vector<64x128xf32>
      %138 = arith.addf %137, %136 : vector<64x128xf32>
      %139 = arith.mulf %128, %138 : vector<64x128xf32>
      %140 = arith.index_cast %arg19 : i32 to index
      %c0_60 = arith.constant 0 : index
      %c0_61 = arith.constant 0 : index
      %141 = vector.load %arg15[%140, %c0_60, %c0_61] : memref<4x128x32xf32, #tpu.memory_space<vmem>>, vector<1x128x32xf32>
      %142 = vector.shape_cast %141 : vector<1x128x32xf32> to vector<128x32xf32>
      %cst_62 = arith.constant dense<0.000000e+00> : vector<64x32xf32>
      %143 = tpu.matmul %139, %142, %cst_62 {dimension_numbers = #tpu.dot_dimension_numbers<[1], [0], [0], [1], [0, 0, 1, 1], [], []>} : vector<64x128xf32>, vector<128x32xf32>, vector<64x32xf32> -> vector<64x32xf32>
      %144 = arith.addf %91, %143 : vector<64x32xf32>
      %145 = arith.index_cast %arg19 : i32 to index
      %c0_63 = arith.constant 0 : index
      %c0_64 = arith.constant 0 : index
      %146 = vector.load %arg16[%145, %c0_63, %c0_64] : memref<4x1x32xf32, #tpu.memory_space<vmem>>, vector<1x1x32xf32>
      %147 = vector.shape_cast %146 : vector<1x1x32xf32> to vector<1x32xf32>
      %148 = vector.broadcast %147 : vector<1x32xf32> to vector<64x32xf32>
      %149 = arith.addf %144, %148 : vector<64x32xf32>
      scf.yield %149 : vector<64x32xf32>
    }
    %c4_i32_7 = arith.constant 4 : i32
    %c0_8 = arith.constant 0 : index
    %c0_9 = arith.constant 0 : index
    %6 = vector.load %arg2[%c0_8, %c0_9] : memref<8x64xf32, #tpu.memory_space<vmem>>, vector<8x64xf32>
    %cst = arith.constant dense<0.000000e+00> : vector<8x32xf32>
    %7 = tpu.matmul %6, %5, %cst {dimension_numbers = #tpu.dot_dimension_numbers<[1], [0], [0], [1], [0, 0, 1, 1], [], []>} : vector<8x64xf32>, vector<64x32xf32>, vector<8x32xf32> -> vector<8x32xf32>
    %c0_10 = arith.constant 0 : index
    %c0_11 = arith.constant 0 : index
    %8 = vector.load %arg17[%c0_10, %c0_11] : memref<32x128xf32, #tpu.memory_space<vmem>>, vector<32x128xf32>
    %cst_12 = arith.constant dense<0.000000e+00> : vector<8x128xf32>
    %9 = tpu.matmul %7, %8, %cst_12 {dimension_numbers = #tpu.dot_dimension_numbers<[1], [0], [0], [1], [0, 0, 1, 1], [], []>} : vector<8x32xf32>, vector<32x128xf32>, vector<8x128xf32> -> vector<8x128xf32>
    %10 = arith.mulf %9, %9 : vector<8x128xf32>
    %cst_13 = arith.constant dense<0.000000e+00> : vector<8xf32>
    %11 = vector.multi_reduction <add>, %10, %cst_13 [1] : vector<8x128xf32> to vector<8xf32>
    %12 = vector.shape_cast %11 : vector<8xf32> to vector<8x1xf32>
    %cst_14 = arith.constant 1.000000e-30 : f32
    %13 = vector.broadcast %cst_14 : f32 to vector<8x1xf32>
    %14 = arith.maximumf %12, %13 : vector<8x1xf32>
    %15 = math.rsqrt %14 : vector<8x1xf32>
    %16 = vector.broadcast %15 : vector<8x1xf32> to vector<8x128xf32>
    %17 = arith.mulf %9, %16 : vector<8x128xf32>
    %c0_15 = arith.constant 0 : index
    %c0_16 = arith.constant 0 : index
    %18 = vector.load %arg18[%c0_15, %c0_16] : memref<8x128xf32, #tpu.memory_space<vmem>>, vector<8x128xf32>
    tpu.vector_store %arg18[%c0_15, %c0_16], %17 {strides = array<i32>} : memref<8x128xf32, #tpu.memory_space<vmem>>, vector<8x128xf32>,
    return
  }
}

</mosaic_0001>

<bundles_post_ra>
// kernel: tile.7
= control target key start
LH: loop header
LB: loop body
LE: loop exit
PB: predicated region body
PF: predicated region fallthrough
CT: control target
= control target key end

     0   :  { %vm228_vm0 = vcmask 1047556   ;;  %s765_s14 = smov 64   ;;  %vm3_vm1 = vcmask 523264   ;;  %vm232_vm2 = vcmask 1048064   ;;  %s1512_s0 = inlined_call_operand.vmem [shape: f32[64,8,64], index: 0, kind: input, shape index: {}]   ;;  %s1513_s1 = inlined_call_operand.vmem [shape: f32[64,512], index: 1, kind: output, shape index: {}]  }
   0x1   :  { %v674_v0 = vld [vmem:[%s1512_s0 + $0x81] ss:$8 sm:$0xf]   ;;  %v695_v24 = vld [vmem:[%s1512_s0 + $0x43] ss:$8 sm:$0xf]  }
   0x2   :  { %v675_v1 = vld [vmem:[%s1512_s0 + $0x81] ss:$8 sm:$0xf0]   ;;  %v696_v25 = vld [vmem:[%s1512_s0 + $0x43] ss:$8 sm:$0xf0]  }
   0x3   :  { %v250_v2 = vsel %vm228_vm0, %v675_v1, %v674_v0  ;;  %v669_v3 = vld [vmem:[%s1512_s0 + $0x1] ss:$8 sm:$0xf]   ;;  %v692_v26 = vld [vmem:[%s1512_s0 + $0x3] ss:$8 sm:$0xf]   ;;  %v327_v28 = vsel %vm228_vm0, %v696_v25, %v695_v24 }
   0x4   :  { %v670_v4 = vld [vmem:[%s1512_s0 + $0x1] ss:$8 sm:$0xf0]   ;;  %251 = vrot.lane.b32.xlu1 %v250_v2, %s765_s14  ;;  %v693_v27 = vld [vmem:[%s1512_s0 + $0x3] ss:$8 sm:$0xf0]  }
   0x5   :  { %v229_v5 = vsel %vm228_vm0, %v670_v4, %v669_v3  ;;  %v677_v6 = vld [vmem:[%s1512_s0 + $0xc1] ss:$8 sm:$0xf]   ;;  %v316_v29 = vsel %vm228_vm0, %v693_v27, %v692_v26  ;;  %v701_v30 = vld [vmem:[%s1512_s0 + $0xc3] ss:$8 sm:$0xf]  }
   0x6   :  { %v678_v7 = vld [vmem:[%s1512_s0 + $0xc1] ss:$8 sm:$0xf0]   ;;  %230 = vrot.lane.b32.xlu0 %v229_v5, %s765_s14  ;;  %v702_v31 = vld [vmem:[%s1512_s0 + $0xc3] ss:$8 sm:$0xf0]  }
   0x7   :  { %v261_v8 = vsel %vm228_vm0, %v678_v7, %v677_v6  ;;  %v671_v9 = vld [vmem:[%s1512_s0 + $0x41] ss:$8 sm:$0xf]   ;;  %v698_v32 = vld [vmem:[%s1512_s0 + $0x83] ss:$8 sm:$0xf]   ;;  %v349_v34 = vsel %vm228_vm0, %v702_v31, %v701_v30 }
   0x8   :  { %v672_v10 = vld [vmem:[%s1512_s0 + $0x41] ss:$8 sm:$0xf0]   ;;  %262 = vrot.lane.b32.xlu1 %v261_v8, %s765_s14  ;;  %v699_v33 = vld [vmem:[%s1512_s0 + $0x83] ss:$8 sm:$0xf0]  }
   0x9   :  { %v239_v11 = vsel %vm228_vm0, %v672_v10, %v671_v9  ;;  %v683_v12 = vld [vmem:[%s1512_s0 + $0x141] ss:$8 sm:$0xf]   ;;  %v338_v35 = vsel %vm228_vm0, %v699_v33, %v698_v32  ;;  %v707_v36 = vld [vmem:[%s1512_s0 + $0x143] ss:$8 sm:$0xf]  }
   0xa   :  { %v684_v13 = vld [vmem:[%s1512_s0 + $0x141] ss:$8 sm:$0xf0]   ;;  %240 = vrot.lane.b32.xlu0 %v239_v11, %s765_s14  ;;  %v708_v37 = vld [vmem:[%s1512_s0 + $0x143] ss:$8 sm:$0xf0]  }
   0xb   :  { %v680_v14 = vld [vmem:[%s1512_s0 + $0x101] ss:$8 sm:$0xf]   ;;  %v283_v16 = vsel %vm228_vm0, %v684_v13, %v683_v12  ;;  %v704_v38 = vld [vmem:[%s1512_s0 + $0x103] ss:$8 sm:$0xf]   ;;  %v371_v40 = vsel %vm228_vm0, %v708_v37, %v707_v36 }
   0xc   :  { %v681_v15 = vld [vmem:[%s1512_s0 + $0x101] ss:$8 sm:$0xf0]   ;;  %284 = vrot.lane.b32.xlu1 %v283_v16, %s765_s14  ;;  %v705_v39 = vld [vmem:[%s1512_s0 + $0x103] ss:$8 sm:$0xf0]  }
   0xd   :  { %v272_v17 = vsel %vm228_vm0, %v681_v15, %v680_v14  ;;  %v689_v18 = vld [vmem:[%s1512_s0 + $0x1c1] ss:$8 sm:$0xf]   ;;  %v360_v41 = vsel %vm228_vm0, %v705_v39, %v704_v38  ;;  %v713_v42 = vld [vmem:[%s1512_s0 + $0x1c3] ss:$8 sm:$0xf]  }
   0xe   :  { %v690_v19 = vld [vmem:[%s1512_s0 + $0x1c1] ss:$8 sm:$0xf0]   ;;  %273 = vrot.lane.b32.xlu0 %v272_v17, %s765_s14  ;;  %v714_v43 = vld [vmem:[%s1512_s0 + $0x1c3] ss:$8 sm:$0xf0]  }
   0xf   :  { %v686_v20 = vld [vmem:[%s1512_s0 + $0x181] ss:$8 sm:$0xf]   ;;  %v305_v22 = vsel %vm228_vm0, %v690_v19, %v689_v18  ;;  %v710_v44 = vld [vmem:[%s1512_s0 + $0x183] ss:$8 sm:$0xf]   ;;  %v393_v46 = vsel %vm228_vm0, %v714_v43, %v713_v42 }
  0x10   :  { %v687_v21 = vld [vmem:[%s1512_s0 + $0x181] ss:$8 sm:$0xf0]   ;;  %306 = vrot.lane.b32.xlu1 %v305_v22, %s765_s14  ;;  %v711_v45 = vld [vmem:[%s1512_s0 + $0x183] ss:$8 sm:$0xf0]  }
  0x11   :  { %v294_v23 = vsel %vm228_vm0, %v687_v21, %v686_v20  ;;  %v382_v47 = vsel %vm228_vm0, %v711_v45, %v710_v44  ;;  %v719_v48 = vld [vmem:[%s1512_s0 + $0x45] ss:$8 sm:$0xf]   ;;  %v597_v58 = vld [vmem:[%s1512_s0 + $0x80] ss:$2 sm:$0xff]  }
  0x12   :  { %295 = vrot.lane.b32.xlu0 %v294_v23, %s765_s14  ;;  %v720_v49 = vld [vmem:[%s1512_s0 + $0x45] ss:$8 sm:$0xf0]   ;;  %v600_v59 = vld [vmem:[%s1512_s0 + $0x90] ss:$2 sm:$0xff]  }
  0x13   :  { %v716_v50 = vld [vmem:[%s1512_s0 + $0x5] ss:$8 sm:$0xf]   ;;  %v415_v54 = vsel %vm228_vm0, %v720_v49, %v719_v48  ;;  %v603_v60 = vld [vmem:[%s1512_s0 + $0xa0] ss:$2 sm:$0xff]  }
  0x14   :  { %328 = vrot.lane.b32.xlu1 %v327_v28, %s765_s14  ;;  %v717_v51 = vld [vmem:[%s1512_s0 + $0x5] ss:$8 sm:$0xf0]   ;;  %598 = vst.msk [vmem:[%s1513_s1 + $0x40] ss:$8 sm:$0xf] %vm3_vm1, %v597_v58  }
  0x15   :  { %v725_v52 = vld [vmem:[%s1512_s0 + $0xc5] ss:$8 sm:$0xf]   ;;  %v404_v57 = vsel %vm228_vm0, %v717_v51, %v716_v50  ;;  %599 = vst.msk [vmem:[%s1513_s1 + $0x21] ss:$8 sm:$0xf0] %vm3_vm1, %v597_v58  }
  0x16   :  { %317 = vrot.lane.b32.xlu0 %v316_v29, %s765_s14  ;;  %v726_v53 = vld [vmem:[%s1512_s0 + $0xc5] ss:$8 sm:$0xf0]   ;;  %601 = vst.msk [vmem:[%s1513_s1 + $0x42] ss:$8 sm:$0xf] %vm3_vm1, %v600_v59  }
  0x17   :  { %v722_v55 = vld [vmem:[%s1512_s0 + $0x85] ss:$8 sm:$0xf]   ;;  %602 = vst.msk [vmem:[%s1513_s1 + $0x23] ss:$8 sm:$0xf0] %vm3_vm1, %v600_v59   ;;  %v437_v5 = vsel %vm228_vm0, %v726_v53, %v725_v52 }
  0x18   :  { %350 = vrot.lane.b32.xlu1 %v349_v34, %s765_s14  ;;  %v723_v56 = vld [vmem:[%s1512_s0 + $0x85] ss:$8 sm:$0xf0]   ;;  %604 = vst.msk [vmem:[%s1513_s1 + $0x44] ss:$8 sm:$0xf] %vm3_vm1, %v603_v60  }
  0x19   :  { %605 = vst.msk [vmem:[%s1513_s1 + $0x25] ss:$8 sm:$0xf0] %vm3_vm1, %v603_v60   ;;  %v606_v61 = vld [vmem:[%s1512_s0 + $0xb0] ss:$2 sm:$0xff]   ;;  %v426_v11 = vsel %vm228_vm0, %v723_v56, %v722_v55 }
  0x1a   :  { %339 = vrot.lane.b32.xlu0 %v338_v35, %s765_s14  ;;  %v2_v62 = vld [vmem:[%s1512_s0] ss:$2 sm:$0xff]   ;;  %v576_v63 = vld [vmem:[%s1512_s0 + $0x10] ss:$2 sm:$0xff]  }
  0x1b   :  { %v731_v0 = vld [vmem:[%s1512_s0 + $0x145] ss:$8 sm:$0xf]   ;;  %607 = vst.msk [vmem:[%s1513_s1 + $0x46] ss:$8 sm:$0xf] %vm3_vm1, %v606_v61  }
  0x1c   :  { %372 = vrot.lane.b32.xlu1 %v371_v40, %s765_s14  ;;  %v732_v1 = vld [vmem:[%s1512_s0 + $0x145] ss:$8 sm:$0xf0]   ;;  %608 = vst.msk [vmem:[%s1513_s1 + $0x27] ss:$8 sm:$0xf0] %vm3_vm1, %v606_v61  }
  0x1d   :  { %4 = vst.msk [vmem:[%s1513_s1] ss:$8 sm:$0xf] %vm3_vm1, %v2_v62   ;;  %575 = vst.msk [vmem:[%s1513_s1 - $0x1f] ss:$8 sm:$0xf0] %vm3_vm1, %v2_v62   ;;  %v459_v23 = vsel %vm228_vm0, %v732_v1, %v731_v0 }
  0x1e   :  { %361 = vrot.lane.b32.xlu0 %v360_v41, %s765_s14  ;;  %577 = vst.msk [vmem:[%s1513_s1 + $0x2] ss:$8 sm:$0xf] %vm3_vm1, %v576_v63   ;;  %578 = vst.msk [vmem:[%s1513_s1 - $0x1d] ss:$8 sm:$0xf0] %vm3_vm1, %v576_v63  }
  0x1f   :  { %v579_v2 = vld [vmem:[%s1512_s0 + $0x20] ss:$2 sm:$0xff]   ;;  %v582_v3 = vld [vmem:[%s1512_s0 + $0x30] ss:$2 sm:$0xff]  }
  0x20   :  { %394 = vrot.lane.b32.xlu1 %v393_v46, %s765_s14  ;;  %v609_v4 = vld [vmem:[%s1512_s0 + $0xc0] ss:$2 sm:$0xff]   ;;  %v728_v6 = vld [vmem:[%s1512_s0 + $0x105] ss:$8 sm:$0xf]  }
  0x21   :  { %v729_v7 = vld [vmem:[%s1512_s0 + $0x105] ss:$8 sm:$0xf0]   ;;  %580 = vst.msk [vmem:[%s1513_s1 + $0x4] ss:$8 sm:$0xf] %vm3_vm1, %v579_v2  }
  0x22   :  { %383 = vrot.lane.b32.xlu0 %v382_v47, %s765_s14  ;;  %581 = vst.msk [vmem:[%s1513_s1 - $0x1b] ss:$8 sm:$0xf0] %vm3_vm1, %v579_v2   ;;  %583 = vst.msk [vmem:[%s1513_s1 + $0x6] ss:$8 sm:$0xf] %vm3_vm1, %v582_v3   ;;  %v448_v29 = vsel %vm228_vm0, %v729_v7, %v728_v6 }
  0x23   :  { %584 = vst.msk [vmem:[%s1513_s1 - $0x19] ss:$8 sm:$0xf0] %vm3_vm1, %v582_v3   ;;  %610 = vst.msk [vmem:[%s1513_s1 + $0x60] ss:$8 sm:$0xf] %vm3_vm1, %v609_v4  }
  0x24   :  { %416 = vrot.lane.b32.xlu1 %v415_v54, %s765_s14  ;;  %611 = vst.msk [vmem:[%s1513_s1 + $0x41] ss:$8 sm:$0xf0] %vm3_vm1, %v609_v4   ;;  %v612_v8 = vld [vmem:[%s1512_s0 + $0xd0] ss:$2 sm:$0xff]  }
  0x25   :  { %v615_v9 = vld [vmem:[%s1512_s0 + $0xe0] ss:$2 sm:$0xff]   ;;  %v618_v10 = vld [vmem:[%s1512_s0 + $0xf0] ss:$2 sm:$0xff]  }
  0x26   :  { %405 = vrot.lane.b32.xlu0 %v404_v57, %s765_s14  ;;  %613 = vst.msk [vmem:[%s1513_s1 + $0x62] ss:$8 sm:$0xf] %vm3_vm1, %v612_v8   ;;  %614 = vst.msk [vmem:[%s1513_s1 + $0x43] ss:$8 sm:$0xf0] %vm3_vm1, %v612_v8  }
  0x27   :  { %616 = vst.msk [vmem:[%s1513_s1 + $0x64] ss:$8 sm:$0xf] %vm3_vm1, %v615_v9   ;;  %617 = vst.msk [vmem:[%s1513_s1 + $0x45] ss:$8 sm:$0xf0] %vm3_vm1, %v615_v9  }
  0x28   :  { %619 = vst.msk [vmem:[%s1513_s1 + $0x66] ss:$8 sm:$0xf] %vm3_vm1, %v618_v10   ;;  %620 = vst.msk [vmem:[%s1513_s1 + $0x47] ss:$8 sm:$0xf0] %vm3_vm1, %v618_v10   ;;  %438 = vrot.lane.b32.xlu1 %v437_v5, %s765_s14 }
  0x29   :  { %v585_v12 = vld [vmem:[%s1512_s0 + $0x40] ss:$2 sm:$0xff]   ;;  %v588_v13 = vld [vmem:[%s1512_s0 + $0x50] ss:$2 sm:$0xff]  }
  0x2a   :  { %v591_v14 = vld [vmem:[%s1512_s0 + $0x60] ss:$2 sm:$0xff]   ;;  %586 = vst.msk [vmem:[%s1513_s1 + $0x20] ss:$8 sm:$0xf] %vm3_vm1, %v585_v12   ;;  %427 = vrot.lane.b32.xlu0 %v426_v11, %s765_s14 }
  0x2b   :  { %587 = vst.msk [vmem:[%s1513_s1 + $0x1] ss:$8 sm:$0xf0] %vm3_vm1, %v585_v12   ;;  %589 = vst.msk [vmem:[%s1513_s1 + $0x22] ss:$8 sm:$0xf] %vm3_vm1, %v588_v13  }
  0x2c   :  { %590 = vst.msk [vmem:[%s1513_s1 + $0x3] ss:$8 sm:$0xf0] %vm3_vm1, %v588_v13   ;;  %592 = vst.msk [vmem:[%s1513_s1 + $0x24] ss:$8 sm:$0xf] %vm3_vm1, %v591_v14   ;;  %460 = vrot.lane.b32.xlu1 %v459_v23, %s765_s14 }
  0x2d   :  { %593 = vst.msk [vmem:[%s1513_s1 + $0x5] ss:$8 sm:$0xf0] %vm3_vm1, %v591_v14   ;;  %v594_v15 = vld [vmem:[%s1512_s0 + $0x70] ss:$2 sm:$0xff]  }
  0x2e   :  { %v633_v16 = vld [vmem:[%s1512_s0 + $0x140] ss:$2 sm:$0xff]   ;;  %v636_v17 = vld [vmem:[%s1512_s0 + $0x150] ss:$2 sm:$0xff]   ;;  %449 = vrot.lane.b32.xlu0 %v448_v29, %s765_s14 }
  0x2f   :  { %v737_v18 = vld [vmem:[%s1512_s0 + $0x1c5] ss:$8 sm:$0xf]   ;;  %595 = vst.msk [vmem:[%s1513_s1 + $0x26] ss:$8 sm:$0xf] %vm3_vm1, %v594_v15  }
  0x30   :  { %v738_v19 = vld [vmem:[%s1512_s0 + $0x1c5] ss:$8 sm:$0xf0]   ;;  %596 = vst.msk [vmem:[%s1513_s1 + $0x7] ss:$8 sm:$0xf0] %vm3_vm1, %v594_v15  }
  0x31   :  { %634 = vst.msk [vmem:[%s1513_s1 + $0xa0] ss:$8 sm:$0xf] %vm3_vm1, %v633_v16   ;;  %635 = vst.msk [vmem:[%s1513_s1 + $0x81] ss:$8 sm:$0xf0] %vm3_vm1, %v633_v16   ;;  %v481_v38 = vsel %vm228_vm0, %v738_v19, %v737_v18 }
  0x32   :  { %637 = vst.msk [vmem:[%s1513_s1 + $0xa2] ss:$8 sm:$0xf] %vm3_vm1, %v636_v17   ;;  %638 = vst.msk [vmem:[%s1513_s1 + $0x83] ss:$8 sm:$0xf0] %vm3_vm1, %v636_v17   ;;  %482 = vrot.lane.b32.xlu1 %v481_v38, %s765_s14 }
  0x33   :  { %v639_v20 = vld [vmem:[%s1512_s0 + $0x160] ss:$2 sm:$0xff]   ;;  %v642_v21 = vld [vmem:[%s1512_s0 + $0x170] ss:$2 sm:$0xff]  }
  0x34   :  { %v621_v22 = vld [vmem:[%s1512_s0 + $0x100] ss:$2 sm:$0xff]   ;;  %v734_v24 = vld [vmem:[%s1512_s0 + $0x185] ss:$8 sm:$0xf]  }
  0x35   :  { %v735_v25 = vld [vmem:[%s1512_s0 + $0x185] ss:$8 sm:$0xf0]   ;;  %640 = vst.msk [vmem:[%s1513_s1 + $0xa4] ss:$8 sm:$0xf] %vm3_vm1, %v639_v20  }
  0x36   :  { %641 = vst.msk [vmem:[%s1513_s1 + $0x85] ss:$8 sm:$0xf0] %vm3_vm1, %v639_v20   ;;  %643 = vst.msk [vmem:[%s1513_s1 + $0xa6] ss:$8 sm:$0xf] %vm3_vm1, %v642_v21   ;;  %v470_v39 = vsel %vm228_vm0, %v735_v25, %v734_v24 }
  0x37   :  { %644 = vst.msk [vmem:[%s1513_s1 + $0x87] ss:$8 sm:$0xf0] %vm3_vm1, %v642_v21   ;;  %622 = vst.msk [vmem:[%s1513_s1 + $0x80] ss:$8 sm:$0xf] %vm3_vm1, %v621_v22   ;;  %471 = vrot.lane.b32.xlu0 %v470_v39, %s765_s14 }
  0x38   :  { %623 = vst.msk [vmem:[%s1513_s1 + $0x61] ss:$8 sm:$0xf0] %vm3_vm1, %v621_v22   ;;  %v624_v26 = vld [vmem:[%s1512_s0 + $0x110] ss:$2 sm:$0xff]  }
  0x39   :  { %v627_v27 = vld [vmem:[%s1512_s0 + $0x120] ss:$2 sm:$0xff]   ;;  %v630_v28 = vld [vmem:[%s1512_s0 + $0x130] ss:$2 sm:$0xff]  }
  0x3a   :  { %625 = vst.msk [vmem:[%s1513_s1 + $0x82] ss:$8 sm:$0xf] %vm3_vm1, %v624_v26   ;;  %626 = vst.msk [vmem:[%s1513_s1 + $0x63] ss:$8 sm:$0xf0] %vm3_vm1, %v624_v26  }
  0x3b   :  { %628 = vst.msk [vmem:[%s1513_s1 + $0x84] ss:$8 sm:$0xf] %vm3_vm1, %v627_v27   ;;  %629 = vst.msk [vmem:[%s1513_s1 + $0x65] ss:$8 sm:$0xf0] %vm3_vm1, %v627_v27  }
  0x3c   :  { %631 = vst.msk [vmem:[%s1513_s1 + $0x86] ss:$8 sm:$0xf] %vm3_vm1, %v630_v28   ;;  %632 = vst.msk [vmem:[%s1513_s1 + $0x67] ss:$8 sm:$0xf0] %vm3_vm1, %v630_v28  }
  0x3d   :  { %v657_v30 = vld [vmem:[%s1512_s0 + $0x1c0] ss:$2 sm:$0xff]   ;;  %v660_v31 = vld [vmem:[%s1512_s0 + $0x1d0] ss:$2 sm:$0xff]  }
  0x3e   :  { %v663_v32 = vld [vmem:[%s1512_s0 + $0x1e0] ss:$2 sm:$0xff]   ;;  %658 = vst.msk [vmem:[%s1513_s1 + $0xe0] ss:$8 sm:$0xf] %vm3_vm1, %v657_v30  }
  0x3f   :  { %659 = vst.msk [vmem:[%s1513_s1 + $0xc1] ss:$8 sm:$0xf0] %vm3_vm1, %v657_v30   ;;  %661 = vst.msk [vmem:[%s1513_s1 + $0xe2] ss:$8 sm:$0xf] %vm3_vm1, %v660_v31  }
  0x40   :  { %662 = vst.msk [vmem:[%s1513_s1 + $0xc3] ss:$8 sm:$0xf0] %vm3_vm1, %v660_v31   ;;  %664 = vst.msk [vmem:[%s1513_s1 + $0xe4] ss:$8 sm:$0xf] %vm3_vm1, %v663_v32  }
  0x41   :  { %665 = vst.msk [vmem:[%s1513_s1 + $0xc5] ss:$8 sm:$0xf0] %vm3_vm1, %v663_v32   ;;  %v666_v33 = vld [vmem:[%s1512_s0 + $0x1f0] ss:$2 sm:$0xff]  }
  0x42   :  { %v645_v34 = vld [vmem:[%s1512_s0 + $0x180] ss:$2 sm:$0xff]   ;;  %v648_v35 = vld [vmem:[%s1512_s0 + $0x190] ss:$2 sm:$0xff]  }
  0x43   :  { %667 = vst.msk [vmem:[%s1513_s1 + $0xe6] ss:$8 sm:$0xf] %vm3_vm1, %v666_v33   ;;  %668 = vst.msk [vmem:[%s1513_s1 + $0xc7] ss:$8 sm:$0xf0] %vm3_vm1, %v666_v33  }
  0x44   :  { %646 = vst.msk [vmem:[%s1513_s1 + $0xc0] ss:$8 sm:$0xf] %vm3_vm1, %v645_v34   ;;  %647 = vst.msk [vmem:[%s1513_s1 + $0xa1] ss:$8 sm:$0xf0] %vm3_vm1, %v645_v34  }
  0x45   :  { %649 = vst.msk [vmem:[%s1513_s1 + $0xc2] ss:$8 sm:$0xf] %vm3_vm1, %v648_v35   ;;  %650 = vst.msk [vmem:[%s1513_s1 + $0xa3] ss:$8 sm:$0xf0] %vm3_vm1, %v648_v35  }
  0x46   :  { %v651_v36 = vld [vmem:[%s1512_s0 + $0x1a0] ss:$2 sm:$0xff]   ;;  %v654_v37 = vld [vmem:[%s1512_s0 + $0x1b0] ss:$2 sm:$0xff]  }
  0x47   :  { %652 = vst.msk [vmem:[%s1513_s1 + $0xc4] ss:$8 sm:$0xf] %vm3_vm1, %v651_v36   ;;  %653 = vst.msk [vmem:[%s1513_s1 + $0xa5] ss:$8 sm:$0xf0] %vm3_vm1, %v651_v36  }
  0x48   :  { %655 = vst.msk [vmem:[%s1513_s1 + $0xc6] ss:$8 sm:$0xf] %vm3_vm1, %v654_v37   ;;  %656 = vst.msk [vmem:[%s1513_s1 + $0xa7] ss:$8 sm:$0xf0] %vm3_vm1, %v654_v37  }
  0x49   :  { %v743_v40 = vld [vmem:[%s1512_s0 + $0x47] ss:$8 sm:$0xf]  }
  0x4a   :  { %v744_v41 = vld [vmem:[%s1512_s0 + $0x47] ss:$8 sm:$0xf0]  }
  0x4b   :  { %v740_v42 = vld [vmem:[%s1512_s0 + $0x7] ss:$8 sm:$0xf]   ;;  %v503_v44 = vsel %vm228_vm0, %v744_v41, %v743_v40 }
  0x4c   :  { %v741_v43 = vld [vmem:[%s1512_s0 + $0x7] ss:$8 sm:$0xf0]   ;;  %504 = vrot.lane.b32.xlu1 %v503_v44, %s765_s14 }
  0x4d   :  { %v492_v45 = vsel %vm228_vm0, %v741_v43, %v740_v42  ;;  %v749_v46 = vld [vmem:[%s1512_s0 + $0xc7] ss:$8 sm:$0xf]  }
  0x4e   :  { %v750_v47 = vld [vmem:[%s1512_s0 + $0xc7] ss:$8 sm:$0xf0]   ;;  %493 = vrot.lane.b32.xlu0 %v492_v45, %s765_s14 }
  0x4f   :  { %v746_v48 = vld [vmem:[%s1512_s0 + $0x87] ss:$8 sm:$0xf]   ;;  %v525_v50 = vsel %vm228_vm0, %v750_v47, %v749_v46 }
  0x50   :  { %v747_v49 = vld [vmem:[%s1512_s0 + $0x87] ss:$8 sm:$0xf0]   ;;  %526 = vrot.lane.b32.xlu1 %v525_v50, %s765_s14 }
  0x51   :  { %v514_v51 = vsel %vm228_vm0, %v747_v49, %v746_v48  ;;  %v755_v52 = vld [vmem:[%s1512_s0 + $0x147] ss:$8 sm:$0xf]  }
  0x52   :  { %v756_v53 = vld [vmem:[%s1512_s0 + $0x147] ss:$8 sm:$0xf0]   ;;  %515 = vrot.lane.b32.xlu0 %v514_v51, %s765_s14 }
  0x53   :  { %v752_v54 = vld [vmem:[%s1512_s0 + $0x107] ss:$8 sm:$0xf]   ;;  %v547_v56 = vsel %vm228_vm0, %v756_v53, %v755_v52 }
  0x54   :  { %v753_v55 = vld [vmem:[%s1512_s0 + $0x107] ss:$8 sm:$0xf0]   ;;  %548 = vrot.lane.b32.xlu1 %v547_v56, %s765_s14 }
  0x55   :  { %v536_v57 = vsel %vm228_vm0, %v753_v55, %v752_v54  ;;  %v761_v58 = vld [vmem:[%s1512_s0 + $0x1c7] ss:$8 sm:$0xf]  }
  0x56   :  { %v762_v59 = vld [vmem:[%s1512_s0 + $0x1c7] ss:$8 sm:$0xf0]   ;;  %537 = vrot.lane.b32.xlu0 %v536_v57, %s765_s14 }
  0x57   :  { %v758_v60 = vld [vmem:[%s1512_s0 + $0x187] ss:$8 sm:$0xf]   ;;  %v569_v62 = vsel %vm228_vm0, %v762_v59, %v761_v58 }
  0x58   :  { %v759_v61 = vld [vmem:[%s1512_s0 + $0x187] ss:$8 sm:$0xf0]   ;;  %570 = vrot.lane.b32.xlu1 %v569_v62, %s765_s14 }
  0x59   :  { %v558_v63 = vsel %vm228_vm0, %v759_v61, %v758_v60 }
  0x5a   :  { %559 = vrot.lane.b32.xlu0 %v558_v63, %s765_s14 }
  0x76   :  { %v252_v0 = vpop.permute.xlu1 %251  }
  0x77   :  { %676 = vst.msk [vmem:[%s1513_s1 + $0x40] sm:$0xff] %vm232_vm2, %v252_v0  }
  0x78   :  { %v231_v1 = vpop.permute.xlu0 %230  }
  0x79   :  { %233 = vst.msk [vmem:[%s1513_s1] sm:$0xff] %vm232_vm2, %v231_v1  }
  0x7a   :  { %v263_v2 = vpop.permute.xlu1 %262  }
  0x7b   :  { %679 = vst.msk [vmem:[%s1513_s1 + $0x60] sm:$0xff] %vm232_vm2, %v263_v2  }
  0x7c   :  { %v241_v3 = vpop.permute.xlu0 %240  }
  0x7d   :  { %673 = vst.msk [vmem:[%s1513_s1 + $0x20] sm:$0xff] %vm232_vm2, %v241_v3  }
  0x7e   :  { %v285_v4 = vpop.permute.xlu1 %284  }
  0x7f   :  { %685 = vst.msk [vmem:[%s1513_s1 + $0xa0] sm:$0xff] %vm232_vm2, %v285_v4  }
  0x80   :  { %v274_v5 = vpop.permute.xlu0 %273  }
  0x81   :  { %682 = vst.msk [vmem:[%s1513_s1 + $0x80] sm:$0xff] %vm232_vm2, %v274_v5  }
  0x82   :  { %v307_v6 = vpop.permute.xlu1 %306  }
  0x83   :  { %691 = vst.msk [vmem:[%s1513_s1 + $0xe0] sm:$0xff] %vm232_vm2, %v307_v6  }
  0x84   :  { %v296_v7 = vpop.permute.xlu0 %295  }
  0x85   :  { %688 = vst.msk [vmem:[%s1513_s1 + $0xc0] sm:$0xff] %vm232_vm2, %v296_v7  }
  0x86   :  { %v329_v8 = vpop.permute.xlu1 %328  }
  0x87   :  { %697 = vst.msk [vmem:[%s1513_s1 + $0x28] sm:$0xff] %vm232_vm2, %v329_v8  }
  0x88   :  { %v318_v9 = vpop.permute.xlu0 %317  }
  0x89   :  { %694 = vst.msk [vmem:[%s1513_s1 + $0x8] sm:$0xff] %vm232_vm2, %v318_v9  }
  0x8a   :  { %v351_v10 = vpop.permute.xlu1 %350  }
  0x8b   :  { %703 = vst.msk [vmem:[%s1513_s1 + $0x68] sm:$0xff] %vm232_vm2, %v351_v10  }
  0x8c   :  { %v340_v11 = vpop.permute.xlu0 %339  }
  0x8d   :  { %700 = vst.msk [vmem:[%s1513_s1 + $0x48] sm:$0xff] %vm232_vm2, %v340_v11  }
  0x8e   :  { %v373_v12 = vpop.permute.xlu1 %372  }
  0x8f   :  { %709 = vst.msk [vmem:[%s1513_s1 + $0xa8] sm:$0xff] %vm232_vm2, %v373_v12  }
  0x90   :  { %v362_v13 = vpop.permute.xlu0 %361  }
  0x91   :  { %706 = vst.msk [vmem:[%s1513_s1 + $0x88] sm:$0xff] %vm232_vm2, %v362_v13  }
  0x92   :  { %v395_v14 = vpop.permute.xlu1 %394  }
  0x93   :  { %715 = vst.msk [vmem:[%s1513_s1 + $0xe8] sm:$0xff] %vm232_vm2, %v395_v14  }
  0x94   :  { %v384_v15 = vpop.permute.xlu0 %383  }
  0x95   :  { %712 = vst.msk [vmem:[%s1513_s1 + $0xc8] sm:$0xff] %vm232_vm2, %v384_v15  }
  0x96   :  { %v417_v16 = vpop.permute.xlu1 %416  }
  0x97   :  { %721 = vst.msk [vmem:[%s1513_s1 + $0x30] sm:$0xff] %vm232_vm2, %v417_v16  }
  0x98   :  { %v406_v17 = vpop.permute.xlu0 %405  }
  0x99   :  { %718 = vst.msk [vmem:[%s1513_s1 + $0x10] sm:$0xff] %vm232_vm2, %v406_v17  }
  0x9a   :  { %v439_v18 = vpop.permute.xlu1 %438  }
  0x9b   :  { %727 = vst.msk [vmem:[%s1513_s1 + $0x70] sm:$0xff] %vm232_vm2, %v439_v18  }
  0x9c   :  { %v428_v19 = vpop.permute.xlu0 %427  }
  0x9d   :  { %724 = vst.msk [vmem:[%s1513_s1 + $0x50] sm:$0xff] %vm232_vm2, %v428_v19  }
  0x9e   :  { %v461_v20 = vpop.permute.xlu1 %460  }
  0x9f   :  { %733 = vst.msk [vmem:[%s1513_s1 + $0xb0] sm:$0xff] %vm232_vm2, %v461_v20  }
  0xa0   :  { %v450_v21 = vpop.permute.xlu0 %449  }
  0xa1   :  { %730 = vst.msk [vmem:[%s1513_s1 + $0x90] sm:$0xff] %vm232_vm2, %v450_v21  }
  0xa4   :  { %v483_v22 = vpop.permute.xlu1 %482  }
  0xa5   :  { %739 = vst.msk [vmem:[%s1513_s1 + $0xf0] sm:$0xff] %vm232_vm2, %v483_v22  }
  0xa9   :  { %v472_v23 = vpop.permute.xlu0 %471  }
  0xaa   :  { %736 = vst.msk [vmem:[%s1513_s1 + $0xd0] sm:$0xff] %vm232_vm2, %v472_v23  }
  0xbe   :  { %v505_v24 = vpop.permute.xlu1 %504  }
  0xbf   :  { %745 = vst.msk [vmem:[%s1513_s1 + $0x38] sm:$0xff] %vm232_vm2, %v505_v24  }
  0xc0   :  { %v494_v25 = vpop.permute.xlu0 %493  }
  0xc1   :  { %742 = vst.msk [vmem:[%s1513_s1 + $0x18] sm:$0xff] %vm232_vm2, %v494_v25  }
  0xc2   :  { %v527_v26 = vpop.permute.xlu1 %526  }
  0xc3   :  { %751 = vst.msk [vmem:[%s1513_s1 + $0x78] sm:$0xff] %vm232_vm2, %v527_v26  }
  0xc4   :  { %v516_v27 = vpop.permute.xlu0 %515  }
  0xc5   :  { %748 = vst.msk [vmem:[%s1513_s1 + $0x58] sm:$0xff] %vm232_vm2, %v516_v27  }
  0xc6   :  { %v549_v28 = vpop.permute.xlu1 %548  }
  0xc7   :  { %757 = vst.msk [vmem:[%s1513_s1 + $0xb8] sm:$0xff] %vm232_vm2, %v549_v28  }
  0xc8   :  { %v538_v29 = vpop.permute.xlu0 %537  }
  0xc9   :  { %754 = vst.msk [vmem:[%s1513_s1 + $0x98] sm:$0xff] %vm232_vm2, %v538_v29  }
  0xca   :  { %v571_v30 = vpop.permute.xlu1 %570  }
  0xcb   :  { %763 = vst.msk [vmem:[%s1513_s1 + $0xf8] sm:$0xff] %vm232_vm2, %v571_v30  }
  0xcc   :  { %v560_v31 = vpop.permute.xlu0 %559  }
  0xcd   :  { %760 = vst.msk [vmem:[%s1513_s1 + $0xd8] sm:$0xff] %vm232_vm2, %v560_v31  }

// kernel: text_encoder_forward.1
= control target key start
LH: loop header
LB: loop body
LE: loop exit
PB: predicated region body
PF: predicated region fallthrough
CT: control target
= control target key end

     0   :  { %s6566_s1 = inlined_call_operand.vmem [shape: f32[64,512], index: 1, kind: input, shape index: {}]   ;;  %s6567_s2 = inlined_call_operand.vmem [shape: f32[8,64], index: 2, kind: input, shape index: {}]   ;;  %s6568_s5 = inlined_call_operand.vmem [shape: f32[4,1,32], index: 5, kind: input, shape index: {}]   ;;  %s6569_s6 = inlined_call_operand.vmem [shape: f32[4,1,32], index: 6, kind: input, shape index: {}]   ;;  %s6570_s7 = inlined_call_operand.vmem [shape: f32[4,32,96], index: 7, kind: input, shape index: {}]   ;;  %s6571_s8 = inlined_call_operand.vmem [shape: f32[4,1,96], index: 8, kind: input, shape index: {}]   ;;  %s6572_s9 = inlined_call_operand.vmem [shape: f32[4,32,32], index: 9, kind: input, shape index: {}]   ;;  %s6573_s10 = inlined_call_operand.vmem [shape: f32[4,1,32], index: 10, kind: input, shape index: {}]   ;;  %s6574_s11 = inlined_call_operand.vmem [shape: f32[4,1,32], index: 11, kind: input, shape index: {}]   ;;  %s6575_s12 = inlined_call_operand.vmem [shape: f32[4,1,32], index: 12, kind: input, shape index: {}]   ;;  %s6576_s13 = inlined_call_operand.vmem [shape: f32[4,32,128], index: 13, kind: input, shape index: {}]   ;;  %s6577_s14 = inlined_call_operand.vmem [shape: f32[4,1,128], index: 14, kind: input, shape index: {}]   ;;  %s6578_s15 = inlined_call_operand.vmem [shape: f32[4,128,32], index: 15, kind: input, shape index: {}]   ;;  %s6579_s16 = inlined_call_operand.vmem [shape: f32[4,1,32], index: 16, kind: input, shape index: {}]   ;;  %s6580_s17 = inlined_call_operand.vmem [shape: f32[32,128], index: 17, kind: input, shape index: {}]   ;;  %s6581_s18 = inlined_call_operand.vmem [shape: f32[8,128], index: 18, kind: output, shape index: {}]   ;;  %s6582_s3 = inlined_call_operand.vmem [shape: f32[8,32], index: 3, kind: input, shape index: {}]   ;;  %s6583_s4 = inlined_call_operand.vmem [shape: f32[512,8], index: 4, kind: input, shape index: {}]   ;;  %s6584_s0 = inlined_call_operand.vmem [shape: f32[64,32], index: 0, kind: input, shape index: {}]  }
   0x1   :  { %6604 = sst [smem:[#allocation111_spill]] %s6566_s1  ;;  %v4956_v32 = vld [vmem:[%s6582_s3] sm:$0xff]  ;;  %v4966_v34 = vld [vmem:[%s6583_s4 + $0x8] sm:$0xff]  ;;  %v4971_v35 = vld [vmem:[%s6583_s4 + $0x10] sm:$0xff] }
   0x2   :  { %6605 = sst [smem:[#allocation112_spill]] %s6567_s2  ;;  %s6607_s29 = sld [smem:[#allocation111_spill]]  ;;  %6640 = vst [vmem:[#allocation34_spill] sm:$0xff] %v4956_v32  ;;  %v4961_v33 = vld [vmem:[%s6583_s4] sm:$0xff]  ;;  %6642 = vst [vmem:[#allocation36_spill] sm:$0xff] %v4966_v34  ;;  %v4976_v36 = vld [vmem:[%s6583_s4 + $0x18] sm:$0xff] }
   0x3   :  { %6606 = sst [smem:[#allocation113_spill]] %s6568_s5  ;;  %6641 = vst [vmem:[#allocation35_spill] sm:$0xff] %v4961_v33  ;;  %6643 = vst [vmem:[#allocation37_spill] sm:$0xff] %v4971_v35  ;;  %v4981_v37 = vld [vmem:[%s6583_s4 + $0x20] sm:$0xff]  ;;  %v4986_v38 = vld [vmem:[%s6583_s4 + $0x28] sm:$0xff]  ;;  %s5318_s5 = smov 0  }
   0x4   :  { %6644 = vst [vmem:[#allocation38_spill] sm:$0xff] %v4976_v36  ;;  %6645 = vst [vmem:[#allocation39_spill] sm:$0xff] %v4981_v37  ;;  %v4991_v39 = vld [vmem:[%s6583_s4 + $0x30] sm:$0xff]  ;;  %v4996_v40 = vld [vmem:[%s6583_s4 + $0x38] sm:$0xff] }
   0x5   :  { %6646 = vst [vmem:[#allocation40_spill] sm:$0xff] %v4986_v38  ;;  %6647 = vst [vmem:[#allocation41_spill] sm:$0xff] %v4991_v39  ;;  %v5001_v41 = vld [vmem:[%s6583_s4 + $0x40] sm:$0xff]  ;;  %v5006_v42 = vld [vmem:[%s6583_s4 + $0x48] sm:$0xff] }
   0x6   :  { %6648 = vst [vmem:[#allocation42_spill] sm:$0xff] %v4996_v40  ;;  %6649 = vst [vmem:[#allocation43_spill] sm:$0xff] %v5001_v41  ;;  %v5011_v43 = vld [vmem:[%s6583_s4 + $0x50] sm:$0xff]  ;;  %v5016_v44 = vld [vmem:[%s6583_s4 + $0x58] sm:$0xff] }
   0x7   :  { %6650 = vst [vmem:[#allocation44_spill] sm:$0xff] %v5006_v42  ;;  %6651 = vst [vmem:[#allocation45_spill] sm:$0xff] %v5011_v43  ;;  %v5021_v45 = vld [vmem:[%s6583_s4 + $0x60] sm:$0xff]  ;;  %v5026_v46 = vld [vmem:[%s6583_s4 + $0x68] sm:$0xff] }
   0x8   :  { %v4796_v0 = vld [vmem:[%s6607_s29] sm:$0xff]  ;;  %v4801_v1 = vld [vmem:[%s6607_s29 + $0x8] sm:$0xff]  ;;  %v4806_v2 = vld [vmem:[%s6607_s29 + $0x10] sm:$0xff]  ;;  %6652 = vst [vmem:[#allocation46_spill] sm:$0xff] %v5016_v44 }
   0x9   :  { %6608 = vst [vmem:[#allocation2_spill] sm:$0xff] %v4796_v0  ;;  %6609 = vst [vmem:[#allocation3_spill] sm:$0xff] %v4801_v1  ;;  %v4811_v3 = vld [vmem:[%s6607_s29 + $0x18] sm:$0xff]  ;;  %v4816_v4 = vld [vmem:[%s6607_s29 + $0x20] sm:$0xff] }
   0xa   :  { %6610 = vst [vmem:[#allocation4_spill] sm:$0xff] %v4806_v2  ;;  %6611 = vst [vmem:[#allocation5_spill] sm:$0xff] %v4811_v3  ;;  %v4821_v5 = vld [vmem:[%s6607_s29 + $0x28] sm:$0xff]  ;;  %v4826_v6 = vld [vmem:[%s6607_s29 + $0x30] sm:$0xff] }
   0xb   :  { %6612 = vst [vmem:[#allocation6_spill] sm:$0xff] %v4816_v4  ;;  %6613 = vst [vmem:[#allocation7_spill] sm:$0xff] %v4821_v5  ;;  %v4831_v7 = vld [vmem:[%s6607_s29 + $0x38] sm:$0xff]  ;;  %v4836_v8 = vld [vmem:[%s6607_s29 + $0x40] sm:$0xff] }
   0xc   :  { %6614 = vst [vmem:[#allocation8_spill] sm:$0xff] %v4826_v6  ;;  %6615 = vst [vmem:[#allocation9_spill] sm:$0xff] %v4831_v7  ;;  %v4841_v9 = vld [vmem:[%s6607_s29 + $0x48] sm:$0xff]  ;;  %v4846_v10 = vld [vmem:[%s6607_s29 + $0x50] sm:$0xff] }
   0xd   :  { %6616 = vst [vmem:[#allocation10_spill] sm:$0xff] %v4836_v8  ;;  %6617 = vst [vmem:[#allocation11_spill] sm:$0xff] %v4841_v9  ;;  %v4851_v11 = vld [vmem:[%s6607_s29 + $0x58] sm:$0xff]  ;;  %v4856_v12 = vld [vmem:[%s6607_s29 + $0x60] sm:$0xff] }
   0xe   :  { %6618 = vst [vmem:[#allocation12_spill] sm:$0xff] %v4846_v10  ;;  %6619 = vst [vmem:[#allocation13_spill] sm:$0xff] %v4851_v11  ;;  %v4861_v13 = vld [vmem:[%s6607_s29 + $0x68] sm:$0xff]  ;;  %v4866_v14 = vld [vmem:[%s6607_s29 + $0x70] sm:$0xff] }
   0xf   :  { %6620 = vst [vmem:[#allocation14_spill] sm:$0xff] %v4856_v12  ;;  %6621 = vst [vmem:[#allocation15_spill] sm:$0xff] %v4861_v13  ;;  %v4871_v15 = vld [vmem:[%s6607_s29 + $0x78] sm:$0xff]  ;;  %v4876_v16 = vld [vmem:[%s6607_s29 + $0x80] sm:$0xff] }
  0x10   :  { %6622 = vst [vmem:[#allocation16_spill] sm:$0xff] %v4866_v14  ;;  %6623 = vst [vmem:[#allocation17_spill] sm:$0xff] %v4871_v15  ;;  %v4881_v17 = vld [vmem:[%s6607_s29 + $0x88] sm:$0xff]  ;;  %v4886_v18 = vld [vmem:[%s6607_s29 + $0x90] sm:$0xff] }
  0x11   :  { %6624 = vst [vmem:[#allocation18_spill] sm:$0xff] %v4876_v16  ;;  %6625 = vst [vmem:[#allocation19_spill] sm:$0xff] %v4881_v17  ;;  %v4891_v19 = vld [vmem:[%s6607_s29 + $0x98] sm:$0xff]  ;;  %v4896_v20 = vld [vmem:[%s6607_s29 + $0xa0] sm:$0xff] }
  0x12   :  { %6626 = vst [vmem:[#allocation20_spill] sm:$0xff] %v4886_v18  ;;  %6627 = vst [vmem:[#allocation21_spill] sm:$0xff] %v4891_v19  ;;  %v4901_v21 = vld [vmem:[%s6607_s29 + $0xa8] sm:$0xff]  ;;  %v4906_v22 = vld [vmem:[%s6607_s29 + $0xb0] sm:$0xff] }
  0x13   :  { %6628 = vst [vmem:[#allocation22_spill] sm:$0xff] %v4896_v20  ;;  %6629 = vst [vmem:[#allocation23_spill] sm:$0xff] %v4901_v21  ;;  %v4911_v23 = vld [vmem:[%s6607_s29 + $0xb8] sm:$0xff]  ;;  %v4916_v24 = vld [vmem:[%s6607_s29 + $0xc0] sm:$0xff] }
  0x14   :  { %6630 = vst [vmem:[#allocation24_spill] sm:$0xff] %v4906_v22  ;;  %6631 = vst [vmem:[#allocation25_spill] sm:$0xff] %v4911_v23  ;;  %v4921_v25 = vld [vmem:[%s6607_s29 + $0xc8] sm:$0xff]  ;;  %v4926_v26 = vld [vmem:[%s6607_s29 + $0xd0] sm:$0xff] }
  0x15   :  { %6632 = vst [vmem:[#allocation26_spill] sm:$0xff] %v4916_v24  ;;  %6633 = vst [vmem:[#allocation27_spill] sm:$0xff] %v4921_v25  ;;  %v4931_v27 = vld [vmem:[%s6607_s29 + $0xd8] sm:$0xff]  ;;  %v4936_v28 = vld [vmem:[%s6607_s29 + $0xe0] sm:$0xff] }
  0x16   :  { %6634 = vst [vmem:[#allocation28_spill] sm:$0xff] %v4926_v26  ;;  %6635 = vst [vmem:[#allocation29_spill] sm:$0xff] %v4931_v27  ;;  %v4941_v29 = vld [vmem:[%s6607_s29 + $0xe8] sm:$0xff]  ;;  %v4946_v30 = vld [vmem:[%s6607_s29 + $0xf0] sm:$0xff] }
  0x17   :  { %6636 = vst [vmem:[#allocation30_spill] sm:$0xff] %v4936_v28  ;;  %6637 = vst [vmem:[#allocation31_spill] sm:$0xff] %v4941_v29  ;;  %v4951_v31 = vld [vmem:[%s6607_s29 + $0xf8] sm:$0xff]  ;;  %v5031_v47 = vld [vmem:[%s6583_s4 + $0x70] sm:$0xff] }
  0x18   :  { %6638 = vst [vmem:[#allocation32_spill] sm:$0xff] %v4946_v30  ;;  %6639 = vst [vmem:[#allocation33_spill] sm:$0xff] %v4951_v31  ;;  %v5036_v48 = vld [vmem:[%s6583_s4 + $0x78] sm:$0xff]  ;;  %v5041_v49 = vld [vmem:[%s6583_s4 + $0x80] sm:$0xff] }
  0x19   :  { %6653 = vst [vmem:[#allocation47_spill] sm:$0xff] %v5021_v45  ;;  %6654 = vst [vmem:[#allocation48_spill] sm:$0xff] %v5026_v46  ;;  %v5046_v50 = vld [vmem:[%s6583_s4 + $0x88] sm:$0xff]  ;;  %v5051_v51 = vld [vmem:[%s6583_s4 + $0x90] sm:$0xff] }
  0x1a   :  { %6655 = vst [vmem:[#allocation49_spill] sm:$0xff] %v5031_v47  ;;  %6656 = vst [vmem:[#allocation50_spill] sm:$0xff] %v5036_v48  ;;  %v5056_v52 = vld [vmem:[%s6583_s4 + $0x98] sm:$0xff]  ;;  %v5061_v53 = vld [vmem:[%s6583_s4 + $0xa0] sm:$0xff] }
  0x1b   :  { %6657 = vst [vmem:[#allocation51_spill] sm:$0xff] %v5041_v49  ;;  %6658 = vst [vmem:[#allocation52_spill] sm:$0xff] %v5046_v50  ;;  %v5066_v54 = vld [vmem:[%s6583_s4 + $0xa8] sm:$0xff]  ;;  %v5071_v55 = vld [vmem:[%s6583_s4 + $0xb0] sm:$0xff] }
  0x1c   :  { %6659 = vst [vmem:[#allocation53_spill] sm:$0xff] %v5051_v51  ;;  %6660 = vst [vmem:[#allocation54_spill] sm:$0xff] %v5056_v52  ;;  %v5076_v56 = vld [vmem:[%s6583_s4 + $0xb8] sm:$0xff]  ;;  %v5081_v57 = vld [vmem:[%s6583_s4 + $0xc0] sm:$0xff] }
  0x1d   :  { %6661 = vst [vmem:[#allocation55_spill] sm:$0xff] %v5061_v53  ;;  %6662 = vst [vmem:[#allocation56_spill] sm:$0xff] %v5066_v54  ;;  %v5086_v58 = vld [vmem:[%s6583_s4 + $0xc8] sm:$0xff]  ;;  %v5091_v59 = vld [vmem:[%s6583_s4 + $0xd0] sm:$0xff] }
  0x1e   :  { %6663 = vst [vmem:[#allocation57_spill] sm:$0xff] %v5071_v55  ;;  %6664 = vst [vmem:[#allocation58_spill] sm:$0xff] %v5076_v56  ;;  %v5096_v60 = vld [vmem:[%s6583_s4 + $0xd8] sm:$0xff]  ;;  %v5101_v61 = vld [vmem:[%s6583_s4 + $0xe0] sm:$0xff] }
  0x1f   :  { %6665 = vst [vmem:[#allocation59_spill] sm:$0xff] %v5081_v57  ;;  %6666 = vst [vmem:[#allocation60_spill] sm:$0xff] %v5086_v58  ;;  %v5106_v62 = vld [vmem:[%s6583_s4 + $0xe8] sm:$0xff]  ;;  %v5111_v63 = vld [vmem:[%s6583_s4 + $0xf0] sm:$0xff] }
  0x20   :  { %6667 = vst [vmem:[#allocation61_spill] sm:$0xff] %v5091_v59  ;;  %6668 = vst [vmem:[#allocation62_spill] sm:$0xff] %v5096_v60  ;;  %v5116_v48 = vld [vmem:[%s6583_s4 + $0xf8] sm:$0xff]  ;;  %v5121_v47 = vld [vmem:[%s6583_s4 + $0x100] sm:$0xff] }
  0x21   :  { %6669 = vst [vmem:[#allocation63_spill] sm:$0xff] %v5101_v61  ;;  %6670 = vst [vmem:[#allocation64_spill] sm:$0xff] %v5106_v62  ;;  %v5126_v46 = vld [vmem:[%s6583_s4 + $0x108] sm:$0xff]  ;;  %v5131_v45 = vld [vmem:[%s6583_s4 + $0x110] sm:$0xff] }
  0x22   :  { %6671 = vst [vmem:[#allocation65_spill] sm:$0xff] %v5111_v63  ;;  %6672 = vst [vmem:[#allocation66_spill] sm:$0xff] %v5116_v48  ;;  %v5136_v63 = vld [vmem:[%s6583_s4 + $0x118] sm:$0xff]  ;;  %v5141_v48 = vld [vmem:[%s6583_s4 + $0x120] sm:$0xff] }
  0x23   :  { %6673 = vst [vmem:[#allocation67_spill] sm:$0xff] %v5121_v47  ;;  %6674 = vst [vmem:[#allocation68_spill] sm:$0xff] %v5126_v46  ;;  %v5146_v62 = vld [vmem:[%s6583_s4 + $0x128] sm:$0xff]  ;;  %v5151_v61 = vld [vmem:[%s6583_s4 + $0x130] sm:$0xff] }
  0x24   :  { %6675 = vst [vmem:[#allocation69_spill] sm:$0xff] %v5131_v45  ;;  %6676 = vst [vmem:[#allocation70_spill] sm:$0xff] %v5141_v48  ;;  %v5156_v44 = vld [vmem:[%s6583_s4 + $0x138] sm:$0xff]  ;;  %v5161_v43 = vld [vmem:[%s6583_s4 + $0x140] sm:$0xff] }
  0x25   :  { %6677 = vst [vmem:[#allocation71_spill] sm:$0xff] %v5156_v44  ;;  %6678 = vst [vmem:[#allocation72_spill] sm:$0xff] %v5161_v43  ;;  %v5166_v31 = vld [vmem:[%s6583_s4 + $0x148] sm:$0xff]  ;;  %v5171_v30 = vld [vmem:[%s6583_s4 + $0x150] sm:$0xff] }
  0x26   :  { %6679 = vst [vmem:[#allocation73_spill] sm:$0xff] %v5166_v31  ;;  %6680 = vst [vmem:[#allocation74_spill] sm:$0xff] %v5171_v30  ;;  %v5176_v60 = vld [vmem:[%s6583_s4 + $0x158] sm:$0xff]  ;;  %v5181_v59 = vld [vmem:[%s6583_s4 + $0x160] sm:$0xff] }
  0x27   :  { %6681 = vst [vmem:[#allocation75_spill] sm:$0xff] %v5176_v60  ;;  %6682 = vst [vmem:[#allocation76_spill] sm:$0xff] %v5181_v59  ;;  %v5186_v43 = vld [vmem:[%s6583_s4 + $0x168] sm:$0xff]  ;;  %v5191_v31 = vld [vmem:[%s6583_s4 + $0x170] sm:$0xff] }
  0x28   :  { %6683 = vst [vmem:[#allocation77_spill] sm:$0xff] %v5186_v43  ;;  %6684 = vst [vmem:[#allocation78_spill] sm:$0xff] %v5191_v31  ;;  %v5196_v30 = vld [vmem:[%s6583_s4 + $0x178] sm:$0xff]  ;;  %v5201_v60 = vld [vmem:[%s6583_s4 + $0x180] sm:$0xff] }
  0x29   :  { %6685 = vst [vmem:[#allocation79_spill] sm:$0xff] %v5196_v30  ;;  %v5206_v59 = vld [vmem:[%s6583_s4 + $0x188] sm:$0xff]  ;;  %v5211_v43 = vld [vmem:[%s6583_s4 + $0x190] sm:$0xff]  ;;  %v5216_v31 = vld [vmem:[%s6583_s4 + $0x198] sm:$0xff] }
  0x2a   :  { %6686 = vst [vmem:[#allocation80_spill] sm:$0xff] %v5206_v59  ;;  %6687 = vst [vmem:[#allocation81_spill] sm:$0xff] %v5211_v43  ;;  %v5221_v30 = vld [vmem:[%s6583_s4 + $0x1a0] sm:$0xff]  ;;  %v5226_v42 = vld [vmem:[%s6583_s4 + $0x1a8] sm:$0xff] }
  0x2b   :  { %6688 = vst [vmem:[#allocation82_spill] sm:$0xff] %v5216_v31  ;;  %6689 = vst [vmem:[#allocation83_spill] sm:$0xff] %v5221_v30  ;;  %v5231_v41 = vld [vmem:[%s6583_s4 + $0x1b0] sm:$0xff]  ;;  %v5236_v27 = vld [vmem:[%s6583_s4 + $0x1b8] sm:$0xff] }
  0x2c   :  { %6690 = vst [vmem:[#allocation84_spill] sm:$0xff] %v5226_v42  ;;  %6691 = vst [vmem:[#allocation85_spill] sm:$0xff] %v5231_v41  ;;  %v5241_v29 = vld [vmem:[%s6583_s4 + $0x1c0] sm:$0xff]  ;;  %v5246_v26 = vld [vmem:[%s6583_s4 + $0x1c8] sm:$0xff] }
  0x2d   :  { %6692 = vst [vmem:[#allocation86_spill] sm:$0xff] %v5236_v27  ;;  %6693 = vst [vmem:[#allocation87_spill] sm:$0xff] %v5241_v29  ;;  %v5251_v28 = vld [vmem:[%s6583_s4 + $0x1d0] sm:$0xff]  ;;  %v5256_v23 = vld [vmem:[%s6583_s4 + $0x1d8] sm:$0xff] }
  0x2e   :  { %6694 = vst [vmem:[#allocation88_spill] sm:$0xff] %v5246_v26  ;;  %6695 = vst [vmem:[#allocation89_spill] sm:$0xff] %v5251_v28  ;;  %v5261_v25 = vld [vmem:[%s6583_s4 + $0x1e0] sm:$0xff]  ;;  %v5266_v22 = vld [vmem:[%s6583_s4 + $0x1e8] sm:$0xff] }
  0x2f   :  { %6696 = vst [vmem:[#allocation90_spill] sm:$0xff] %v5256_v23  ;;  %6697 = vst [vmem:[#allocation91_spill] sm:$0xff] %v5261_v25  ;;  %v5271_v24 = vld [vmem:[%s6583_s4 + $0x1f0] sm:$0xff]  ;;  %v5276_v28 = vld [vmem:[%s6583_s4 + $0x1f8] sm:$0xff] }
  0x30   :  { %6698 = vst [vmem:[#allocation92_spill] sm:$0xff] %v5266_v22  ;;  %6699 = vst [vmem:[#allocation93_spill] sm:$0xff] %v5271_v24  ;;  %v156_v23 = vld [vmem:[%s6584_s0] sm:$0xff]   ;;  %v157_v25 = vld [vmem:[%s6584_s0 + $0x8] sm:$0xff]  }
  0x31   :  { %6700 = vst [vmem:[#allocation94_spill] sm:$0xff] %v5276_v28  ;;  %v158_v22 = vld [vmem:[%s6584_s0 + $0x10] sm:$0xff]   ;;  %v159_v24 = vld [vmem:[%s6584_s0 + $0x18] sm:$0xff]   ;;  %v160_v28 = vld [vmem:[%s6584_s0 + $0x20] sm:$0xff]  }
  0x32   :  { %v161_v19 = vld [vmem:[%s6584_s0 + $0x28] sm:$0xff]   ;;  %v162_v21 = vld [vmem:[%s6584_s0 + $0x30] sm:$0xff]   ;;  %v163_v18 = vld [vmem:[%s6584_s0 + $0x38] sm:$0xff]  }
  0x33 LB: > { %v6701_v32 = vld [vmem:[#allocation34_spill] sm:$0xff]  ;;  %6702 = vst [vmem:[#allocation95_spill] sm:$0xff] %v4657_v18  ;;  %6703 = vst [vmem:[#allocation96_spill] sm:$0xff] %v4661_v21  ;;  %vm182_vm0 = vcmask 261120   ;;  %s5412_s0 = sshll.u32 %s4689_s5, 5  ;;  %s4692_s26 = smov 32   ;;  %v4657_v18 = vphi %v163_v18, %v6830_v18   ;;  %s4689_s5 = sphi %s5318_s5, %s169_s5   ;;  %v4685_v23 = vphi %v156_v23, %v6837_v23   ;;  %v4681_v25 = vphi %v157_v25, %v6836_v25   ;;  %v4677_v22 = vphi %v158_v22, %v6835_v22   ;;  %v4673_v24 = vphi %v159_v24, %v6834_v24   ;;  %v4669_v28 = vphi %v160_v28, %v6833_v28   ;;  %v4665_v19 = vphi %v161_v19, %v6832_v19   ;;  %v4661_v21 = vphi %v162_v21, %v6831_v21  }
  0x34   : > { %6704 = vst [vmem:[#allocation97_spill] sm:$0xff] %v4665_v19  ;;  %6705 = vst [vmem:[#allocation98_spill] sm:$0xff] %v4669_v28  ;;  %v183_v20 = vsel %vm182_vm0, %v4685_v23, 0.0  ;;  %v189_v15 = vsel %vm182_vm0, %v4677_v22, 0.0  ;;  %v186_v17 = vsel %vm182_vm0, %v4681_v25, 0.0  ;;  %v192_v14 = vsel %vm182_vm0, %v4673_v24, 0.0  ;;  %s317_s25 = scalar_lea.vmem %s6570_s7, %s5412_s0  ;;  %s180_s4 = scalar_lea.vmem %s6569_s6, %s4689_s5 }
  0x35   : > { %6706 = vst [vmem:[#allocation99_spill] sm:$0xff] %v4673_v24  ;;  %6707 = vst [vmem:[#allocation100_spill] sm:$0xff] %v4677_v22  ;;  %184 = vadd.xlane.f32.xlu0 %v183_v20  ;;  %190 = vadd.xlane.f32.xlu1 %v189_v15  ;;  %v195_v16 = vsel %vm182_vm0, %v4669_v28, 0.0  ;;  %v198_v11 = vsel %vm182_vm0, %v4665_v19, 0.0  ;;  %v201_v20 = vsel %vm182_vm0, %v4661_v21, 0.0  ;;  %v204_v15 = vsel %vm182_vm0, %v4657_v18, 0.0  ;;  %s322_s20 = scalar_lea.vmem %s6571_s8, %s4689_s5  ;;  %s2395_s28 = scalar_lea.vmem %s6573_s10, %s4689_s5 }
  0x36   : > { %6708 = vst [vmem:[#allocation101_spill] sm:$0xff] %v4681_v25  ;;  %6709 = vst [vmem:[#allocation102_spill] sm:$0xff] %v4685_v23  ;;  %s6718_s29 = sld [smem:[#allocation113_spill]]  ;;  %s4693_s21 = smov 96   ;;  %v6721_v49 = vld [vmem:[#allocation51_spill] sm:$0xff]  ;;  %v6722_v50 = vld [vmem:[#allocation52_spill] sm:$0xff] }
  0x37   : > { %vm5651_vm1 = vmpackc.low %vm182_vm0, %vm182_vm0  ;;  %v6723_v59 = vld [vmem:[#allocation80_spill] sm:$0xff]  ;;  %v6724_v33 = vld [vmem:[#allocation35_spill] sm:$0xff]  ;;  %s4694_s22 = smov 64   ;;  %vm1649_vm2 = vcmask 64512   ;;  %s2547_s3 = scalar_lea.vmem %s6576_s13, %s5412_s0 }
  0x38   : > { %v6725_v34 = vld [vmem:[#allocation36_spill] sm:$0xff]  ;;  %v6726_v47 = vld [vmem:[#allocation67_spill] sm:$0xff]  ;;  %v6728_v51 = vld [vmem:[#allocation53_spill] sm:$0xff]  ;;  %s3237_s1 = sshll.u32 %s4689_s5, 7  ;;  %s2413_s24 = scalar_lea.vmem %s6575_s12, %s4689_s5 }
  0x39   : > { %187 = vadd.xlane.f32.xlu0 %v186_v17  ;;  %193 = vadd.xlane.f32.xlu1 %v192_v14  ;;  %v6727_v46 = vld [vmem:[#allocation68_spill] sm:$0xff]  ;;  %v6729_v52 = vld [vmem:[#allocation54_spill] sm:$0xff]  ;;  %v6730_v43 = vld [vmem:[#allocation81_spill] sm:$0xff]  ;;  %s6463_s2 = scalar_lea.vmem %s6578_s15, %s3237_s1  ;;  %s2552_s27 = scalar_lea.vmem %s6577_s14, %s4689_s5 }
  0x3a   : > { %v6731_v31 = vld [vmem:[#allocation82_spill] sm:$0xff]  ;;  %v6732_v35 = vld [vmem:[#allocation37_spill] sm:$0xff]  ;;  %v6735_v53 = vld [vmem:[#allocation55_spill] sm:$0xff] }
  0x3b   : > { %v6733_v36 = vld [vmem:[#allocation38_spill] sm:$0xff]  ;;  %v6734_v45 = vld [vmem:[#allocation69_spill] sm:$0xff]  ;;  %v6736_v54 = vld [vmem:[#allocation56_spill] sm:$0xff] }
  0x3c   : > { %s178_s30 = scalar_lea.vmem %s6718_s29, %s4689_s5  ;;  %v6737_v30 = vld [vmem:[#allocation83_spill] sm:$0xff]  ;;  %v6738_v42 = vld [vmem:[#allocation84_spill] sm:$0xff]  ;;  %v6741_v48 = vld [vmem:[#allocation70_spill] sm:$0xff] }
  0x3d   : > { %196 = vadd.xlane.f32.xlu0 %v195_v16  ;;  %199 = vadd.xlane.f32.xlu1 %v198_v11  ;;  %v6739_v37 = vld [vmem:[#allocation39_spill] sm:$0xff]  ;;  %v6740_v38 = vld [vmem:[#allocation40_spill] sm:$0xff]  ;;  %v6742_v55 = vld [vmem:[#allocation57_spill] sm:$0xff] }
  0x3e   : > { %v6743_v56 = vld [vmem:[#allocation58_spill] sm:$0xff]  ;;  %v6744_v41 = vld [vmem:[#allocation85_spill] sm:$0xff]  ;;  %v6748_v44 = vld [vmem:[#allocation71_spill] sm:$0xff] }
  0x3f   : > { %v6745_v27 = vld [vmem:[#allocation86_spill] sm:$0xff]  ;;  %v6746_v39 = vld [vmem:[#allocation41_spill] sm:$0xff]  ;;  %v6749_v57 = vld [vmem:[#allocation59_spill] sm:$0xff] }
  0x40   : > { %v6747_v40 = vld [vmem:[#allocation42_spill] sm:$0xff]  ;;  %v6750_v58 = vld [vmem:[#allocation60_spill] sm:$0xff]  ;;  %v6751_v29 = vld [vmem:[#allocation87_spill] sm:$0xff] }
  0x41   : > { %202 = vadd.xlane.f32.xlu0 %v201_v20  ;;  %205 = vadd.xlane.f32.xlu1 %v204_v15 }
  0xc2   : > { %v185_v13 = vpop.xlane.xlu0 %184  ;;  %v191_v10 = vpop.xlane.xlu1 %190 }
  0xc3   : > { %v208_v17 = vmul.f32 0.03125, %v185_v13  ;;  %v210_v14 = vmul.f32 0.03125, %v191_v10 }
  0xc5   : > { %v5364_v12 = vsub.f32 %v4685_v23, %v208_v17  ;;  %v5367_v7 = vsub.f32 %v4677_v22, %v210_v14 }
  0xc6   : > { %v188_v16 = vpop.xlane.xlu0 %187  ;;  %v194_v11 = vpop.xlane.xlu1 %193 }
  0xc7   : > { %v209_v9 = vmul.f32 0.03125, %v188_v16  ;;  %v211_v6 = vmul.f32 0.03125, %v194_v11  ;;  %v224_v8 = vmul.f32 %v5364_v12, %v5364_v12  ;;  %v226_v20 = vmul.f32 %v5367_v7, %v5367_v7 }
  0xc9   : > { %v5374_v15 = vsub.f32 %v4681_v25, %v209_v9  ;;  %v5377_v10 = vsub.f32 %v4673_v24, %v211_v6  ;;  %v232_v13 = vsel %vm182_vm0, %v224_v8, 0.0  ;;  %v238_v16 = vsel %vm182_vm0, %v226_v20, 0.0 }
  0xca   : > { %v197_v17 = vpop.xlane.xlu0 %196  ;;  %233 = vadd.xlane.f32.xlu0 %v232_v13  ;;  %v200_v14 = vpop.xlane.xlu1 %199 }
  0xcb   : > { %v212_v11 = vmul.f32 0.03125, %v197_v17  ;;  %v213_v22 = vmul.f32 0.03125, %v200_v14  ;;  %v225_v23 = vmul.f32 %v5374_v15, %v5374_v15  ;;  %v227_v3 = vmul.f32 %v5377_v10, %v5377_v10 }
  0xcd   : > { %v5386_v9 = vsub.f32 %v4669_v28, %v212_v11  ;;  %v5389_v6 = vsub.f32 %v4665_v19, %v213_v22  ;;  %v235_v8 = vsel %vm182_vm0, %v225_v23, 0.0  ;;  %v241_v20 = vsel %vm182_vm0, %v227_v3, 0.0 }
  0xce   : > { %239 = vadd.xlane.f32.xlu0 %v238_v16  ;;  %v203_v13 = vpop.xlane.xlu0 %202  ;;  %236 = vadd.xlane.f32.xlu1 %v235_v8  ;;  %v206_v17 = vpop.xlane.xlu1 %205 }
  0xcf   : > { %v214_v14 = vmul.f32 0.03125, %v203_v13  ;;  %v228_v24 = vmul.f32 %v5386_v9, %v5386_v9  ;;  %v215_v25 = vmul.f32 0.03125, %v206_v17  ;;  %v229_v11 = vmul.f32 %v5389_v6, %v5389_v6 }
  0xd1   : > { %v5398_v22 = vsub.f32 %v4661_v21, %v214_v14  ;;  %v244_v23 = vsel %vm182_vm0, %v228_v24, 0.0  ;;  %v5402_v16 = vsub.f32 %v4657_v18, %v215_v25  ;;  %v247_v8 = vsel %vm182_vm0, %v229_v11, 0.0  ;;  %v318_v24 = vld [vmem:[%s317_s25] sm:$0xff]  ;;  %v319_v25 = vld [vmem:[%s317_s25 + $0x8] sm:$0xff]  ;;  %v320_v11 = vld [vmem:[%s317_s25 + $0x10] sm:$0xff] }
  0xd2   : > { %245 = vadd.xlane.f32.xlu0 %v244_v23  ;;  %242 = vadd.xlane.f32.xlu1 %v241_v20  ;;  %v3792_v20 = vpack.c.bf16 %v319_v25, %v318_v24  ;;  %v321_v23 = vld [vmem:[%s317_s25 + $0x18] sm:$0xff]  ;;  %v460_v18 = vcombine.high %v6701_v32, %v6701_v32  ;;  %s2253_s25 = scalar_lea.vmem %s6572_s9, %s5412_s0 }
  0xd3   : > { %v230_v3 = vmul.f32 %v5398_v22, %v5398_v22  ;;  %v231_v13 = vmul.f32 %v5402_v16, %v5402_v16 }
  0xd4   : > { %3793 = vmatprep.subr.bf16.mxu0 %v3792_v20 }
  0xd5   : > { %v250_v17 = vsel %vm182_vm0, %v230_v3, 0.0  ;;  %v253_v14 = vsel %vm182_vm0, %v231_v13, 0.0  ;;  %3795 = vmatpush3.bf16.msra.mxu0 %v3792_v20  ;;  %v3796_v3 = vpack.c.bf16 %v321_v23, %v320_v11  ;;  %v4691_v13 = vmov 1966171168  }
  0xd6   : > { %251 = vadd.xlane.f32.xlu0 %v250_v17  ;;  %248 = vadd.xlane.f32.xlu1 %v247_v8  ;;  %v464_v8 = vlaneseq  ;;  %v462_v17 = vunpack.c.l.s4 %v4691_v13 }
  0xd7   : > { %3797 = vmatprep.subr.bf16.mxu0 %v3796_v3 }
  0xd8   : > { %v463_v21 = vunpack.c.0.s8 %v462_v17 }
  0xd9   : > { %3799 = vmatpush3.bf16.msra.mxu0 %v3796_v3 }
  0xda   : > { %254 = vadd.xlane.f32.xlu1 %v253_v14  ;;  %v465_v14 = vshrl.u32 %v464_v8, 7 }
  0xdc   : > { %v466_v28 = vsub.s32 %v463_v21, %v465_v14  ;;  %v511_v5 = vsub.s32 0, %v465_v14 }
  0xde   : > { %v467_v19 = vrot.slane %v6701_v32, %v466_v28  ;;  %v474_v24 = vrot.slane %v460_v18, %v466_v28 }
  0xe0   : > { %v483_v25 = vrot.slane %v467_v19, %v466_v28  ;;  %v490_v20 = vrot.slane %v474_v24, %v466_v28  ;;  %v475_v2 = vcombine.high %v467_v19, %v467_v19  ;;  %v476_v4 = vcombine.high %v474_v24, %v474_v24 }
  0xe2   : > { %v5421_v11 = vrot.slane %v483_v25, %v511_v5  ;;  %v506_v23 = vcombine.high %v490_v20, %v490_v20  ;;  %v505_v3 = vcombine.high %v483_v25, %v483_v25  ;;  %v497_v1 = vrot.slane %v475_v2, %v466_v28 }
  0xe3   : > { %v504_v13 = vrot.slane %v476_v4, %v466_v28  ;;  %v5432_v19 = vrot.slane %v490_v20, %v511_v5 }
  0xe4   : > { %6710 = vst [vmem:[#allocation103_spill] sm:$0xff] %v5421_v11  ;;  %v5424_v8 = vrot.slane %v506_v23, %v511_v5  ;;  %v5426_v21 = vrot.slane %v505_v3, %v511_v5  ;;  %v507_v17 = vcombine.high %v497_v1, %v497_v1  ;;  %v5438_v4 = vrot.slane %v497_v1, %v511_v5 }
  0xe5   : > { %v508_v18 = vcombine.high %v504_v13, %v504_v13  ;;  %6714 = vst [vmem:[#allocation107_spill] sm:$0xff] %v5432_v19  ;;  %v5442_v28 = vrot.slane %v504_v13, %v511_v5 }
  0xe6   : > { %6711 = vst [vmem:[#allocation104_spill] sm:$0xff] %v5424_v8  ;;  %6712 = vst [vmem:[#allocation105_spill] sm:$0xff] %v5426_v21  ;;  %v5429_v14 = vrot.slane %v507_v17, %v511_v5 }
  0xe7   : > { %v5435_v2 = vrot.slane %v508_v18, %v511_v5  ;;  %6716 = vst [vmem:[#allocation109_spill] sm:$0xff] %v5438_v4  ;;  %6717 = vst [vmem:[#allocation110_spill] sm:$0xff] %v5442_v28 }
  0xe8   : > { %6713 = vst [vmem:[#allocation106_spill] sm:$0xff] %v5429_v14 }
  0xe9   : > { %6715 = vst [vmem:[#allocation108_spill] sm:$0xff] %v5435_v2 }
  0xeb   : > { %541 = vrot.lane.b32.xlu1 %v5421_v11, %s4692_s26 }
  0xec   : > { %545 = vrot.lane.b32.xlu0 %v5426_v21, %s4692_s26 }
  0xef   : > { %553 = vrot.lane.b32.xlu1 %v5424_v8, %s4692_s26 }
  0xf0   : > { %547 = vrot.lane.b32.xlu0 %v5429_v14, %s4692_s26 }
  0xf3   : > { %549 = vrot.lane.b32.xlu1 %v5432_v19, %s4692_s26 }
  0xf4   : > { %555 = vrot.lane.b32.xlu0 %v5435_v2, %s4692_s26 }
  0xf7   : > { %543 = vrot.lane.b32.xlu1 %v5438_v4, %s4692_s26 }
  0xfb   : > { %551 = vrot.lane.b32.xlu1 %v5442_v28, %s4692_s26 }
 0x157   : > { %v234_v24 = vpop.xlane.xlu0 %233 }
 0x158   : > { %v256_v25 = vmul.f32 0.03125, %v234_v24 }
 0x15a   : > { %v264_v20 = vadd.f32 1e-05, %v256_v25 }
 0x15b   : > { %v240_v23 = vpop.xlane.xlu0 %239  ;;  %v237_v3 = vpop.xlane.xlu1 %236 }
 0x15c   : > { %4489 = vrsqrt.f32 %v264_v20  ;;  %v258_v17 = vmul.f32 0.03125, %v240_v23  ;;  %v257_v18 = vmul.f32 0.03125, %v237_v3  ;;  %v3117_v23 = vld [vmem:[%s178_s30] ss:$0 sm:$0xff]  ;;  %s2892_s30 = scalar_lea.vmem %s6579_s16, %s4689_s5 }
 0x15e   : > { %v266_v19 = vadd.f32 1e-05, %v258_v17  ;;  %v265_v1 = vadd.f32 1e-05, %v257_v18  ;;  %v3118_v18 = vld [vmem:[%s180_s4] ss:$0 sm:$0xff] }
 0x15f   : > { %v246_v14 = vpop.xlane.xlu0 %245  ;;  %v243_v2 = vpop.xlane.xlu1 %242 }
 0x160   : > { %4491 = vrsqrt.f32 %v266_v19  ;;  %v260_v4 = vmul.f32 0.03125, %v246_v14  ;;  %v259_v5 = vmul.f32 0.03125, %v243_v2 }
 0x161   : > { %4493 = vrsqrt.f32 %v265_v1 }
 0x162   : > { %v268_v13 = vadd.f32 1e-05, %v260_v4  ;;  %v267_v28 = vadd.f32 1e-05, %v259_v5 }
 0x163   : > { %v252_v11 = vpop.xlane.xlu0 %251  ;;  %v249_v24 = vpop.xlane.xlu1 %248 }
 0x164   : > { %4495 = vrsqrt.f32 %v268_v13  ;;  %v262_v25 = vmul.f32 0.03125, %v252_v11  ;;  %v261_v20 = vmul.f32 0.03125, %v249_v24 }
 0x165   : > { %4497 = vrsqrt.f32 %v267_v28 }
 0x166   : > { %v4490_v19 = vpop.eup %4489  ;;  %v270_v14 = vadd.f32 1e-05, %v262_v25  ;;  %v269_v2 = vadd.f32 1e-05, %v261_v20 }
 0x167   : > { %v255_v4 = vpop.xlane.xlu1 %254  ;;  %v280_v3 = vmul.f32 %v4490_v19, %v5364_v12 }
 0x168   : > { %4499 = vrsqrt.f32 %v270_v14  ;;  %v263_v17 = vmul.f32 0.03125, %v255_v4 }
 0x169   : > { %4501 = vrsqrt.f32 %v269_v2  ;;  %v294_v1 = vmul.f32 %v3117_v23, %v280_v3 }
 0x16a   : > { %v4492_v5 = vpop.eup %4491  ;;  %v271_v11 = vadd.f32 1e-05, %v263_v17 }
 0x16b   : > { %v4494_v13 = vpop.eup %4493  ;;  %v308_v28 = vadd.f32 %v3118_v18, %v294_v1  ;;  %v282_v24 = vmul.f32 %v4492_v5, %v5367_v7 }
 0x16c   : > { %4503 = vrsqrt.f32 %v271_v11  ;;  %v281_v21 = vmul.f32 %v4494_v13, %v5374_v15 }
 0x16d   : > { %3652 = vmatprep.mubr.msk.f32.mxu0 %vm182_vm0, %v308_v28  ;;  %v296_v25 = vmul.f32 %v3117_v23, %v282_v24 }
 0x16e   : > { %v4496_v20 = vpop.eup %4495  ;;  %v295_v8 = vmul.f32 %v3117_v23, %v281_v21 }
 0x16f   : > { %v4498_v12 = vpop.eup %4497  ;;  %v310_v19 = vadd.f32 %v3118_v18, %v296_v25  ;;  %v284_v14 = vmul.f32 %v4496_v20, %v5386_v9 }
 0x170   : > { %v309_v2 = vadd.f32 %v3118_v18, %v295_v8  ;;  %v283_v4 = vmul.f32 %v4498_v12, %v5377_v10  ;;  %v3120_v12 = vld [vmem:[%s322_s20] ss:$0 sm:$0xff] }
 0x171   : > { %v298_v3 = vmul.f32 %v3117_v23, %v284_v14  ;;  %v5479_v14 = vpop.permute.xlu0 %545 }
 0x172   : > { %v4500_v17 = vpop.eup %4499  ;;  %3653 = vmatmul.mubr.msk.f32.vlgmr.msra.gmra.mrb[0].mxu0 %vm182_vm0, %v309_v2  ;;  %v297_v7 = vmul.f32 %v3117_v23, %v283_v4 }
 0x173   : > { %v4502_v1 = vpop.eup %4501  ;;  %3655 = vmatprep.mubr.msk.f32.mxu0 %vm182_vm0, %v310_v19  ;;  %v312_v15 = vadd.f32 %v3118_v18, %v298_v3  ;;  %v286_v5 = vmul.f32 %v4500_v17, %v5398_v22 }
 0x174   : > { %v311_v11 = vadd.f32 %v3118_v18, %v297_v7  ;;  %v285_v21 = vmul.f32 %v4502_v1, %v5389_v6  ;;  %v5469_v6 = vpop.permute.xlu1 %541 }
 0x175   : > { %v300_v13 = vmul.f32 %v3117_v23, %v286_v5 }
 0x176   : > { %v4504_v9 = vpop.eup %4503  ;;  %3656 = vmatmul.mubr.msk.f32.gmra.mrb[2].mxu0 %vm182_vm0, %v311_v11  ;;  %v299_v10 = vmul.f32 %v3117_v23, %v285_v21 }
 0x177   : > { %3658 = vmatprep.mubr.msk.f32.mxu0 %vm182_vm0, %v312_v15  ;;  %v314_v8 = vadd.f32 %v3118_v18, %v300_v13  ;;  %v287_v28 = vmul.f32 %v4504_v9, %v5402_v16 }
 0x178   : > { %v313_v24 = vadd.f32 %v3118_v18, %v299_v10  ;;  %v5475_v20 = vpop.permute.xlu1 %553 }
 0x179   : > { %v301_v25 = vmul.f32 %v3117_v23, %v287_v28 }
 0x17a   : > { %3659 = vmatmul.mubr.msk.f32.gmra.mrb[4].mxu0 %vm182_vm0, %v313_v24 }
 0x17b   : > { %3661 = vmatprep.mubr.msk.f32.mxu0 %vm182_vm0, %v314_v8  ;;  %v315_v22 = vadd.f32 %v3118_v18, %v301_v25 }
 0x17c   : > { %v5487_v3 = vpop.permute.xlu1 %549 }
 0x17e   : > { %3662 = vmatmul.mubr.msk.f32.gmra.mrb[6].mxu0 %vm182_vm0, %v315_v22 }
 0x245   : > { %v3654_v19 = vpop.f32.mrb[0].mxu0 }
 0x246   : > { %v5477_v16 = vadd.f32 %v3654_v19, %v3120_v12  ;;  %v420_v23 = vpop.f32.mrb[1].mxu0 }
 0x247   : > { %v5481_v2 = vadd.f32 %v3120_v12, %v420_v23 }
 0x248   : > { %v582_v18 = vmul.f32 %v5479_v14, %v5477_v16  ;;  %v566_v4 = vmul.f32 %v5469_v6, %v5477_v16  ;;  %v614_v11 = vmul.f32 %v5475_v20, %v5477_v16  ;;  %v598_v13 = vmul.f32 %v5487_v3, %v5477_v16 }
 0x249   : > { %v3657_v17 = vpop.f32.mrb[2].mxu0  ;;  %3285 = vmatprep.mubr.msk.f32.mxu1 %vm182_vm0, %v5481_v2  ;;  %3333 = vmatprep.mubr.msk.f32.mxu0 %vm182_vm0, %v5481_v2  ;;  %v581_v7 = vmul.f32 %v5479_v14, %v5481_v2  ;;  %v565_v1 = vmul.f32 %v5469_v6, %v5481_v2  ;;  %v613_v5 = vmul.f32 %v5475_v20, %v5481_v2 }
 0x24a   : > { %v430_v15 = vpop.f32.mrb[3].mxu0  ;;  %v597_v21 = vmul.f32 %v5487_v3, %v5481_v2  ;;  %v5505_v9 = vadd.f32 %v3657_v17, %v3120_v12 }
 0x24b   : > { %v5507_v10 = vadd.f32 %v3120_v12, %v430_v15  ;;  %v4169_v8 = vpack.i.bf16 %v582_v18, %v581_v7  ;;  %v4174_v28 = vpack.i.bf16 %v566_v4, %v565_v1  ;;  %v4179_v22 = vpack.i.bf16 %v614_v11, %v613_v5 }
 0x24c   : > { %v4184_v19 = vpack.i.bf16 %v598_v13, %v597_v21  ;;  %v584_v17 = vmul.f32 %v5479_v14, %v5505_v9  ;;  %v568_v18 = vmul.f32 %v5469_v6, %v5505_v9  ;;  %v616_v5 = vmul.f32 %v5475_v20, %v5505_v9 }
 0x24d   : > { %4170 = vrot.lane.b32.xlu0 %v4169_v8, %s4693_s21  ;;  %v3660_v24 = vpop.f32.mrb[4].mxu0  ;;  %4175 = vrot.lane.b32.xlu1 %v4174_v28, %s4693_s21  ;;  %v583_v23 = vmul.f32 %v5479_v14, %v5507_v10  ;;  %v567_v15 = vmul.f32 %v5469_v6, %v5507_v10  ;;  %v615_v1 = vmul.f32 %v5475_v20, %v5507_v10 }
 0x24e   : > { %v440_v25 = vpop.f32.mrb[5].mxu0  ;;  %v599_v11 = vmul.f32 %v5487_v3, %v5507_v10  ;;  %v600_v21 = vmul.f32 %v5487_v3, %v5505_v9  ;;  %v5529_v13 = vadd.f32 %v3660_v24, %v3120_v12 }
 0x24f   : > { %v5531_v8 = vadd.f32 %v3120_v12, %v440_v25  ;;  %v4189_v28 = vpack.i.bf16 %v584_v17, %v583_v23 }
 0x250   : > { %v4204_v32 = vpack.i.bf16 %v600_v21, %v599_v11  ;;  %v586_v26 = vmul.f32 %v5479_v14, %v5529_v13  ;;  %v570_v25 = vmul.f32 %v5469_v6, %v5529_v13  ;;  %v618_v17 = vmul.f32 %v5475_v20, %v5529_v13 }
 0x251   : > { %v3663_v4 = vpop.f32.mrb[6].mxu0  ;;  %4180 = vrot.lane.b32.xlu0 %v4179_v22, %s4693_s21  ;;  %4185 = vrot.lane.b32.xlu1 %v4184_v19, %s4693_s21  ;;  %v4194_v22 = vpack.i.bf16 %v568_v18, %v567_v15  ;;  %v4199_v19 = vpack.i.bf16 %v616_v5, %v615_v1  ;;  %v585_v0 = vmul.f32 %v5479_v14, %v5531_v8 }
 0x252   : > { %v450_v7 = vpop.f32.mrb[7].mxu0  ;;  %v569_v24 = vmul.f32 %v5469_v6, %v5531_v8  ;;  %v617_v23 = vmul.f32 %v5475_v20, %v5531_v8  ;;  %v601_v15 = vmul.f32 %v5487_v3, %v5531_v8  ;;  %v602_v18 = vmul.f32 %v5487_v3, %v5529_v13 }
 0x253   : > { %v5553_v1 = vadd.f32 %v3663_v4, %v3120_v12  ;;  %v5555_v5 = vadd.f32 %v3120_v12, %v450_v7  ;;  %v4209_v11 = vpack.i.bf16 %v586_v26, %v585_v0  ;;  %v5567_v0 = vpop.permute.xlu0 %547  ;;  %v5571_v26 = vpop.permute.xlu1 %543 }
 0x254   : > { %v4214_v21 = vpack.i.bf16 %v570_v25, %v569_v24 }
 0x255   : > { %4190 = vrot.lane.b32.xlu0 %v4189_v28, %s4693_s21  ;;  %4195 = vrot.lane.b32.xlu1 %v4194_v22, %s4693_s21  ;;  %v4224_v28 = vpack.i.bf16 %v602_v18, %v601_v15  ;;  %v587_v22 = vmul.f32 %v5479_v14, %v5555_v5  ;;  %v571_v4 = vmul.f32 %v5469_v6, %v5555_v5 }
 0x256   : > { %v572_v12 = vmul.f32 %v5469_v6, %v5553_v1  ;;  %v619_v7 = vmul.f32 %v5475_v20, %v5555_v5  ;;  %v604_v6 = vmul.f32 %v5487_v3, %v5553_v1  ;;  %v590_v15 = vmul.f32 %v5567_v0, %v5477_v16 }
 0x257   : > { %v556_v18 = vpop.permute.xlu0 %555 }
 0x258   : > { %v4234_v25 = vpack.i.bf16 %v572_v12, %v571_v4  ;;  %v622_v4 = vmul.f32 %v556_v18, %v5477_v16 }
 0x259   : > { %4200 = vrot.lane.b32.xlu0 %v4199_v19, %s4693_s21  ;;  %4205 = vrot.lane.b32.xlu1 %v4204_v32, %s4693_s21  ;;  %v4219_v32 = vpack.i.bf16 %v618_v17, %v617_v23  ;;  %v588_v19 = vmul.f32 %v5479_v14, %v5553_v1  ;;  %v620_v14 = vmul.f32 %v5475_v20, %v5553_v1 }
 0x25a   : > { %v603_v23 = vmul.f32 %v5487_v3, %v5555_v5  ;;  %v589_v17 = vmul.f32 %v5567_v0, %v5481_v2  ;;  %v552_v3 = vpop.permute.xlu1 %551 }
 0x25b   : > { %v4229_v24 = vpack.i.bf16 %v588_v19, %v587_v22  ;;  %v4239_v20 = vpack.i.bf16 %v620_v14, %v619_v7  ;;  %v621_v22 = vmul.f32 %v556_v18, %v5481_v2  ;;  %v605_v12 = vmul.f32 %v552_v3, %v5481_v2 }
 0x25c   : > { %v606_v7 = vmul.f32 %v552_v3, %v5477_v16  ;;  %v591_v14 = vmul.f32 %v5567_v0, %v5507_v10 }
 0x25d   : > { %4210 = vrot.lane.b32.xlu0 %v4209_v11, %s4693_s21  ;;  %4215 = vrot.lane.b32.xlu1 %v4214_v21, %s4693_s21  ;;  %v4249_v11 = vpack.i.bf16 %v604_v6, %v603_v23  ;;  %v573_v21 = vmul.f32 %v5571_v26, %v5481_v2  ;;  %v575_v6 = vmul.f32 %v5571_v26, %v5507_v10 }
 0x25e   : > { %v4264_v23 = vpack.i.bf16 %v606_v7, %v605_v12  ;;  %v577_v7 = vmul.f32 %v5571_v26, %v5531_v8 }
 0x261   : > { %4220 = vrot.lane.b32.xlu0 %v4219_v32, %s4693_s21  ;;  %4225 = vrot.lane.b32.xlu1 %v4224_v28, %s4693_s21  ;;  %v574_v32 = vmul.f32 %v5571_v26, %v5477_v16  ;;  %v4244_v28 = vpack.i.bf16 %v590_v15, %v589_v17  ;;  %v576_v17 = vmul.f32 %v5571_v26, %v5505_v9 }
 0x263   : > { %v4254_v19 = vpack.i.bf16 %v574_v32, %v573_v21  ;;  %v624_v21 = vmul.f32 %v556_v18, %v5505_v9  ;;  %v607_v32 = vmul.f32 %v552_v3, %v5507_v10 }
 0x265   : > { %4230 = vrot.lane.b32.xlu0 %v4229_v24, %s4693_s21  ;;  %4235 = vrot.lane.b32.xlu1 %v4234_v25, %s4693_s21  ;;  %v592_v24 = vmul.f32 %v5567_v0, %v5505_v9  ;;  %v4259_v25 = vpack.i.bf16 %v622_v4, %v621_v22  ;;  %v593_v22 = vmul.f32 %v5567_v0, %v5531_v8 }
 0x267   : > { %v4269_v15 = vpack.i.bf16 %v592_v24, %v591_v14  ;;  %v578_v14 = vmul.f32 %v5571_v26, %v5529_v13 }
 0x269   : > { %4240 = vrot.lane.b32.xlu0 %v4239_v20, %s4693_s21  ;;  %4250 = vrot.lane.b32.xlu1 %v4249_v11, %s4693_s21  ;;  %v623_v20 = vmul.f32 %v556_v18, %v5507_v10  ;;  %v4274_v11 = vpack.i.bf16 %v576_v17, %v575_v6  ;;  %v626_v6 = vmul.f32 %v556_v18, %v5529_v13 }
 0x26a   : > { %v609_v17 = vmul.f32 %v552_v3, %v5531_v8 }
 0x26b   : > { %v4279_v4 = vpack.i.bf16 %v624_v21, %v623_v20  ;;  %v595_v20 = vmul.f32 %v5567_v0, %v5555_v5 }
 0x26d   : > { %4245 = vrot.lane.b32.xlu0 %v4244_v28, %s4693_s21  ;;  %4255 = vrot.lane.b32.xlu1 %v4254_v19, %s4693_s21  ;;  %v608_v28 = vmul.f32 %v552_v3, %v5505_v9  ;;  %v594_v19 = vmul.f32 %v5567_v0, %v5529_v13 }
 0x26f   : > { %v4284_v12 = vpack.i.bf16 %v608_v28, %v607_v32  ;;  %v4289_v24 = vpack.i.bf16 %v594_v19, %v593_v22  ;;  %v579_v28 = vmul.f32 %v5571_v26, %v5555_v5  ;;  %v580_v22 = vmul.f32 %v5571_v26, %v5553_v1 }
 0x271   : > { %4260 = vrot.lane.b32.xlu0 %v4259_v25, %s4693_s21  ;;  %4265 = vrot.lane.b32.xlu1 %v4264_v23, %s4693_s21  ;;  %v625_v25 = vmul.f32 %v556_v18, %v5531_v8  ;;  %v4294_v23 = vpack.i.bf16 %v578_v14, %v577_v7  ;;  %v628_v7 = vmul.f32 %v556_v18, %v5553_v1 }
 0x272   : > { %v612_v14 = vmul.f32 %v552_v3, %v5553_v1 }
 0x273   : > { %v4299_v21 = vpack.i.bf16 %v626_v6, %v625_v25 }
 0x275   : > { %4270 = vrot.lane.b32.xlu0 %v4269_v15, %s4693_s21  ;;  %4275 = vrot.lane.b32.xlu1 %v4274_v11, %s4693_s21  ;;  %v610_v15 = vmul.f32 %v552_v3, %v5529_v13  ;;  %v596_v11 = vmul.f32 %v5567_v0, %v5553_v1  ;;  %v611_v0 = vmul.f32 %v552_v3, %v5555_v5 }
 0x276   : > { %v3896_v3 = vpack.c.bf16 %v6722_v50, %v6721_v49  ;;  %v6783_v50 = vld [vmem:[#allocation43_spill] sm:$0xff] }
 0x277   : > { %v4304_v32 = vpack.i.bf16 %v610_v15, %v609_v17  ;;  %v4309_v19 = vpack.i.bf16 %v596_v11, %v595_v20  ;;  %v4324_v26 = vpack.i.bf16 %v612_v14, %v611_v0 }
 0x279   : > { %4280 = vrot.lane.b32.xlu0 %v4279_v4, %s4693_s21  ;;  %4285 = vrot.lane.b32.xlu1 %v4284_v12, %s4693_s21  ;;  %v627_v4 = vmul.f32 %v556_v18, %v5555_v5  ;;  %v4314_v12 = vpack.i.bf16 %v580_v22, %v579_v28 }
 0x27d   : > { %4290 = vrot.lane.b32.xlu0 %v4289_v24, %s4693_s21  ;;  %4295 = vrot.lane.b32.xlu1 %v4294_v23, %s4693_s21  ;;  %v4319_v24 = vpack.i.bf16 %v628_v7, %v627_v4 }
 0x281   : > { %4300 = vrot.lane.b32.xlu0 %v4299_v21, %s4693_s21  ;;  %4305 = vrot.lane.b32.xlu1 %v4304_v32, %s4693_s21 }
 0x285   : > { %4310 = vrot.lane.b32.xlu0 %v4309_v19, %s4693_s21  ;;  %4315 = vrot.lane.b32.xlu1 %v4314_v12, %s4693_s21 }
 0x289   : > { %4320 = vrot.lane.b32.xlu0 %v4319_v24, %s4693_s21  ;;  %4325 = vrot.lane.b32.xlu1 %v4324_v26, %s4693_s21  ;;  %s2411_s21 = scalar_lea.vmem %s6574_s11, %s4689_s5  ;;  %s169_s5 = sadd.s32 1, %s4689_s5  }
 0x28a   : > { %p166_p0 = scmp.ge.s32.totalorder %s169_s5, 4  }
 0x28b   :  { %vm4696_vm3 = vmmov (%p166_p0), 0   ;;  %s6838_s8 = sld [smem:[#allocation112_spill]] (%p166_p0)  ;;  %vm2909_vm4 = vcmask (%p166_p0), 523264  }
 0x2bf   : > { %v4171_v25 = vpop.permute.xlu0 %4170  ;;  %v4176_v23 = vpop.permute.xlu1 %4175 }
 0x2c0   : > { %v4173_v6 = vunpack.i.h.bf16 %v4171_v25  ;;  %v4172_v17 = vunpack.i.l.bf16 %v4171_v25  ;;  %v4178_v15 = vunpack.i.h.bf16 %v4176_v23  ;;  %v4177_v18 = vunpack.i.l.bf16 %v4176_v23 }
 0x2c2   : > { %v3803_v20 = vpack.c.bf16 %v4178_v15, %v4177_v18  ;;  %v3800_v11 = vpack.c.bf16 %v4173_v6, %v4172_v17 }
 0x2c3   : > { %v4181_v21 = vpop.permute.xlu0 %4180  ;;  %v4186_v32 = vpop.permute.xlu1 %4185 }
 0x2c4   : > { %v4183_v28 = vunpack.i.h.bf16 %v4181_v21  ;;  %v4182_v22 = vunpack.i.l.bf16 %v4181_v21  ;;  %v4188_v19 = vunpack.i.h.bf16 %v4186_v32  ;;  %v4187_v4 = vunpack.i.l.bf16 %v4186_v32  ;;  %3802 = vmatprep.subr.msk.bf16.mxu1 %vm5651_vm1, %v3800_v11 }
 0x2c5   : > { %3805 = vmatpush3.bf16.xpose.msk.msra.mxu1 %vm5651_vm1, %v3803_v20 }
 0x2c6   : > { %v3848_v12 = vpack.c.bf16 %v4183_v28, %v4182_v22  ;;  %v3851_v7 = vpack.c.bf16 %v4188_v19, %v4187_v4 }
 0x2c7   : > { %v4191_v0 = vpop.permute.xlu0 %4190  ;;  %v4196_v14 = vpop.permute.xlu1 %4195 }
 0x2c8   : > { %v4193_v24 = vunpack.i.h.bf16 %v4191_v0  ;;  %v4192_v26 = vunpack.i.l.bf16 %v4191_v0  ;;  %v4198_v25 = vunpack.i.h.bf16 %v4196_v14  ;;  %v4197_v23 = vunpack.i.l.bf16 %v4196_v14  ;;  %3850 = vmatprep.subr.msk.bf16.mxu0 %vm5651_vm1, %v3848_v12 }
 0x2c9   : > { %3853 = vmatpush3.bf16.xpose.msk.msra.mxu0 %vm5651_vm1, %v3851_v7 }
 0x2ca   : > { %v3806_v6 = vpack.c.bf16 %v4193_v24, %v4192_v26  ;;  %v3809_v17 = vpack.c.bf16 %v4198_v25, %v4197_v23 }
 0x2cb   : > { %v4201_v15 = vpop.permute.xlu0 %4200  ;;  %v4206_v18 = vpop.permute.xlu1 %4205 }
 0x2cc   : > { %v4203_v11 = vunpack.i.h.bf16 %v4201_v15  ;;  %v4202_v20 = vunpack.i.l.bf16 %v4201_v15  ;;  %v4208_v21 = vunpack.i.h.bf16 %v4206_v18  ;;  %v4207_v32 = vunpack.i.l.bf16 %v4206_v18  ;;  %3808 = vmatprep.subr.msk.bf16.mxu1 %vm5651_vm1, %v3806_v6 }
 0x2cd   : > { %3811 = vmatpush3.bf16.xpose.msk.msra.mxu1 %vm5651_vm1, %v3809_v17 }
 0x2ce   : > { %v3854_v28 = vpack.c.bf16 %v4203_v11, %v4202_v20  ;;  %v3857_v22 = vpack.c.bf16 %v4208_v21, %v4207_v32 }
 0x2cf   : > { %v4211_v19 = vpop.permute.xlu0 %4210  ;;  %v4216_v4 = vpop.permute.xlu1 %4215 }
 0x2d0   : > { %v4213_v12 = vunpack.i.h.bf16 %v4211_v19  ;;  %v4212_v7 = vunpack.i.l.bf16 %v4211_v19  ;;  %v4218_v0 = vunpack.i.h.bf16 %v4216_v4  ;;  %v4217_v14 = vunpack.i.l.bf16 %v4216_v4  ;;  %3856 = vmatprep.subr.msk.bf16.mxu0 %vm5651_vm1, %v3854_v28 }
 0x2d1   : > { %3859 = vmatpush3.bf16.xpose.msk.msra.mxu0 %vm5651_vm1, %v3857_v22 }
 0x2d2   : > { %v3812_v24 = vpack.c.bf16 %v4213_v12, %v4212_v7  ;;  %v3815_v26 = vpack.c.bf16 %v4218_v0, %v4217_v14 }
 0x2d3   : > { %v4221_v25 = vpop.permute.xlu0 %4220  ;;  %v4226_v23 = vpop.permute.xlu1 %4225 }
 0x2d4   : > { %v4223_v6 = vunpack.i.h.bf16 %v4221_v25  ;;  %v4222_v17 = vunpack.i.l.bf16 %v4221_v25  ;;  %v4228_v15 = vunpack.i.h.bf16 %v4226_v23  ;;  %v4227_v18 = vunpack.i.l.bf16 %v4226_v23  ;;  %3814 = vmatprep.subr.msk.bf16.mxu1 %vm5651_vm1, %v3812_v24 }
 0x2d5   : > { %3817 = vmatpush3.bf16.xpose.msk.msra.mxu1 %vm5651_vm1, %v3815_v26 }
 0x2d6   : > { %v3860_v11 = vpack.c.bf16 %v4223_v6, %v4222_v17  ;;  %v3863_v20 = vpack.c.bf16 %v4228_v15, %v4227_v18 }
 0x2d7   : > { %v4231_v21 = vpop.permute.xlu0 %4230  ;;  %v4236_v32 = vpop.permute.xlu1 %4235 }
 0x2d8   : > { %v4233_v28 = vunpack.i.h.bf16 %v4231_v21  ;;  %v4232_v22 = vunpack.i.l.bf16 %v4231_v21  ;;  %v4238_v19 = vunpack.i.h.bf16 %v4236_v32  ;;  %v4237_v4 = vunpack.i.l.bf16 %v4236_v32  ;;  %3862 = vmatprep.subr.msk.bf16.mxu0 %vm5651_vm1, %v3860_v11 }
 0x2d9   : > { %3865 = vmatpush3.bf16.xpose.msk.msra.mxu0 %vm5651_vm1, %v3863_v20 }
 0x2da   : > { %v3818_v12 = vpack.c.bf16 %v4233_v28, %v4232_v22  ;;  %v3821_v7 = vpack.c.bf16 %v4238_v19, %v4237_v4 }
 0x2db   : > { %v4241_v0 = vpop.permute.xlu0 %4240  ;;  %v4251_v14 = vpop.permute.xlu1 %4250 }
 0x2dc   : > { %v4243_v24 = vunpack.i.h.bf16 %v4241_v0  ;;  %v4242_v26 = vunpack.i.l.bf16 %v4241_v0  ;;  %v4253_v25 = vunpack.i.h.bf16 %v4251_v14  ;;  %v4252_v23 = vunpack.i.l.bf16 %v4251_v14  ;;  %3820 = vmatprep.subr.msk.bf16.mxu1 %vm5651_vm1, %v3818_v12 }
 0x2dd   : > { %3823 = vmatpush3.bf16.xpose.msk.msra.mxu1 %vm5651_vm1, %v3821_v7 }
 0x2de   : > { %v3866_v6 = vpack.c.bf16 %v4243_v24, %v4242_v26  ;;  %v3869_v17 = vpack.c.bf16 %v4253_v25, %v4252_v23 }
 0x2df   : > { %v4246_v15 = vpop.permute.xlu0 %4245  ;;  %v4256_v18 = vpop.permute.xlu1 %4255 }
 0x2e0   : > { %v4248_v11 = vunpack.i.h.bf16 %v4246_v15  ;;  %v4247_v20 = vunpack.i.l.bf16 %v4246_v15  ;;  %v4258_v21 = vunpack.i.h.bf16 %v4256_v18  ;;  %v4257_v32 = vunpack.i.l.bf16 %v4256_v18  ;;  %3868 = vmatprep.subr.msk.bf16.mxu0 %vm5651_vm1, %v3866_v6 }
 0x2e1   : > { %3871 = vmatpush3.bf16.xpose.msk.msra.mxu0 %vm5651_vm1, %v3869_v17 }
 0x2e2   : > { %v3824_v28 = vpack.c.bf16 %v4248_v11, %v4247_v20  ;;  %v3827_v22 = vpack.c.bf16 %v4258_v21, %v4257_v32 }
 0x2e3   : > { %v4261_v19 = vpop.permute.xlu0 %4260  ;;  %v4266_v4 = vpop.permute.xlu1 %4265 }
 0x2e4   : > { %v4263_v12 = vunpack.i.h.bf16 %v4261_v19  ;;  %v4262_v7 = vunpack.i.l.bf16 %v4261_v19  ;;  %v4268_v0 = vunpack.i.h.bf16 %v4266_v4  ;;  %v4267_v14 = vunpack.i.l.bf16 %v4266_v4  ;;  %3826 = vmatprep.subr.msk.bf16.mxu1 %vm5651_vm1, %v3824_v28 }
 0x2e5   : > { %3829 = vmatpush3.bf16.xpose.msk.msra.mxu1 %vm5651_vm1, %v3827_v22 }
 0x2e6   : > { %v3872_v24 = vpack.c.bf16 %v4263_v12, %v4262_v7  ;;  %v3875_v26 = vpack.c.bf16 %v4268_v0, %v4267_v14 }
 0x2e7   : > { %v4271_v25 = vpop.permute.xlu0 %4270  ;;  %v4276_v23 = vpop.permute.xlu1 %4275 }
 0x2e8   : > { %v4273_v6 = vunpack.i.h.bf16 %v4271_v25  ;;  %v4272_v17 = vunpack.i.l.bf16 %v4271_v25  ;;  %v4278_v15 = vunpack.i.h.bf16 %v4276_v23  ;;  %v4277_v18 = vunpack.i.l.bf16 %v4276_v23  ;;  %3874 = vmatprep.subr.msk.bf16.mxu0 %vm5651_vm1, %v3872_v24 }
 0x2e9   : > { %3877 = vmatpush3.bf16.xpose.msk.msra.mxu0 %vm5651_vm1, %v3875_v26 }
 0x2ea   : > { %v3830_v11 = vpack.c.bf16 %v4273_v6, %v4272_v17  ;;  %v3833_v20 = vpack.c.bf16 %v4278_v15, %v4277_v18 }
 0x2eb   : > { %v4281_v21 = vpop.permute.xlu0 %4280  ;;  %v4286_v32 = vpop.permute.xlu1 %4285 }
 0x2ec   : > { %v4283_v28 = vunpack.i.h.bf16 %v4281_v21  ;;  %v4282_v22 = vunpack.i.l.bf16 %v4281_v21  ;;  %v4288_v19 = vunpack.i.h.bf16 %v4286_v32  ;;  %v4287_v4 = vunpack.i.l.bf16 %v4286_v32  ;;  %3832 = vmatprep.subr.msk.bf16.mxu1 %vm5651_vm1, %v3830_v11 }
 0x2ed   : > { %3835 = vmatpush3.bf16.xpose.msk.msra.mxu1 %vm5651_vm1, %v3833_v20 }
 0x2ee   : > { %v3878_v12 = vpack.c.bf16 %v4283_v28, %v4282_v22  ;;  %v3881_v7 = vpack.c.bf16 %v4288_v19, %v4287_v4 }
 0x2ef   : > { %v4291_v0 = vpop.permute.xlu0 %4290  ;;  %v4296_v14 = vpop.permute.xlu1 %4295 }
 0x2f0   : > { %v4293_v24 = vunpack.i.h.bf16 %v4291_v0  ;;  %v4292_v26 = vunpack.i.l.bf16 %v4291_v0  ;;  %v4298_v25 = vunpack.i.h.bf16 %v4296_v14  ;;  %v4297_v23 = vunpack.i.l.bf16 %v4296_v14  ;;  %3880 = vmatprep.subr.msk.bf16.mxu0 %vm5651_vm1, %v3878_v12 }
 0x2f1   : > { %3883 = vmatpush3.bf16.xpose.msk.msra.mxu0 %vm5651_vm1, %v3881_v7 }
 0x2f2   : > { %v3836_v6 = vpack.c.bf16 %v4293_v24, %v4292_v26  ;;  %v3839_v17 = vpack.c.bf16 %v4298_v25, %v4297_v23 }
 0x2f3   : > { %v4301_v15 = vpop.permute.xlu0 %4300  ;;  %v4306_v18 = vpop.permute.xlu1 %4305 }
 0x2f4   : > { %v4303_v11 = vunpack.i.h.bf16 %v4301_v15  ;;  %v4302_v20 = vunpack.i.l.bf16 %v4301_v15  ;;  %v4308_v21 = vunpack.i.h.bf16 %v4306_v18  ;;  %v4307_v32 = vunpack.i.l.bf16 %v4306_v18  ;;  %3838 = vmatprep.subr.msk.bf16.mxu1 %vm5651_vm1, %v3836_v6 }
 0x2f5   : > { %3841 = vmatpush3.bf16.xpose.msk.msra.mxu1 %vm5651_vm1, %v3839_v17 }
 0x2f6   : > { %v3884_v28 = vpack.c.bf16 %v4303_v11, %v4302_v20  ;;  %v3887_v22 = vpack.c.bf16 %v4308_v21, %v4307_v32  ;;  %v3928_v21 = vpack.c.bf16 %v6723_v59, %v5201_v60  ;;  %v3898_v32 = vpack.c.bf16 %v6725_v34, %v6724_v33 }
 0x2f7   : > { %v4311_v19 = vpop.permute.xlu0 %4310  ;;  %v4316_v4 = vpop.permute.xlu1 %4315 }
 0x2f8   : > { %v4313_v12 = vunpack.i.h.bf16 %v4311_v19  ;;  %v4312_v7 = vunpack.i.l.bf16 %v4311_v19  ;;  %v4318_v0 = vunpack.i.h.bf16 %v4316_v4  ;;  %v4317_v14 = vunpack.i.l.bf16 %v4316_v4  ;;  %3886 = vmatprep.subr.msk.bf16.mxu0 %vm5651_vm1, %v3884_v28 }
 0x2f9   : > { %3889 = vmatpush3.bf16.xpose.msk.msra.mxu0 %vm5651_vm1, %v3887_v22  ;;  %v3930_v28 = vpack.c.bf16 %v6727_v46, %v6726_v47  ;;  %v3900_v22 = vpack.c.bf16 %v6729_v52, %v6728_v51  ;;  %v3932_v19 = vpack.c.bf16 %v6731_v31, %v6730_v43  ;;  %v3902_v4 = vpack.c.bf16 %v6733_v36, %v6732_v35  ;;  %v6768_v35 = vld [vmem:[#allocation16_spill] sm:$0xff]  ;;  %v6786_v52 = vld [vmem:[#allocation73_spill] sm:$0xff] }
 0x2fa   : > { %v3842_v24 = vpack.c.bf16 %v4313_v12, %v4312_v7  ;;  %v3845_v26 = vpack.c.bf16 %v4318_v0, %v4317_v14  ;;  %v3934_v12 = vpack.c.bf16 %v5136_v63, %v6734_v45  ;;  %v3904_v7 = vpack.c.bf16 %v6736_v54, %v6735_v53  ;;  %v6776_v43 = vld [vmem:[#allocation24_spill] sm:$0xff]  ;;  %v6788_v54 = vld [vmem:[#allocation62_spill] sm:$0xff] }
 0x2fb   : > { %v4321_v25 = vpop.permute.xlu0 %4320  ;;  %v4326_v23 = vpop.permute.xlu1 %4325  ;;  %v3936_v0 = vpack.c.bf16 %v6738_v42, %v6737_v30  ;;  %v3906_v14 = vpack.c.bf16 %v6740_v38, %v6739_v37  ;;  %v6764_v30 = vld [vmem:[#allocation12_spill] sm:$0xff] }
 0x2fc   : > { %v4323_v6 = vunpack.i.h.bf16 %v4321_v25  ;;  %v4322_v17 = vunpack.i.l.bf16 %v4321_v25  ;;  %v4328_v15 = vunpack.i.h.bf16 %v4326_v23  ;;  %v4327_v18 = vunpack.i.l.bf16 %v4326_v23  ;;  %3844 = vmatprep.subr.msk.bf16.mxu1 %vm5651_vm1, %v3842_v24  ;;  %v6780_v47 = vld [vmem:[#allocation28_spill] sm:$0xff] }
 0x2fd   : > { %3847 = vmatpush3.bf16.xpose.msk.msra.mxu1 %vm5651_vm1, %v3845_v26  ;;  %v3938_v24 = vpack.c.bf16 %v5146_v62, %v6741_v48  ;;  %v3908_v26 = vpack.c.bf16 %v6743_v56, %v6742_v55  ;;  %v3940_v25 = vpack.c.bf16 %v6745_v27, %v6744_v41  ;;  %v3910_v23 = vpack.c.bf16 %v6747_v40, %v6746_v39  ;;  %v6772_v39 = vld [vmem:[#allocation20_spill] sm:$0xff] }
 0x2fe   : > { %v3890_v11 = vpack.c.bf16 %v4323_v6, %v4322_v17  ;;  %v3893_v20 = vpack.c.bf16 %v4328_v15, %v4327_v18  ;;  %3897 = vmatprep.subr.bf16.mxu1 %v3896_v3  ;;  %v3942_v6 = vpack.c.bf16 %v6748_v44, %v5151_v61  ;;  %v3912_v17 = vpack.c.bf16 %v6750_v58, %v6749_v57  ;;  %v6752_v15 = vld [vmem:[#allocation88_spill] sm:$0xff]  ;;  %v6792_v57 = vld [vmem:[#allocation33_spill] sm:$0xff] }
 0x2ff   : > { %v3944_v18 = vpack.c.bf16 %v6752_v15, %v6751_v29  ;;  %v6785_v51 = vld [vmem:[#allocation72_spill] sm:$0xff]  ;;  %v4697_v61 = vmov (%p166_p0), 0.0  }
 0x300   : > { %3892 = vmatprep.subr.msk.bf16.mxu0 %vm5651_vm1, %v3890_v11  ;;  %v3946_v53 = vpack.c.bf16 %v6786_v52, %v6785_v51  ;;  %v6793_v51 = vld [vmem:[#allocation45_spill] sm:$0xff]  ;;  %v6794_v52 = vld [vmem:[#allocation46_spill] sm:$0xff] }
 0x301   : > { %3895 = vmatpush3.bf16.xpose.msk.msra.mxu0 %vm5651_vm1, %v3893_v20  ;;  %v6753_v20 = vld [vmem:[#allocation2_spill] sm:$0xff] }
 0x302   : > { %3929 = vmatprep.subr.bf16.mxu0 %v3928_v21 }
 0x304   : > { %3286 = vmatmul.mubr.msk.f32.vlgmr.msra.gmra.mrb[0].mxu1 %vm182_vm0, %v5481_v2 }
 0x305   : > { %3287 = vmatprep.mubr.msk.f32.mxu1 %vm182_vm0, %v5477_v16  ;;  %3899 = vmatpush3.bf16.msra.mxu1 %v3898_v32  ;;  %v6754_v32 = vld [vmem:[#allocation3_spill] sm:$0xff] }
 0x306   : > { %3901 = vmatprep.subr.bf16.mxu1 %v3900_v22 }
 0x308   : > { %3288 = vmatmul.mubr.msk.f32.gmra.mrb[2].mxu1 %vm182_vm0, %v5477_v16  ;;  %3334 = vmatmul.mubr.msk.f32.vlgmr.msra.gmra.mrb[8].mxu0 %vm182_vm0, %v5481_v2 }
 0x309   : > { %3289 = vmatprep.mubr.msk.f32.mxu1 %vm182_vm0, %v5507_v10  ;;  %3335 = vmatprep.mubr.msk.f32.mxu0 %vm182_vm0, %v5477_v16 }
 0x30a   : > { %3931 = vmatpush3.bf16.msra.mxu0 %v3930_v28  ;;  %3903 = vmatpush3.bf16.msra.mxu1 %v3902_v4 }
 0x30b   : > { %3933 = vmatprep.subr.bf16.mxu0 %v3932_v19  ;;  %3905 = vmatprep.subr.bf16.mxu1 %v3904_v7 }
 0x30c   : > { %3290 = vmatmul.mubr.msk.f32.gmra.mrb[4].mxu1 %vm182_vm0, %v5507_v10  ;;  %3336 = vmatmul.mubr.msk.f32.gmra.mrb[10].mxu0 %vm182_vm0, %v5477_v16 }
 0x30d   : > { %3291 = vmatprep.mubr.msk.f32.mxu1 %vm182_vm0, %v5505_v9  ;;  %3337 = vmatprep.mubr.msk.f32.mxu0 %vm182_vm0, %v5507_v10 }
 0x30e   : > { %3935 = vmatpush3.bf16.msra.mxu0 %v3934_v12  ;;  %3907 = vmatpush3.bf16.msra.mxu1 %v3906_v14  ;;  %v6755_v12 = vld [vmem:[#allocation6_spill] sm:$0xff] }
 0x30f   : > { %3937 = vmatprep.subr.bf16.mxu0 %v3936_v0  ;;  %3909 = vmatprep.subr.bf16.mxu1 %v3908_v26  ;;  %v6756_v0 = vld [vmem:[#allocation4_spill] sm:$0xff] }
 0x310   : > { %3292 = vmatmul.mubr.msk.f32.gmra.mrb[6].mxu1 %vm182_vm0, %v5505_v9  ;;  %3338 = vmatmul.mubr.msk.f32.gmra.mrb[12].mxu0 %vm182_vm0, %v5507_v10 }
 0x311   : > { %3293 = vmatprep.mubr.msk.f32.mxu1 %vm182_vm0, %v5531_v8  ;;  %3339 = vmatprep.mubr.msk.f32.mxu0 %vm182_vm0, %v5505_v9 }
 0x312   : > { %3939 = vmatpush3.bf16.msra.mxu0 %v3938_v24  ;;  %3911 = vmatpush3.bf16.msra.mxu1 %v3910_v23 }
 0x313   : > { %3941 = vmatprep.subr.bf16.mxu0 %v3940_v25  ;;  %3913 = vmatprep.subr.bf16.mxu1 %v3912_v17  ;;  %v6757_v25 = vld [vmem:[#allocation7_spill] sm:$0xff] }
 0x314   : > { %3294 = vmatmul.mubr.msk.f32.gmra.mrb[8].mxu1 %vm182_vm0, %v5531_v8  ;;  %3340 = vmatmul.mubr.msk.f32.gmra.mrb[14].mxu0 %vm182_vm0, %v5505_v9 }
 0x315   : > { %3295 = vmatprep.mubr.msk.f32.mxu1 %vm182_vm0, %v5529_v13  ;;  %3341 = vmatprep.mubr.msk.f32.mxu0 %vm182_vm0, %v5531_v8 }
 0x316   : > { %3943 = vmatpush3.bf16.msra.mxu0 %v3942_v6  ;;  %v6758_v6 = vld [vmem:[#allocation5_spill] sm:$0xff] }
 0x317   : > { %3945 = vmatprep.subr.bf16.mxu0 %v3944_v18 }
 0x318   : > { %3296 = vmatmul.mubr.msk.f32.gmra.mrb[10].mxu1 %vm182_vm0, %v5529_v13  ;;  %3342 = vmatmul.mubr.msk.f32.gmra.mrb[16].mxu0 %vm182_vm0, %v5531_v8 }
 0x319   : > { %3297 = vmatprep.mubr.msk.f32.mxu1 %vm182_vm0, %v5555_v5  ;;  %3343 = vmatprep.mubr.msk.f32.mxu0 %vm182_vm0, %v5529_v13 }
 0x31a   : > { %3947 = vmatpush3.bf16.msra.mxu0 %v3946_v53  ;;  %v6801_v53 = vld [vmem:[#allocation47_spill] sm:$0xff] }
 0x31c   : > { %3298 = vmatmul.mubr.msk.f32.gmra.mrb[12].mxu1 %vm182_vm0, %v5555_v5  ;;  %3344 = vmatmul.mubr.msk.f32.gmra.mrb[18].mxu0 %vm182_vm0, %v5529_v13 }
 0x31d   : > { %3299 = vmatprep.mubr.msk.f32.mxu1 %vm182_vm0, %v5553_v1  ;;  %3345 = vmatprep.mubr.msk.f32.mxu0 %vm182_vm0, %v5555_v5 }
 0x320   : > { %3300 = vmatmul.mubr.msk.f32.gmra.mrb[14].mxu1 %vm182_vm0, %v5553_v1  ;;  %3346 = vmatmul.mubr.msk.f32.gmra.mrb[20].mxu0 %vm182_vm0, %v5555_v5 }
 0x321   : > { %3347 = vmatprep.mubr.msk.f32.mxu0 %vm182_vm0, %v5553_v1 }
 0x324   : > { %3348 = vmatmul.mubr.msk.f32.gmra.mrb[22].mxu0 %vm182_vm0, %v5553_v1 }
 0x3d7   : > { %v1127_v11 = vpop.f32.mrb[0].mxu1 }
 0x3d8   : > { %v5816_v3 = vadd.f32 %v1127_v11, %v6753_v20  ;;  %v1129_v21 = vpop.f32.mrb[1].mxu1 }
 0x3d9   : > { %v5819_v28 = vadd.f32 %v1129_v21, %v6754_v32  ;;  %v6759_v21 = vld [vmem:[#allocation10_spill] sm:$0xff] }
 0x3db   : > { %v1287_v22 = vmax.f32 %v5816_v3, %v5819_v28  ;;  %v1133_v19 = vpop.f32.mrb[2].mxu1  ;;  %v1240_v4 = vpop.f32.mrb[8].mxu0 }
 0x3dc   : > { %v5824_v7 = vadd.f32 %v1133_v19, %v6755_v12  ;;  %v5827_v14 = vadd.f32 %v1240_v4, %v6756_v0  ;;  %v1135_v24 = vpop.f32.mrb[3].mxu1  ;;  %v1242_v26 = vpop.f32.mrb[9].mxu0  ;;  %v6760_v19 = vld [vmem:[#allocation8_spill] sm:$0xff] }
 0x3dd   : > { %v5830_v23 = vadd.f32 %v1135_v24, %v6757_v25  ;;  %v5833_v17 = vadd.f32 %v1242_v26, %v6758_v6  ;;  %v6761_v25 = vld [vmem:[#allocation11_spill] sm:$0xff]  ;;  %v6762_v6 = vld [vmem:[#allocation9_spill] sm:$0xff] }
 0x3de   : > { %v1288_v15 = vmax.f32 %v1287_v22, %v5827_v14 }
 0x3df   : > { %v1292_v18 = vmax.f32 %v5824_v7, %v5830_v23  ;;  %v1139_v11 = vpop.f32.mrb[4].mxu1  ;;  %v1246_v20 = vpop.f32.mrb[10].mxu0 }
 0x3e0   : > { %v5839_v32 = vadd.f32 %v1139_v11, %v6759_v21  ;;  %v5842_v4 = vadd.f32 %v1246_v20, %v6760_v19  ;;  %v1141_v12 = vpop.f32.mrb[5].mxu1  ;;  %v1248_v0 = vpop.f32.mrb[11].mxu0  ;;  %v1289_v24 = vmax.f32 %v1288_v15, %v5833_v17  ;;  %v6763_v20 = vld [vmem:[#allocation14_spill] sm:$0xff] }
 0x3e1   : > { %v5846_v26 = vadd.f32 %v1141_v12, %v6761_v25  ;;  %v5849_v22 = vadd.f32 %v1248_v0, %v6762_v6  ;;  %v6765_v0 = vld [vmem:[#allocation15_spill] sm:$0xff] }
 0x3e2   : > { %v1293_v27 = vmax.f32 %v1292_v18, %v5842_v4  ;;  %1290 = vmax.xlane.f32.xlu0 %v1289_v24  ;;  %v6766_v18 = vld [vmem:[#allocation13_spill] sm:$0xff] }
 0x3e3   : > { %v1297_v11 = vmax.f32 %v5839_v32, %v5846_v26  ;;  %v1145_v21 = vpop.f32.mrb[6].mxu1  ;;  %v1252_v29 = vpop.f32.mrb[12].mxu0 }
 0x3e4   : > { %v5855_v19 = vadd.f32 %v1145_v21, %v6763_v20  ;;  %v5858_v31 = vadd.f32 %v1252_v29, %v6764_v30  ;;  %v1147_v15 = vpop.f32.mrb[7].mxu1  ;;  %v1254_v12 = vpop.f32.mrb[13].mxu0  ;;  %v1294_v25 = vmax.f32 %v1293_v27, %v5849_v22  ;;  %v6767_v29 = vld [vmem:[#allocation18_spill] sm:$0xff] }
 0x3e5   : > { %v5862_v6 = vadd.f32 %v1147_v15, %v6765_v0  ;;  %v5865_v24 = vadd.f32 %v1254_v12, %v6766_v18  ;;  %v6769_v12 = vld [vmem:[#allocation19_spill] sm:$0xff] }
 0x3e6   : > { %v1298_v33 = vmax.f32 %v1297_v11, %v5858_v31  ;;  %1295 = vmax.xlane.f32.xlu1 %v1294_v25  ;;  %v6770_v11 = vld [vmem:[#allocation17_spill] sm:$0xff] }
 0x3e7   : > { %v1302_v21 = vmax.f32 %v5855_v19, %v5862_v6  ;;  %v1151_v20 = vpop.f32.mrb[8].mxu1  ;;  %v1258_v34 = vpop.f32.mrb[14].mxu0 }
 0x3e8   : > { %v5871_v30 = vadd.f32 %v1151_v20, %v6767_v29  ;;  %v5874_v36 = vadd.f32 %v1258_v34, %v6768_v35  ;;  %v1153_v27 = vpop.f32.mrb[9].mxu1  ;;  %v1260_v15 = vpop.f32.mrb[15].mxu0  ;;  %v1299_v0 = vmax.f32 %v1298_v33, %v5865_v24  ;;  %v6771_v34 = vld [vmem:[#allocation22_spill] sm:$0xff] }
 0x3e9   : > { %v5878_v18 = vadd.f32 %v1153_v27, %v6769_v12  ;;  %v5881_v25 = vadd.f32 %v1260_v15, %v6770_v11  ;;  %v6773_v15 = vld [vmem:[#allocation23_spill] sm:$0xff] }
 0x3ea   : > { %v1303_v37 = vmax.f32 %v1302_v21, %v5874_v36  ;;  %1300 = vmax.xlane.f32.xlu0 %v1299_v0  ;;  %v6774_v21 = vld [vmem:[#allocation21_spill] sm:$0xff] }
 0x3eb   : > { %v1307_v20 = vmax.f32 %v5871_v30, %v5878_v18  ;;  %v1157_v29 = vpop.f32.mrb[10].mxu1  ;;  %v1264_v38 = vpop.f32.mrb[16].mxu0 }
 0x3ec   : > { %v5887_v35 = vadd.f32 %v1157_v29, %v6771_v34  ;;  %v5890_v40 = vadd.f32 %v1264_v38, %v6772_v39  ;;  %v1159_v33 = vpop.f32.mrb[11].mxu1  ;;  %v1266_v27 = vpop.f32.mrb[17].mxu0  ;;  %v1304_v12 = vmax.f32 %v1303_v37, %v5881_v25  ;;  %v6775_v38 = vld [vmem:[#allocation26_spill] sm:$0xff] }
 0x3ed   : > { %v5894_v11 = vadd.f32 %v1159_v33, %v6773_v15  ;;  %v5897_v0 = vadd.f32 %v1266_v27, %v6774_v21  ;;  %v6777_v27 = vld [vmem:[#allocation27_spill] sm:$0xff] }
 0x3ee   : > { %v1308_v41 = vmax.f32 %v1307_v20, %v5890_v40  ;;  %1305 = vmax.xlane.f32.xlu0 %v1304_v12  ;;  %v6778_v20 = vld [vmem:[#allocation25_spill] sm:$0xff] }
 0x3ef   : > { %v1312_v29 = vmax.f32 %v5887_v35, %v5894_v11  ;;  %v1163_v34 = vpop.f32.mrb[12].mxu1  ;;  %v1270_v42 = vpop.f32.mrb[18].mxu0 }
 0x3f0   : > { %v5903_v39 = vadd.f32 %v1163_v34, %v6775_v38  ;;  %v5906_v44 = vadd.f32 %v1270_v42, %v6776_v43  ;;  %v1165_v37 = vpop.f32.mrb[13].mxu1  ;;  %v1272_v33 = vpop.f32.mrb[19].mxu0  ;;  %v1309_v15 = vmax.f32 %v1308_v41, %v5897_v0  ;;  %v6779_v42 = vld [vmem:[#allocation30_spill] sm:$0xff] }
 0x3f1   : > { %v5910_v21 = vadd.f32 %v1165_v37, %v6777_v27  ;;  %v5913_v12 = vadd.f32 %v1272_v33, %v6778_v20  ;;  %v6781_v33 = vld [vmem:[#allocation31_spill] sm:$0xff] }
 0x3f2   : > { %v1313_v45 = vmax.f32 %v1312_v29, %v5906_v44  ;;  %1310 = vmax.xlane.f32.xlu0 %v1309_v15  ;;  %v6782_v29 = vld [vmem:[#allocation29_spill] sm:$0xff] }
 0x3f3   : > { %v1317_v34 = vmax.f32 %v5903_v39, %v5910_v21  ;;  %v1169_v38 = vpop.f32.mrb[14].mxu1  ;;  %v1276_v46 = vpop.f32.mrb[20].mxu0 }
 0x3f4   : > { %v5919_v43 = vadd.f32 %v1169_v38, %v6779_v42  ;;  %v5922_v48 = vadd.f32 %v1276_v46, %v6780_v47  ;;  %v1171_v41 = vpop.f32.mrb[15].mxu1  ;;  %v1278_v37 = vpop.f32.mrb[21].mxu0  ;;  %v1314_v27 = vmax.f32 %v1313_v45, %v5913_v12  ;;  %v6784_v46 = vld [vmem:[#allocation44_spill] sm:$0xff]  ;;  %v6787_v45 = vld [vmem:[#allocation61_spill] sm:$0xff] }
 0x3f5   : > { %v5926_v20 = vadd.f32 %v1171_v41, %v6781_v33  ;;  %v5929_v15 = vadd.f32 %v1278_v37, %v6782_v29  ;;  %v3914_v47 = vpack.c.bf16 %v6784_v46, %v6783_v50  ;;  %v3916_v41 = vpack.c.bf16 %v6788_v54, %v6787_v45  ;;  %v6789_v33 = vld [vmem:[#allocation32_spill] sm:$0xff]  ;;  %v6791_v29 = vld [vmem:[#allocation90_spill] sm:$0xff]  ;;  %v6796_v46 = vld [vmem:[#allocation75_spill] sm:$0xff] }
 0x3f6   : > { %v1318_v49 = vmax.f32 %v1317_v34, %v5922_v48  ;;  %1315 = vmax.xlane.f32.xlu1 %v1314_v27  ;;  %v6790_v27 = vld [vmem:[#allocation89_spill] sm:$0xff]  ;;  %v3918_v54 = vpack.c.bf16 %v6794_v52, %v6793_v51  ;;  %v6806_v52 = vld [vmem:[#allocation66_spill] sm:$0xff] }
 0x3f7   : > { %v1322_v38 = vmax.f32 %v5919_v43, %v5926_v20  ;;  %v1282_v42 = vpop.f32.mrb[22].mxu0  ;;  %v3948_v56 = vpack.c.bf16 %v6791_v29, %v6790_v27  ;;  %3915 = vmatpush3.bf16.msra.mxu1 %v3914_v47  ;;  %v6799_v27 = vld [vmem:[#allocation91_spill] sm:$0xff]  ;;  %v6800_v29 = vld [vmem:[#allocation92_spill] sm:$0xff]  ;;  %v6805_v51 = vld [vmem:[#allocation65_spill] sm:$0xff] }
 0x3f8   : > { %v5941_v55 = vadd.f32 %v1282_v42, %v6789_v33  ;;  %v1284_v37 = vpop.f32.mrb[23].mxu0  ;;  %v1319_v34 = vmax.f32 %v1318_v49, %v5929_v15  ;;  %3917 = vmatprep.subr.bf16.mxu1 %v3916_v41  ;;  %v6795_v42 = vld [vmem:[#allocation74_spill] sm:$0xff]  ;;  %v6797_v49 = vld [vmem:[#allocation63_spill] sm:$0xff]  ;;  %v6798_v33 = vld [vmem:[#allocation64_spill] sm:$0xff] }
 0x3f9   : > { %v5947_v58 = vadd.f32 %v1284_v37, %v6792_v57  ;;  %3949 = vmatprep.subr.bf16.mxu0 %v3948_v56  ;;  %v3950_v45 = vpack.c.bf16 %v6796_v46, %v6795_v42  ;;  %v3920_v59 = vpack.c.bf16 %v6798_v33, %v6797_v49  ;;  %v3952_v57 = vpack.c.bf16 %v6800_v29, %v6799_v27  ;;  %v6802_v56 = vld [vmem:[#allocation48_spill] sm:$0xff]  ;;  %v6804_v37 = vld [vmem:[#allocation77_spill] sm:$0xff]  ;;  %v6808_v49 = vld [vmem:[#allocation94_spill] sm:$0xff] }
 0x3fa   : > { %v1323_v50 = vmax.f32 %v1322_v38, %v5941_v55  ;;  %1320 = vmax.xlane.f32.xlu0 %v1319_v34  ;;  %v3922_v38 = vpack.c.bf16 %v6802_v56, %v6801_v53  ;;  %v6803_v41 = vld [vmem:[#allocation76_spill] sm:$0xff]  ;;  %v3924_v42 = vpack.c.bf16 %v6806_v52, %v6805_v51  ;;  %v6807_v46 = vld [vmem:[#allocation93_spill] sm:$0xff]  ;;  %v6812_v27 = vld [vmem:[#allocation79_spill] sm:$0xff] }
 0x3fb   : > { %3919 = vmatpush3.bf16.msra.mxu1 %v3918_v54  ;;  %3951 = vmatpush3.bf16.msra.mxu0 %v3950_v45  ;;  %v3954_v34 = vpack.c.bf16 %v6804_v37, %v6803_v41  ;;  %v3956_v33 = vpack.c.bf16 %v6808_v49, %v6807_v46  ;;  %v6810_v54 = vld [vmem:[#allocation50_spill] sm:$0xff]  ;;  %v6815_v53 = vld [vmem:[#allocation105_spill] sm:$0xff]  ;;  %v6816_v56 = vld [vmem:[#allocation103_spill] sm:$0xff] }
 0x3fc   : > { %v1324_v47 = vmax.f32 %v1323_v50, %v5947_v58  ;;  %3921 = vmatprep.subr.bf16.mxu1 %v3920_v59  ;;  %3953 = vmatprep.subr.bf16.mxu0 %v3952_v57  ;;  %v6809_v50 = vld [vmem:[#allocation49_spill] sm:$0xff]  ;;  %v6811_v45 = vld [vmem:[#allocation78_spill] sm:$0xff]  ;;  %v6818_v41 = vld [vmem:[#allocation107_spill] sm:$0xff] }
 0x3fd   : > { %v3926_v59 = vpack.c.bf16 %v6810_v54, %v6809_v50  ;;  %v3958_v29 = vpack.c.bf16 %v6812_v27, %v6811_v45  ;;  %v6813_v57 = vld [vmem:[#allocation34_spill] sm:$0xff]  ;;  %v6819_v37 = vld [vmem:[#allocation109_spill] sm:$0xff] }
 0x3fe   : > { %1325 = vmax.xlane.f32.xlu1 %v1324_v47  ;;  %v6814_v47 = vld [vmem:[#allocation104_spill] sm:$0xff]  ;;  %v6821_v51 = vld [vmem:[#allocation110_spill] sm:$0xff] }
 0x3ff   : > { %3923 = vmatpush3.bf16.msra.mxu1 %v3922_v38  ;;  %3955 = vmatpush3.bf16.msra.mxu0 %v3954_v34  ;;  %v6817_v38 = vld [vmem:[#allocation106_spill] sm:$0xff]  ;;  %v6820_v34 = vld [vmem:[#allocation108_spill] sm:$0xff] }
 0x400   : > { %3925 = vmatprep.subr.bf16.mxu1 %v3924_v42  ;;  %3957 = vmatprep.subr.bf16.mxu0 %v3956_v33 }
 0x403   : > { %3927 = vmatpush3.bf16.msra.mxu1 %v3926_v59  ;;  %3959 = vmatpush3.bf16.msra.mxu0 %v3958_v29 }
 0x404   : > { %3664 = vmatprep.subr.mxu1 %v6813_v57 }
 0x40f   : > { %641 = vrot.lane.b32.xlu1 %v6814_v47, %s4694_s22 }
 0x410   : > { %633 = vrot.lane.b32.xlu0 %v6815_v53, %s4694_s22 }
 0x413   : > { %629 = vrot.lane.b32.xlu1 %v6816_v56, %s4694_s22 }
 0x414   : > { %635 = vrot.lane.b32.xlu0 %v6817_v38, %s4694_s22 }
 0x417   : > { %637 = vrot.lane.b32.xlu1 %v6818_v41, %s4694_s22 }
 0x418   : > { %631 = vrot.lane.b32.xlu0 %v6819_v37, %s4694_s22 }
 0x41b   : > { %643 = vrot.lane.b32.xlu1 %v6820_v34, %s4694_s22 }
 0x41f   : > { %639 = vrot.lane.b32.xlu1 %v6821_v51, %s4694_s22 }
 0x46f   : > { %v1291_v52 = vpop.xlane.xlu0 %1290 }
 0x470   : > { %v1327_v42 = vsub.f32 %v5816_v3, %v1291_v52  ;;  %v1328_v46 = vsub.f32 %v5819_v28, %v1291_v52  ;;  %v1329_v49 = vsub.f32 %v5827_v14, %v1291_v52  ;;  %v1330_v33 = vsub.f32 %v5833_v17, %v1291_v52 }
 0x472   : > { %v1359_v50 = vmul.f32 1.442695, %v1327_v42  ;;  %v1361_v54 = vmul.f32 1.442695, %v1328_v46  ;;  %v1363_v59 = vmul.f32 1.442695, %v1329_v49 }
 0x473   : > { %v1365_v45 = vmul.f32 1.442695, %v1330_v33  ;;  %v1296_v27 = vpop.xlane.xlu1 %1295 }
 0x474   : > { %4505 = vpow2.f32 %v1359_v50  ;;  %v1331_v29 = vsub.f32 %v5824_v7, %v1296_v27  ;;  %v1332_v47 = vsub.f32 %v5830_v23, %v1296_v27  ;;  %v1333_v53 = vsub.f32 %v5842_v4, %v1296_v27 }
 0x475   : > { %4507 = vpow2.f32 %v1361_v54  ;;  %v1334_v3 = vsub.f32 %v5849_v22, %v1296_v27 }
 0x476   : > { %4509 = vpow2.f32 %v1363_v59  ;;  %v1367_v28 = vmul.f32 1.442695, %v1331_v29  ;;  %v1369_v14 = vmul.f32 1.442695, %v1332_v47  ;;  %v1371_v56 = vmul.f32 1.442695, %v1333_v53 }
 0x477   : > { %4511 = vpow2.f32 %v1365_v45  ;;  %v1373_v17 = vmul.f32 1.442695, %v1334_v3  ;;  %v1301_v38 = vpop.xlane.xlu0 %1300 }
 0x478   : > { %4513 = vpow2.f32 %v1367_v28  ;;  %v1335_v41 = vsub.f32 %v5839_v32, %v1301_v38  ;;  %v1336_v37 = vsub.f32 %v5846_v26, %v1301_v38  ;;  %v1337_v7 = vsub.f32 %v5858_v31, %v1301_v38 }
 0x479   : > { %4515 = vpow2.f32 %v1369_v14  ;;  %v1338_v23 = vsub.f32 %v5865_v24, %v1301_v38 }
 0x47a   : > { %4517 = vpow2.f32 %v1371_v56  ;;  %v1375_v4 = vmul.f32 1.442695, %v1335_v41  ;;  %v1377_v22 = vmul.f32 1.442695, %v1336_v37  ;;  %v1379_v34 = vmul.f32 1.442695, %v1337_v7 }
 0x47b   : > { %4519 = vpow2.f32 %v1373_v17  ;;  %v1381_v51 = vmul.f32 1.442695, %v1338_v23  ;;  %v1306_v52 = vpop.xlane.xlu0 %1305 }
 0x47c   : > { %4521 = vpow2.f32 %v1375_v4  ;;  %v1339_v42 = vsub.f32 %v5855_v19, %v1306_v52  ;;  %v1340_v46 = vsub.f32 %v5862_v6, %v1306_v52  ;;  %v1341_v32 = vsub.f32 %v5874_v36, %v1306_v52 }
 0x47d   : > { %4523 = vpow2.f32 %v1377_v22  ;;  %v1342_v31 = vsub.f32 %v5881_v25, %v1306_v52 }
 0x47e   : > { %v6004_v26 = vpop.eup %4505  ;;  %4525 = vpow2.f32 %v1379_v34  ;;  %v1383_v24 = vmul.f32 1.442695, %v1339_v42  ;;  %v1385_v49 = vmul.f32 1.442695, %v1340_v46  ;;  %v1387_v33 = vmul.f32 1.442695, %v1341_v32 }
 0x47f   : > { %v6006_v50 = vpop.eup %4507  ;;  %4527 = vpow2.f32 %v1381_v51  ;;  %v1389_v54 = vmul.f32 1.442695, %v1342_v31  ;;  %v1311_v59 = vpop.xlane.xlu0 %1310 }
 0x480   : > { %v6008_v45 = vpop.eup %4509  ;;  %4529 = vpow2.f32 %v1383_v24  ;;  %1487 = vmatprep.mubr.f32.mxu1 %v6006_v50  ;;  %v1343_v36 = vsub.f32 %v5871_v30, %v1311_v59  ;;  %v1344_v19 = vsub.f32 %v5878_v18, %v1311_v59  ;;  %v1345_v6 = vsub.f32 %v5890_v40, %v1311_v59 }
 0x481   : > { %v6014_v25 = vpop.eup %4511  ;;  %4531 = vpow2.f32 %v1385_v49  ;;  %v1346_v27 = vsub.f32 %v5897_v0, %v1311_v59  ;;  %1488 = vmatmul.mubr.f32.vlgmr.msra.gmra.mrb[16].mxu1 %v6004_v26 }
 0x482   : > { %v6018_v29 = vpop.eup %4513  ;;  %4533 = vpow2.f32 %v1387_v33  ;;  %1592 = vmatprep.mubr.f32.mxu0 %v6014_v25  ;;  %v1391_v47 = vmul.f32 1.442695, %v1343_v36  ;;  %v1393_v53 = vmul.f32 1.442695, %v1344_v19  ;;  %v1395_v3 = vmul.f32 1.442695, %v1345_v6  ;;  %3665 = vmatpush3.msra.mxu1 %v6813_v57 }
 0x483   : > { %v6022_v30 = vpop.eup %4515  ;;  %4535 = vpow2.f32 %v1389_v54  ;;  %v1397_v40 = vmul.f32 1.442695, %v1346_v27  ;;  %1593 = vmatmul.mubr.f32.vlgmr.msra.gmra.mrb[24].mxu0 %v6008_v45  ;;  %v1316_v18 = vpop.xlane.xlu1 %1315 }
 0x484   : > { %v6025_v0 = vpop.eup %4517  ;;  %4537 = vpow2.f32 %v1391_v47  ;;  %v1347_v28 = vsub.f32 %v5887_v35, %v1316_v18  ;;  %v1348_v14 = vsub.f32 %v5894_v11, %v1316_v18  ;;  %v1349_v56 = vsub.f32 %v5906_v44, %v1316_v18  ;;  %1492 = vmatprep.mubr.f32.mxu1 %v6022_v30 }
 0x485   : > { %v6031_v17 = vpop.eup %4519  ;;  %4539 = vpow2.f32 %v1393_v53  ;;  %v1350_v57 = vsub.f32 %v5913_v12, %v1316_v18  ;;  %1493 = vmatmul.mubr.f32.gmra.mrb[18].mxu1 %v6018_v29 }
 0x486   : > { %v6035_v38 = vpop.eup %4521  ;;  %4541 = vpow2.f32 %v1395_v3  ;;  %v1399_v41 = vmul.f32 1.442695, %v1347_v28  ;;  %v1401_v37 = vmul.f32 1.442695, %v1348_v14  ;;  %v1403_v7 = vmul.f32 1.442695, %v1349_v56  ;;  %1597 = vmatprep.mubr.f32.mxu0 %v6031_v17 }
 0x487   : > { %v6038_v35 = vpop.eup %4523  ;;  %4543 = vpow2.f32 %v1397_v40  ;;  %v1405_v44 = vmul.f32 1.442695, %v1350_v57  ;;  %1598 = vmatmul.mubr.f32.gmra.mrb[26].mxu0 %v6025_v0  ;;  %v1321_v11 = vpop.xlane.xlu0 %1320 }
 0x488   : > { %v6041_v23 = vpop.eup %4525  ;;  %4545 = vpow2.f32 %v1399_v41  ;;  %1497 = vmatprep.mubr.f32.mxu1 %v6038_v35  ;;  %v1351_v12 = vsub.f32 %v5903_v39, %v1321_v11  ;;  %v1352_v4 = vsub.f32 %v5910_v21, %v1321_v11  ;;  %v1353_v22 = vsub.f32 %v5922_v48, %v1321_v11 }
 0x489   : > { %v6047_v34 = vpop.eup %4527  ;;  %4547 = vpow2.f32 %v1401_v37  ;;  %v1354_v51 = vsub.f32 %v5929_v15, %v1321_v11  ;;  %1498 = vmatmul.mubr.f32.gmra.mrb[20].mxu1 %v6035_v38 }
 0x48a   : > { %v6051_v52 = vpop.eup %4529  ;;  %4549 = vpow2.f32 %v1403_v7  ;;  %1602 = vmatprep.mubr.f32.mxu0 %v6047_v34  ;;  %v1407_v42 = vmul.f32 1.442695, %v1351_v12  ;;  %v1409_v46 = vmul.f32 1.442695, %v1352_v4  ;;  %v1411_v32 = vmul.f32 1.442695, %v1353_v22 }
 0x48b   : > { %v6054_v39 = vpop.eup %4531  ;;  %4551 = vpow2.f32 %v1405_v44  ;;  %v1413_v21 = vmul.f32 1.442695, %v1354_v51  ;;  %1603 = vmatmul.mubr.f32.gmra.mrb[28].mxu0 %v6041_v23  ;;  %v1326_v48 = vpop.xlane.xlu1 %1325 }
 0x48c   : > { %v6057_v31 = vpop.permute.xlu0 %633  ;;  %v6059_v15 = vpop.eup %4533  ;;  %4553 = vpow2.f32 %v1407_v42  ;;  %v1355_v24 = vsub.f32 %v5919_v43, %v1326_v48  ;;  %v1356_v49 = vsub.f32 %v5926_v20, %v1326_v48  ;;  %v1357_v33 = vsub.f32 %v5941_v55, %v1326_v48  ;;  %1502 = vmatprep.mubr.f32.mxu1 %v6054_v39 }
 0x48d   : > { %v6065_v54 = vpop.eup %4535  ;;  %4555 = vpow2.f32 %v1409_v46  ;;  %v1358_v59 = vsub.f32 %v5947_v58, %v1326_v48  ;;  %1503 = vmatmul.mubr.f32.gmra.mrb[22].mxu1 %v6051_v52  ;;  %v669_v36 = vmul.f32 %v6057_v31, %v5481_v2  ;;  %v670_v19 = vmul.f32 %v6057_v31, %v5477_v16 }
 0x48e   : > { %v6073_v43 = vpop.eup %4537  ;;  %4557 = vpow2.f32 %v1411_v32  ;;  %v1415_v20 = vmul.f32 1.442695, %v1355_v24  ;;  %v1417_v55 = vmul.f32 1.442695, %v1356_v49  ;;  %v1419_v6 = vmul.f32 1.442695, %v1357_v33  ;;  %1607 = vmatprep.mubr.f32.mxu0 %v6065_v54 }
 0x48f   : > { %v6076_v27 = vpop.eup %4539  ;;  %4559 = vpow2.f32 %v1413_v21  ;;  %v1421_v58 = vmul.f32 1.442695, %v1358_v59  ;;  %1608 = vmatmul.mubr.f32.gmra.mrb[30].mxu0 %v6059_v15  ;;  %v6079_v47 = vpop.permute.xlu1 %641  ;;  %v4329_v53 = vpack.i.bf16 %v670_v19, %v669_v36  ;;  %v671_v42 = vmul.f32 %v6057_v31, %v5507_v10 }
 0x490   : > { %v6081_v3 = vpop.eup %4541  ;;  %4561 = vpow2.f32 %v1415_v20  ;;  %1507 = vmatprep.mubr.f32.mxu1 %v6076_v27  ;;  %v701_v40 = vmul.f32 %v6079_v47, %v5481_v2  ;;  %v702_v18 = vmul.f32 %v6079_v47, %v5477_v16  ;;  %v672_v46 = vmul.f32 %v6057_v31, %v5505_v9 }
 0x491   : > { %v6088_v28 = vpop.eup %4543  ;;  %4563 = vpow2.f32 %v1417_v55  ;;  %1508 = vmatmul.mubr.f32.gmra.mrb[24].mxu1 %v6073_v43  ;;  %4330 = vrot.lane.b32.xlu0 %v4329_v53, %s4694_s22  ;;  %v703_v59 = vmul.f32 %v6079_v47, %v5507_v10  ;;  %v704_v36 = vmul.f32 %v6079_v47, %v5505_v9 }
 0x492   : > { %v6092_v14 = vpop.eup %4545  ;;  %4565 = vpow2.f32 %v1419_v6  ;;  %1612 = vmatprep.mubr.f32.mxu0 %v6088_v28  ;;  %v4334_v56 = vpack.i.bf16 %v702_v18, %v701_v40  ;;  %v4349_v20 = vpack.i.bf16 %v672_v46, %v671_v42  ;;  %v705_v46 = vmul.f32 %v6079_v47, %v5531_v8 }
 0x493   : > { %v6095_v57 = vpop.eup %4547  ;;  %4567 = vpow2.f32 %v1421_v58  ;;  %1613 = vmatmul.mubr.f32.gmra.mrb[32].mxu0 %v6081_v3  ;;  %v6098_v41 = vpop.permute.xlu1 %629  ;;  %v4354_v40 = vpack.i.bf16 %v704_v36, %v703_v59 }
 0x494   : > { %v6100_v37 = vpop.eup %4549  ;;  %1512 = vmatprep.mubr.f32.mxu1 %v6095_v57  ;;  %4335 = vrot.lane.b32.xlu1 %v4334_v56, %s4694_s22  ;;  %v653_v7 = vmul.f32 %v6098_v41, %v5481_v2  ;;  %v654_v44 = vmul.f32 %v6098_v41, %v5477_v16  ;;  %v655_v55 = vmul.f32 %v6098_v41, %v5507_v10 }
 0x495   : > { %v6108_v11 = vpop.eup %4551  ;;  %1513 = vmatmul.mubr.f32.gmra.mrb[26].mxu1 %v6092_v14  ;;  %v656_v6 = vmul.f32 %v6098_v41, %v5505_v9  ;;  %v658_v59 = vmul.f32 %v6098_v41, %v5529_v13 }
 0x496   : > { %v6111_v12 = vpop.eup %4553  ;;  %1617 = vmatprep.mubr.f32.mxu0 %v6108_v11  ;;  %v4339_v4 = vpack.i.bf16 %v654_v44, %v653_v7  ;;  %v673_v44 = vmul.f32 %v6057_v31, %v5531_v8 }
 0x497   : > { %v6114_v22 = vpop.eup %4555  ;;  %1618 = vmatmul.mubr.f32.gmra.mrb[34].mxu0 %v6100_v37  ;;  %v6117_v51 = vpop.permute.xlu1 %637  ;;  %v4359_v7 = vpack.i.bf16 %v656_v6, %v655_v55  ;;  %v675_v6 = vmul.f32 %v6057_v31, %v5555_v5 }
 0x498   : > { %v6123_v32 = vpop.eup %4557  ;;  %1517 = vmatprep.mubr.f32.mxu1 %v6114_v22  ;;  %4340 = vrot.lane.b32.xlu0 %v4339_v4, %s4694_s22  ;;  %v685_v21 = vmul.f32 %v6117_v51, %v5481_v2  ;;  %v686_v48 = vmul.f32 %v6117_v51, %v5477_v16  ;;  %v687_v18 = vmul.f32 %v6117_v51, %v5507_v10 }
 0x499   : > { %v6131_v24 = vpop.eup %4559  ;;  %1518 = vmatmul.mubr.f32.gmra.mrb[28].mxu1 %v6111_v12  ;;  %v688_v56 = vmul.f32 %v6117_v51, %v5505_v9  ;;  %v674_v4 = vmul.f32 %v6057_v31, %v5529_v13  ;;  %v689_v36 = vmul.f32 %v6117_v51, %v5531_v8 }
 0x49a   : > { %v6134_v49 = vpop.eup %4561  ;;  %1622 = vmatprep.mubr.f32.mxu0 %v6131_v24  ;;  %v4344_v33 = vpack.i.bf16 %v686_v48, %v685_v21  ;;  %v706_v21 = vmul.f32 %v6079_v47, %v5529_v13 }
 0x49b   : > { %v6141_v19 = vpop.eup %4563  ;;  %1623 = vmatmul.mubr.f32.gmra.mrb[36].mxu0 %v6123_v32  ;;  %v4364_v42 = vpack.i.bf16 %v688_v56, %v687_v18  ;;  %v4369_v48 = vpack.i.bf16 %v674_v4, %v673_v44  ;;  %v6189_v18 = vpop.permute.xlu0 %635  ;;  %v708_v44 = vmul.f32 %v6079_v47, %v5553_v1 }
 0x49c   : > { %v6148_v58 = vpop.eup %4565  ;;  %1522 = vmatprep.mubr.f32.mxu1 %v6141_v19  ;;  %4345 = vrot.lane.b32.xlu1 %v4344_v33, %s4694_s22  ;;  %v657_v33 = vmul.f32 %v6098_v41, %v5531_v8 }
 0x49d   : > { %v6152_v53 = vpop.eup %4567  ;;  %1523 = vmatmul.mubr.f32.gmra.mrb[30].mxu1 %v6134_v49  ;;  %4350 = vrot.lane.b32.xlu0 %v4349_v20, %s4694_s22  ;;  %v690_v20 = vmul.f32 %v6117_v51, %v5529_v13 }
 0x49e   : > { %1627 = vmatprep.mubr.f32.mxu0 %v6152_v53  ;;  %v4379_v55 = vpack.i.bf16 %v658_v59, %v657_v33  ;;  %v692_v33 = vmul.f32 %v6117_v51, %v5553_v1  ;;  %v677_v59 = vmul.f32 %v6189_v18, %v5481_v2 }
 0x49f   : > { %1628 = vmatmul.mubr.f32.gmra.mrb[38].mxu0 %v6148_v58  ;;  %v4384_v56 = vpack.i.bf16 %v690_v20, %v689_v36 }
 0x4a0   : > { %2099 = vmatprep.mubr.f32.mxu0 %v6006_v50  ;;  %4355 = vrot.lane.b32.xlu1 %v4354_v40, %s4694_s22  ;;  %v4374_v50 = vpack.i.bf16 %v706_v21, %v705_v46  ;;  %v676_v40 = vmul.f32 %v6057_v31, %v5553_v1  ;;  %v660_v31 = vmul.f32 %v6098_v41, %v5553_v1  ;;  %v644_v46 = vpop.permute.xlu1 %643 }
 0x4a1   : > { %4360 = vrot.lane.b32.xlu0 %v4359_v7, %s4694_s22  ;;  %v707_v7 = vmul.f32 %v6079_v47, %v5555_v5  ;;  %v709_v20 = vmul.f32 %v644_v46, %v5481_v2 }
 0x4a2   : > { %v4389_v4 = vpack.i.bf16 %v676_v40, %v675_v6 }
 0x4a3   : > { %v4394_v21 = vpack.i.bf16 %v708_v44, %v707_v7 }
 0x4a4   : > { %4365 = vrot.lane.b32.xlu1 %v4364_v42, %s4694_s22  ;;  %v659_v42 = vmul.f32 %v6098_v41, %v5555_v5  ;;  %v632_v41 = vpop.permute.xlu0 %631  ;;  %v640_v6 = vpop.permute.xlu1 %639 }
 0x4a5   : > { %4370 = vrot.lane.b32.xlu0 %v4369_v48, %s4694_s22  ;;  %v691_v48 = vmul.f32 %v6117_v51, %v5555_v5  ;;  %v661_v51 = vmul.f32 %v632_v41, %v5481_v2  ;;  %v693_v44 = vmul.f32 %v640_v6, %v5481_v2  ;;  %v663_v2 = vmul.f32 %v632_v41, %v5507_v10 }
 0x4a6   : > { %v4399_v47 = vpack.i.bf16 %v660_v31, %v659_v42  ;;  %v679_v31 = vmul.f32 %v6189_v18, %v5507_v10 }
 0x4a7   : > { %v4404_v36 = vpack.i.bf16 %v692_v33, %v691_v48  ;;  %v711_v33 = vmul.f32 %v644_v46, %v5507_v10 }
 0x4a8   : > { %4375 = vrot.lane.b32.xlu1 %v4374_v50, %s4694_s22  ;;  %v678_v50 = vmul.f32 %v6189_v18, %v5477_v16 }
 0x4a9   : > { %4380 = vrot.lane.b32.xlu0 %v4379_v55, %s4694_s22  ;;  %v710_v55 = vmul.f32 %v644_v46, %v5477_v16 }
 0x4aa   : > { %v4409_v40 = vpack.i.bf16 %v678_v50, %v677_v59 }
 0x4ab   : > { %v4414_v7 = vpack.i.bf16 %v710_v55, %v709_v20  ;;  %v696_v20 = vmul.f32 %v640_v6, %v5505_v9 }
 0x4ac   : > { %4385 = vrot.lane.b32.xlu1 %v4384_v56, %s4694_s22  ;;  %v662_v56 = vmul.f32 %v632_v41, %v5477_v16 }
 0x4ad   : > { %4390 = vrot.lane.b32.xlu0 %v4389_v4, %s4694_s22  ;;  %v694_v4 = vmul.f32 %v640_v6, %v5477_v16  ;;  %v664_v16 = vmul.f32 %v632_v41, %v5505_v9 }
 0x4ae   : > { %v4419_v42 = vpack.i.bf16 %v662_v56, %v661_v51  ;;  %v682_v51 = vmul.f32 %v6189_v18, %v5529_v13 }
 0x4af   : > { %v4424_v48 = vpack.i.bf16 %v694_v4, %v693_v44  ;;  %v4439_v55 = vpack.i.bf16 %v664_v16, %v663_v2  ;;  %v714_v44 = vmul.f32 %v644_v46, %v5529_v13  ;;  %v715_v2 = vmul.f32 %v644_v46, %v5555_v5 }
 0x4b0   : > { %4395 = vrot.lane.b32.xlu1 %v4394_v21, %s4694_s22  ;;  %v680_v21 = vmul.f32 %v6189_v18, %v5505_v9  ;;  %v716_v16 = vmul.f32 %v644_v46, %v5553_v1 }
 0x4b1   : > { %4400 = vrot.lane.b32.xlu0 %v4399_v47, %s4694_s22  ;;  %v712_v47 = vmul.f32 %v644_v46, %v5505_v9  ;;  %v666_v9 = vmul.f32 %v632_v41, %v5529_v13 }
 0x4b2   : > { %v4429_v59 = vpack.i.bf16 %v680_v21, %v679_v31  ;;  %v697_v31 = vmul.f32 %v640_v6, %v5531_v8  ;;  %v698_v21 = vmul.f32 %v640_v6, %v5529_v13  ;;  %v668_v13 = vmul.f32 %v632_v41, %v5553_v1 }
 0x4b3   : > { %v4434_v50 = vpack.i.bf16 %v712_v47, %v711_v33  ;;  %v683_v33 = vmul.f32 %v6189_v18, %v5555_v5  ;;  %v684_v47 = vmul.f32 %v6189_v18, %v5553_v1 }
 0x4b4   : > { %4405 = vrot.lane.b32.xlu1 %v4404_v36, %s4694_s22  ;;  %v695_v36 = vmul.f32 %v640_v6, %v5507_v10  ;;  %v665_v10 = vmul.f32 %v632_v41, %v5531_v8 }
 0x4b5   : > { %4410 = vrot.lane.b32.xlu0 %v4409_v40, %s4694_s22  ;;  %v681_v40 = vmul.f32 %v6189_v18, %v5531_v8  ;;  %v699_v18 = vmul.f32 %v640_v6, %v5555_v5 }
 0x4b6   : > { %v4444_v56 = vpack.i.bf16 %v696_v20, %v695_v36  ;;  %v4474_v36 = vpack.i.bf16 %v716_v16, %v715_v2  ;;  %v700_v20 = vmul.f32 %v640_v6, %v5553_v1 }
 0x4b7   : > { %v4449_v4 = vpack.i.bf16 %v682_v51, %v681_v40 }
 0x4b8   : > { %4415 = vrot.lane.b32.xlu1 %v4414_v7, %s4694_s22  ;;  %v713_v7 = vmul.f32 %v644_v46, %v5531_v8  ;;  %v667_v8 = vmul.f32 %v632_v41, %v5555_v5  ;;  %v4484_v46 = vpack.i.bf16 %v700_v20, %v699_v18 }
 0x4b9   : > { %4420 = vrot.lane.b32.xlu0 %v4419_v42, %s4694_s22 }
 0x4ba   : > { %v4454_v42 = vpack.i.bf16 %v714_v44, %v713_v7 }
 0x4bc   : > { %4425 = vrot.lane.b32.xlu1 %v4424_v48, %s4694_s22  ;;  %v4459_v48 = vpack.i.bf16 %v666_v9, %v665_v10 }
 0x4bd   : > { %4430 = vrot.lane.b32.xlu0 %v4429_v59, %s4694_s22  ;;  %v4464_v59 = vpack.i.bf16 %v698_v21, %v697_v31 }
 0x4c0   : > { %4435 = vrot.lane.b32.xlu1 %v4434_v50, %s4694_s22  ;;  %v4469_v50 = vpack.i.bf16 %v684_v47, %v683_v33 }
 0x4c1   : > { %4440 = vrot.lane.b32.xlu0 %v4439_v55, %s4694_s22  ;;  %v4479_v55 = vpack.i.bf16 %v668_v13, %v667_v8 }
 0x4c4   : > { %4445 = vrot.lane.b32.xlu1 %v4444_v56, %s4694_s22 }
 0x4c5   : > { %4450 = vrot.lane.b32.xlu0 %v4449_v4, %s4694_s22 }
 0x4c8   : > { %4455 = vrot.lane.b32.xlu1 %v4454_v42, %s4694_s22 }
 0x4c9   : > { %4460 = vrot.lane.b32.xlu0 %v4459_v48, %s4694_s22 }
 0x4cc   : > { %4465 = vrot.lane.b32.xlu1 %v4464_v59, %s4694_s22 }
 0x4cd   : > { %4470 = vrot.lane.b32.xlu0 %v4469_v50, %s4694_s22 }
 0x4d0   : > { %4475 = vrot.lane.b32.xlu1 %v4474_v36, %s4694_s22 }
 0x4d1   : > { %4480 = vrot.lane.b32.xlu0 %v4479_v55, %s4694_s22 }
 0x4d4   : > { %4485 = vrot.lane.b32.xlu1 %v4484_v46, %s4694_s22 }
 0x503   : > { %v4331_v40 = vpop.permute.xlu0 %4330 }
 0x504   : > { %v4333_v51 = vunpack.i.h.bf16 %v4331_v40  ;;  %v4332_v41 = vunpack.i.l.bf16 %v4331_v40 }
 0x506   : > { %v3960_v56 = vpack.c.bf16 %v4333_v51, %v4332_v41  ;;  %v4336_v7 = vpop.permute.xlu1 %4335 }
 0x507   : > { %v4338_v44 = vunpack.i.h.bf16 %v4336_v7  ;;  %v4337_v4 = vunpack.i.l.bf16 %v4336_v7 }
 0x508   : > { %3961 = vmatprep.subr.bf16.mxu0 %v3960_v56 }
 0x509   : > { %v3992_v10 = vpack.c.bf16 %v4338_v44, %v4337_v4 }
 0x50a   : > { %v4341_v5 = vpop.permute.xlu0 %4340 }
 0x50b   : > { %v4343_v9 = vunpack.i.h.bf16 %v4341_v5  ;;  %v4342_v1 = vunpack.i.l.bf16 %v4341_v5  ;;  %3993 = vmatprep.subr.bf16.mxu1 %v3992_v10 }
 0x50d   : > { %v3962_v6 = vpack.c.bf16 %v4343_v9, %v4342_v1 }
 0x50f   : > { %v4351_v42 = vpop.permute.xlu0 %4350  ;;  %3963 = vmatpush3.bf16.msra.mxu0 %v3962_v6  ;;  %v6264_v6 = vpop.permute.xlu1 %4345 }
 0x510   : > { %v4353_v31 = vunpack.i.h.bf16 %v4351_v42  ;;  %v4352_v21 = vunpack.i.l.bf16 %v4351_v42 }
 0x512   : > { %v3964_v48 = vpack.c.bf16 %v4353_v31, %v4352_v21 }
 0x513   : > { %v4361_v33 = vpop.permute.xlu0 %4360 }
 0x514   : > { %v4363_v47 = vunpack.i.h.bf16 %v4361_v33  ;;  %v4362_v59 = vunpack.i.l.bf16 %v4361_v33  ;;  %3965 = vmatprep.subr.bf16.mxu0 %v3964_v48 }
 0x516   : > { %v3966_v2 = vpack.c.bf16 %v4363_v47, %v4362_v59 }
 0x517   : > { %v4371_v16 = vpop.permute.xlu0 %4370 }
 0x518   : > { %v4373_v50 = vunpack.i.h.bf16 %v4371_v16  ;;  %v4372_v8 = vunpack.i.l.bf16 %v4371_v16  ;;  %3967 = vmatpush3.bf16.msra.mxu0 %v3966_v2  ;;  %v6266_v2 = vpop.permute.xlu1 %4355 }
 0x51a   : > { %v3968_v13 = vpack.c.bf16 %v4373_v50, %v4372_v8 }
 0x51b   : > { %v4381_v36 = vpop.permute.xlu0 %4380 }
 0x51c   : > { %v4383_v18 = vunpack.i.h.bf16 %v4381_v36  ;;  %v4382_v20 = vunpack.i.l.bf16 %v4381_v36  ;;  %3969 = vmatprep.subr.bf16.mxu0 %v3968_v13 }
 0x51e   : > { %v3970_v55 = vpack.c.bf16 %v4383_v18, %v4382_v20  ;;  %v6268_v18 = vpop.permute.xlu1 %4365 }
 0x51f   : > { %v4391_v46 = vpop.permute.xlu0 %4390 }
 0x520   : > { %v4393_v40 = vunpack.i.h.bf16 %v4391_v46  ;;  %v4392_v51 = vunpack.i.l.bf16 %v4391_v46  ;;  %3971 = vmatpush3.bf16.msra.mxu0 %v3970_v55 }
 0x522   : > { %v3972_v41 = vpack.c.bf16 %v4393_v40, %v4392_v51 }
 0x523   : > { %v4401_v56 = vpop.permute.xlu0 %4400 }
 0x524   : > { %v4403_v7 = vunpack.i.h.bf16 %v4401_v56  ;;  %v4402_v44 = vunpack.i.l.bf16 %v4401_v56  ;;  %3973 = vmatprep.subr.bf16.mxu0 %v3972_v41 }
 0x526   : > { %v3974_v4 = vpack.c.bf16 %v4403_v7, %v4402_v44  ;;  %v6270_v7 = vpop.permute.xlu1 %4375 }
 0x527   : > { %v4411_v10 = vpop.permute.xlu0 %4410 }
 0x528   : > { %v4413_v5 = vunpack.i.h.bf16 %v4411_v10  ;;  %v4412_v9 = vunpack.i.l.bf16 %v4411_v10  ;;  %3975 = vmatpush3.bf16.msra.mxu0 %v3974_v4 }
 0x52a   : > { %v3976_v1 = vpack.c.bf16 %v4413_v5, %v4412_v9 }
 0x52b   : > { %v4421_v42 = vpop.permute.xlu0 %4420 }
 0x52c   : > { %v4423_v31 = vunpack.i.h.bf16 %v4421_v42  ;;  %v4422_v21 = vunpack.i.l.bf16 %v4421_v42  ;;  %3977 = vmatprep.subr.bf16.mxu0 %v3976_v1  ;;  %v6272_v1 = vpop.permute.xlu1 %4385 }
 0x52e   : > { %v3978_v48 = vpack.c.bf16 %v4423_v31, %v4422_v21 }
 0x52f   : > { %v4431_v33 = vpop.permute.xlu0 %4430 }
 0x530   : > { %v4433_v47 = vunpack.i.h.bf16 %v4431_v33  ;;  %v4432_v59 = vunpack.i.l.bf16 %v4431_v33  ;;  %3979 = vmatpush3.bf16.msra.mxu0 %v3978_v48  ;;  %v6274_v33 = vpop.permute.xlu1 %4395 }
 0x532   : > { %v3980_v16 = vpack.c.bf16 %v4433_v47, %v4432_v59 }
 0x533   : > { %v4441_v50 = vpop.permute.xlu0 %4440 }
 0x534   : > { %v4443_v8 = vunpack.i.h.bf16 %v4441_v50  ;;  %v4442_v13 = vunpack.i.l.bf16 %v4441_v50  ;;  %3981 = vmatprep.subr.bf16.mxu0 %v3980_v16  ;;  %v6278_v47 = vpop.permute.xlu1 %4405 }
 0x536   : > { %v3982_v36 = vpack.c.bf16 %v4443_v8, %v4442_v13 }
 0x537   : > { %v4451_v20 = vpop.permute.xlu0 %4450 }
 0x538   : > { %v4453_v55 = vunpack.i.h.bf16 %v4451_v20  ;;  %v4452_v46 = vunpack.i.l.bf16 %v4451_v20  ;;  %3983 = vmatpush3.bf16.msra.mxu0 %v3982_v36  ;;  %v6284_v16 = vpop.permute.xlu1 %4415 }
 0x53a   : > { %v3984_v40 = vpack.c.bf16 %v4453_v55, %v4452_v46 }
 0x53b   : > { %v4461_v51 = vpop.permute.xlu0 %4460 }
 0x53c   : > { %v4463_v41 = vunpack.i.h.bf16 %v4461_v51  ;;  %v4462_v56 = vunpack.i.l.bf16 %v4461_v51  ;;  %3985 = vmatprep.subr.bf16.mxu0 %v3984_v40 }
 0x53e   : > { %v3986_v44 = vpack.c.bf16 %v4463_v41, %v4462_v56 }
 0x53f   : > { %v4471_v4 = vpop.permute.xlu0 %4470 }
 0x540   : > { %v4473_v10 = vunpack.i.h.bf16 %v4471_v4  ;;  %v4472_v5 = vunpack.i.l.bf16 %v4471_v4  ;;  %3987 = vmatpush3.bf16.msra.mxu0 %v3986_v44 }
 0x542   : > { %v3988_v9 = vpack.c.bf16 %v4473_v10, %v4472_v5 }
 0x543   : > { %v4481_v42 = vpop.permute.xlu0 %4480 }
 0x544   : > { %v4483_v31 = vunpack.i.h.bf16 %v4481_v42  ;;  %v4482_v21 = vunpack.i.l.bf16 %v4481_v42  ;;  %3989 = vmatprep.subr.bf16.mxu0 %v3988_v9 }
 0x546   : > { %v3990_v48 = vpack.c.bf16 %v4483_v31, %v4482_v21 }
 0x548   : > { %3991 = vmatpush3.bf16.msra.mxu0 %v3990_v48  ;;  %v4347_v48 = vunpack.i.l.bf16 %v6264_v6 }
 0x54b   : > { %2100 = vmatmul.mubr.f32.vlgmr.msra.gmra.mrb[40].mxu0 %v6004_v26 }
 0x54c   : > { %2104 = vmatprep.mubr.f32.mxu0 %v6022_v30 }
 0x54f   : > { %2105 = vmatmul.mubr.f32.gmra.mrb[42].mxu0 %v6018_v29 }
 0x550   : > { %2109 = vmatprep.mubr.f32.mxu0 %v6038_v35 }
 0x553   : > { %2110 = vmatmul.mubr.f32.gmra.mrb[44].mxu0 %v6035_v38  ;;  %v6288_v38 = vpop.permute.xlu1 %4425 }
 0x554   : > { %v3381_v59 = vpop.f32.mrb[16].mxu1  ;;  %2114 = vmatprep.mubr.f32.mxu0 %v6054_v39 }
 0x555   : > { %v3382_v50 = vpop.f32.mrb[17].mxu1 }
 0x556   : > { %v3437_v8 = vpop.f32.mrb[24].mxu0  ;;  %v3383_v13 = vadd.f32 %v3382_v50, %v3381_v59 }
 0x557   : > { %v3438_v36 = vpop.f32.mrb[25].mxu0  ;;  %2115 = vmatmul.mubr.f32.gmra.mrb[46].mxu0 %v6051_v52  ;;  %v6294_v10 = vpop.permute.xlu1 %4435 }
 0x558   : > { %v3439_v26 = vadd.f32 %v3438_v36, %v3437_v8  ;;  %v3384_v30 = vpop.f32.mrb[18].mxu1  ;;  %2119 = vmatprep.mubr.f32.mxu0 %v6076_v27  ;;  %v4358_v36 = vunpack.i.h.bf16 %v6266_v2 }
 0x559   : > { %v3385_v29 = vpop.f32.mrb[19].mxu1 }
 0x55a   : > { %v1595_v20 = vadd.f32 %v3439_v26, %v3383_v13  ;;  %v3440_v35 = vpop.f32.mrb[26].mxu0  ;;  %v3386_v55 = vadd.f32 %v3385_v29, %v3384_v30  ;;  %v4357_v26 = vunpack.i.l.bf16 %v6266_v2 }
 0x55b   : > { %v3441_v46 = vpop.f32.mrb[27].mxu0  ;;  %2120 = vmatmul.mubr.f32.gmra.mrb[48].mxu0 %v6073_v43 }
 0x55c   : > { %4569 = vrcp.f32 %v1595_v20  ;;  %v3442_v39 = vadd.f32 %v3441_v46, %v3440_v35  ;;  %v3387_v40 = vpop.f32.mrb[20].mxu1  ;;  %2124 = vmatprep.mubr.f32.mxu0 %v6095_v57  ;;  %v4367_v46 = vunpack.i.l.bf16 %v6268_v18 }
 0x55d   : > { %v3388_v51 = vpop.f32.mrb[21].mxu1 }
 0x55e   : > { %v1600_v52 = vadd.f32 %v3442_v39, %v3386_v55  ;;  %v3443_v41 = vpop.f32.mrb[28].mxu0  ;;  %v3389_v56 = vadd.f32 %v3388_v51, %v3387_v40  ;;  %v4368_v55 = vunpack.i.h.bf16 %v6268_v18  ;;  %v3996_v51 = vpack.c.bf16 %v4358_v36, %v4357_v26 }
 0x55f   : > { %v3444_v44 = vpop.f32.mrb[29].mxu0  ;;  %2125 = vmatmul.mubr.f32.gmra.mrb[50].mxu0 %v6092_v14  ;;  %v4348_v14 = vunpack.i.h.bf16 %v6264_v6  ;;  %v4407_v36 = vunpack.i.l.bf16 %v6278_v47 }
 0x560   : > { %4571 = vrcp.f32 %v1600_v52  ;;  %v3445_v27 = vadd.f32 %v3444_v44, %v3443_v41  ;;  %v3390_v4 = vpop.f32.mrb[22].mxu1  ;;  %2129 = vmatprep.mubr.f32.mxu0 %v6114_v22  ;;  %v4378_v52 = vunpack.i.h.bf16 %v6270_v7  ;;  %v4377_v41 = vunpack.i.l.bf16 %v6270_v7 }
 0x561   : > { %v3391_v43 = vpop.f32.mrb[23].mxu1  ;;  %v3994_v6 = vpack.c.bf16 %v4348_v14, %v4347_v48  ;;  %v4397_v14 = vunpack.i.l.bf16 %v6274_v33 }
 0x562   : > { %v1605_v5 = vadd.f32 %v3445_v27, %v3389_v56  ;;  %v3446_v9 = vpop.f32.mrb[30].mxu0  ;;  %v3392_v42 = vadd.f32 %v3391_v43, %v3390_v4  ;;  %v4388_v27 = vunpack.i.h.bf16 %v6272_v1  ;;  %v4387_v4 = vunpack.i.l.bf16 %v6272_v1 }
 0x563   : > { %v3447_v31 = vpop.f32.mrb[31].mxu0  ;;  %2130 = vmatmul.mubr.f32.gmra.mrb[52].mxu0 %v6111_v12  ;;  %v6302_v12 = vpop.permute.xlu1 %4445 }
 0x564   : > { %4573 = vrcp.f32 %v1605_v5  ;;  %v3448_v57 = vadd.f32 %v3447_v31, %v3446_v9  ;;  %v3393_v21 = vpop.f32.mrb[24].mxu1  ;;  %2134 = vmatprep.mubr.f32.mxu0 %v6141_v19  ;;  %v3998_v9 = vpack.c.bf16 %v4368_v55, %v4367_v46 }
 0x565   : > { %v3394_v22 = vpop.f32.mrb[25].mxu1 }
 0x566   : > { %v4570_v59 = vpop.eup %4569  ;;  %v1610_v50 = vadd.f32 %v3448_v57, %v3392_v42  ;;  %v3449_v8 = vpop.f32.mrb[32].mxu0  ;;  %v3395_v13 = vadd.f32 %v3394_v22, %v3393_v21  ;;  %v4000_v57 = vpack.c.bf16 %v4378_v52, %v4377_v41  ;;  %v4398_v21 = vunpack.i.h.bf16 %v6274_v33 }
 0x567   : > { %v3450_v30 = vpop.f32.mrb[33].mxu0  ;;  %3666 = vmatprep.mubr.msk.f32.mxu1 %vm1649_vm2, %v4570_v59  ;;  %2135 = vmatmul.mubr.f32.gmra.mrb[54].mxu0 %v6134_v49  ;;  %v6313_v18 = vpop.permute.xlu1 %4455  ;;  %v4002_v59 = vpack.c.bf16 %v4388_v27, %v4387_v4  ;;  %v4418_v33 = vunpack.i.h.bf16 %v6284_v16  ;;  %v4438_v52 = vunpack.i.h.bf16 %v6294_v10  ;;  %v4447_v27 = vunpack.i.l.bf16 %v6302_v12 }
 0x568   : > { %4575 = vrcp.f32 %v1610_v50  ;;  %v3451_v19 = vadd.f32 %v3450_v30, %v3449_v8  ;;  %v3396_v29 = vpop.f32.mrb[26].mxu1 }
 0x569   : > { %v3397_v20 = vpop.f32.mrb[27].mxu1 }
 0x56a   : > { %v4572_v35 = vpop.eup %4571  ;;  %v1615_v39 = vadd.f32 %v3451_v19, %v3395_v13  ;;  %v3452_v40 = vpop.f32.mrb[34].mxu0  ;;  %v3398_v2 = vadd.f32 %v3397_v20, %v3396_v29  ;;  %v4408_v13 = vunpack.i.h.bf16 %v6278_v47  ;;  %v4004_v29 = vpack.c.bf16 %v4398_v21, %v4397_v14 }
 0x56b   : > { %v3453_v56 = vpop.f32.mrb[35].mxu0  ;;  %3667 = vmatmul.mubr.msk.f32.vlgmr.msra.gmra.mrb[32].mxu1 %vm1649_vm2, %v4572_v35  ;;  %v4466_v20 = vpop.permute.xlu1 %4465  ;;  %v4428_v47 = vunpack.i.h.bf16 %v6288_v38 }
 0x56c   : > { %4577 = vrcp.f32 %v1615_v39  ;;  %v3454_v49 = vadd.f32 %v3453_v56, %v3452_v40  ;;  %3995 = vmatpush3.bf16.msra.mxu1 %v3994_v6  ;;  %v3399_v44 = vpop.f32.mrb[28].mxu1  ;;  %v4417_v6 = vunpack.i.l.bf16 %v6284_v16  ;;  %v4006_v39 = vpack.c.bf16 %v4408_v13, %v4407_v36 }
 0x56d   : > { %3997 = vmatprep.subr.bf16.mxu1 %v3996_v51  ;;  %v3400_v43 = vpop.f32.mrb[29].mxu1  ;;  %v4427_v40 = vunpack.i.l.bf16 %v6288_v38  ;;  %v4437_v16 = vunpack.i.l.bf16 %v6294_v10  ;;  %v4458_v38 = vunpack.i.h.bf16 %v6313_v18 }
 0x56e   : > { %v4574_v5 = vpop.eup %4573  ;;  %v1620_v42 = vadd.f32 %v3454_v49, %v3398_v2  ;;  %v3455_v31 = vpop.f32.mrb[36].mxu0  ;;  %v3401_v7 = vadd.f32 %v3400_v43, %v3399_v44  ;;  %v4008_v51 = vpack.c.bf16 %v4418_v33, %v4417_v6  ;;  %v4448_v44 = vunpack.i.h.bf16 %v6302_v12 }
 0x56f   : > { %v3456_v48 = vpop.f32.mrb[37].mxu0  ;;  %3669 = vmatprep.mubr.msk.f32.mxu1 %vm1649_vm2, %v4574_v5  ;;  %v4476_v41 = vpop.permute.xlu1 %4475  ;;  %v4010_v49 = vpack.c.bf16 %v4428_v47, %v4427_v40  ;;  %v4012_v4 = vpack.c.bf16 %v4438_v52, %v4437_v16  ;;  %v4457_v43 = vunpack.i.l.bf16 %v6313_v18 }
 0x570   : > { %4579 = vrcp.f32 %v1620_v42  ;;  %v3457_v22 = vadd.f32 %v3456_v48, %v3455_v31  ;;  %3999 = vmatpush3.bf16.msra.mxu1 %v3998_v9  ;;  %v3402_v1 = vpop.f32.mrb[30].mxu1  ;;  %v4014_v5 = vpack.c.bf16 %v4448_v44, %v4447_v27  ;;  %v4468_v9 = vunpack.i.h.bf16 %v4466_v20 }
 0x571   : > { %4001 = vmatprep.subr.bf16.mxu1 %v4000_v57  ;;  %v3403_v50 = vpop.f32.mrb[31].mxu1  ;;  %v4467_v42 = vunpack.i.l.bf16 %v4466_v20  ;;  %v4016_v31 = vpack.c.bf16 %v4458_v38, %v4457_v43  ;;  %v4477_v57 = vunpack.i.l.bf16 %v4476_v41 }
 0x572   : > { %v4576_v8 = vpop.eup %4575  ;;  %v1625_v26 = vadd.f32 %v3457_v22, %v3401_v7  ;;  %v3458_v30 = vpop.f32.mrb[38].mxu0  ;;  %v3404_v19 = vadd.f32 %v3403_v50, %v3402_v1  ;;  %v4478_v7 = vunpack.i.h.bf16 %v4476_v41 }
 0x573   : > { %v3459_v35 = vpop.f32.mrb[39].mxu0  ;;  %3670 = vmatmul.mubr.msk.f32.gmra.mrb[34].mxu1 %vm1649_vm2, %v4576_v8  ;;  %v4486_v21 = vpop.permute.xlu1 %4485  ;;  %v4018_v14 = vpack.c.bf16 %v4468_v9, %v4467_v42 }
 0x574   : > { %4581 = vrcp.f32 %v1625_v26  ;;  %v3460_v55 = vadd.f32 %v3459_v35, %v3458_v30  ;;  %4003 = vmatpush3.bf16.msra.mxu1 %v4002_v59  ;;  %v4488_v48 = vunpack.i.h.bf16 %v4486_v21  ;;  %v4487_v18 = vunpack.i.l.bf16 %v4486_v21 }
 0x575   : > { %4005 = vmatprep.subr.bf16.mxu1 %v4004_v29  ;;  %v4020_v22 = vpack.c.bf16 %v4478_v7, %v4477_v57 }
 0x576   : > { %v4578_v46 = vpop.eup %4577  ;;  %v1630_v2 = vadd.f32 %v3460_v55, %v3404_v19  ;;  %v4022_v1 = vpack.c.bf16 %v4488_v48, %v4487_v18 }
 0x577   : > { %3672 = vmatprep.mubr.msk.f32.mxu1 %vm1649_vm2, %v4578_v46 }
 0x578   : > { %4583 = vrcp.f32 %v1630_v2  ;;  %4007 = vmatpush3.bf16.msra.mxu1 %v4006_v39 }
 0x579   : > { %4009 = vmatprep.subr.bf16.mxu1 %v4008_v51 }
 0x57a   : > { %v4580_v56 = vpop.eup %4579 }
 0x57b   : > { %3673 = vmatmul.mubr.msk.f32.gmra.mrb[36].mxu1 %vm1649_vm2, %v4580_v56 }
 0x57c   : > { %4011 = vmatpush3.bf16.msra.mxu1 %v4010_v49 }
 0x57d   : > { %4013 = vmatprep.subr.bf16.mxu1 %v4012_v4 }
 0x57e   : > { %v4582_v10 = vpop.eup %4581 }
 0x57f   : > { %3675 = vmatprep.mubr.msk.f32.mxu1 %vm1649_vm2, %v4582_v10 }
 0x580   : > { %4015 = vmatpush3.bf16.msra.mxu1 %v4014_v5 }
 0x581   : > { %4017 = vmatprep.subr.bf16.mxu1 %v4016_v31 }
 0x582   : > { %v4584_v12 = vpop.eup %4583 }
 0x583   : > { %3676 = vmatmul.mubr.msk.f32.gmra.mrb[38].mxu1 %vm1649_vm2, %v4584_v12 }
 0x584   : > { %4019 = vmatpush3.bf16.msra.mxu1 %v4018_v14  ;;  %2204 = vmatprep.mubr.f32.mxu1 %v6014_v25  ;;  %v2255_v25 = vld [vmem:[%s2253_s25 + $0x8] sm:$0xff] }
 0x585   : > { %4021 = vmatprep.subr.bf16.mxu1 %v4020_v22 }
 0x588   : > { %4023 = vmatpush3.bf16.msra.mxu1 %v4022_v1 }
 0x58b   : > { %2205 = vmatmul.mubr.f32.vlgmr.msra.gmra.mrb[40].mxu1 %v6008_v45  ;;  %v2254_v45 = vld [vmem:[%s2253_s25] sm:$0xff] }
 0x58c   : > { %2209 = vmatprep.mubr.f32.mxu1 %v6031_v17  ;;  %v2256_v17 = vld [vmem:[%s2253_s25 + $0x10] sm:$0xff] }
 0x58f   : > { %2210 = vmatmul.mubr.f32.gmra.mrb[42].mxu1 %v6025_v0  ;;  %v4024_v0 = vpack.c.bf16 %v2255_v25, %v2254_v45 }
 0x590   : > { %2214 = vmatprep.mubr.f32.mxu1 %v6047_v34 }
 0x591   : > { %4025 = vmatprep.subr.bf16.mxu0 %v4024_v0 }
 0x592   : > { %4027 = vmatpush3.bf16.msra.mxu0 %v4024_v0 }
 0x593   : > { %2215 = vmatmul.mubr.f32.gmra.mrb[44].mxu1 %v6041_v23  ;;  %v2257_v23 = vld [vmem:[%s2253_s25 + $0x18] sm:$0xff] }
 0x594   : > { %2219 = vmatprep.mubr.f32.mxu1 %v6065_v54  ;;  %v4028_v34 = vpack.c.bf16 %v2257_v23, %v2256_v17 }
 0x596   : > { %4029 = vmatprep.subr.bf16.mxu0 %v4028_v34 }
 0x597   : > { %2220 = vmatmul.mubr.f32.gmra.mrb[46].mxu1 %v6059_v15  ;;  %4031 = vmatpush3.bf16.msra.mxu0 %v4028_v34 }
 0x598   : > { %2224 = vmatprep.mubr.f32.mxu1 %v6088_v28 }
 0x59b   : > { %2225 = vmatmul.mubr.f32.gmra.mrb[48].mxu1 %v6081_v3 }
 0x59c   : > { %2229 = vmatprep.mubr.f32.mxu1 %v6108_v11 }
 0x59f   : > { %2230 = vmatmul.mubr.f32.gmra.mrb[50].mxu1 %v6100_v37 }
 0x5a0   : > { %2234 = vmatprep.mubr.f32.mxu1 %v6131_v24 }
 0x5a3   : > { %2235 = vmatmul.mubr.f32.gmra.mrb[52].mxu1 %v6123_v32 }
 0x5a4   : > { %2239 = vmatprep.mubr.f32.mxu1 %v6152_v53 }
 0x5a7   : > { %2240 = vmatmul.mubr.f32.gmra.mrb[54].mxu1 %v6148_v58 }
 0x61e   : > { %v3502_v15 = vpop.f32.mrb[40].mxu0 }
 0x61f   : > { %v3503_v54 = vpop.f32.mrb[41].mxu0 }
 0x620   : > { %v3504_v3 = vadd.f32 %v3503_v54, %v3502_v15 }
 0x622   : > { %v3505_v28 = vpop.f32.mrb[42].mxu0 }
 0x623   : > { %v3506_v37 = vpop.f32.mrb[43].mxu0 }
 0x624   : > { %v3507_v11 = vadd.f32 %v3506_v37, %v3505_v28 }
 0x626   : > { %v3508_v32 = vpop.f32.mrb[44].mxu0 }
 0x627   : > { %v3509_v24 = vpop.f32.mrb[45].mxu0 }
 0x628   : > { %v3510_v58 = vadd.f32 %v3509_v24, %v3508_v32 }
 0x62a   : > { %v3511_v53 = vpop.f32.mrb[46].mxu0 }
 0x62b   : > { %v3512_v59 = vpop.f32.mrb[47].mxu0 }
 0x62c   : > { %v3513_v50 = vadd.f32 %v3512_v59, %v3511_v53 }
 0x62e   : > { %v3514_v8 = vpop.f32.mrb[48].mxu0 }
 0x62f   : > { %v3515_v13 = vpop.f32.mrb[49].mxu0 }
 0x630   : > { %v3516_v36 = vadd.f32 %v3515_v13, %v3514_v8  ;;  %v3225_v13 = vld [vmem:[%s2395_s28] ss:$0 sm:$0xff] }
 0x632   : > { %v3517_v26 = vpop.f32.mrb[50].mxu0 }
 0x633   : > { %v3518_v30 = vpop.f32.mrb[51].mxu0 }
 0x634   : > { %v3519_v19 = vadd.f32 %v3518_v30, %v3517_v26 }
 0x636   : > { %v3520_v29 = vpop.f32.mrb[52].mxu0 }
 0x637   : > { %v3521_v33 = vpop.f32.mrb[53].mxu0 }
 0x638   : > { %v3522_v6 = vadd.f32 %v3521_v33, %v3520_v29 }
 0x63a   : > { %v3523_v20 = vpop.f32.mrb[54].mxu0 }
 0x63b   : > { %v3524_v35 = vpop.f32.mrb[55].mxu0 }
 0x63c   : > { %v3525_v55 = vadd.f32 %v3524_v35, %v3523_v20 }
 0x63e   : > { %v3668_v46 = vpop.f32.mrb[32].mxu1 }
 0x63f   : > { %v1740_v39 = vpop.f32.mrb[33].mxu1 }
 0x646   : > { %v3671_v47 = vpop.f32.mrb[34].mxu1 }
 0x647   : > { %v1750_v40 = vpop.f32.mrb[35].mxu1 }
 0x64e   : > { %v3674_v2 = vpop.f32.mrb[36].mxu1 }
 0x64f   : > { %v1760_v51 = vpop.f32.mrb[37].mxu1 }
 0x656   : > { %v3677_v52 = vpop.f32.mrb[38].mxu1 }
 0x657   : > { %v1770_v16 = vpop.f32.mrb[39].mxu1 }
 0x65e   : > { %v3558_v41 = vpop.f32.mrb[40].mxu1 }
 0x65f   : > { %v3559_v56 = vpop.f32.mrb[41].mxu1 }
 0x660   : > { %v3560_v49 = vadd.f32 %v3559_v56, %v3558_v41  ;;  %v6826_v56 = vld [vmem:[#allocation97_spill] sm:$0xff] }
 0x662   : > { %v2207_v44 = vadd.f32 %v3560_v49, %v3504_v3  ;;  %v3561_v27 = vpop.f32.mrb[42].mxu1 }
 0x663   : > { %v3562_v4 = vpop.f32.mrb[43].mxu1 }
 0x664   : > { %v2245_v38 = vmul.f32 %v2207_v44, %v1740_v39  ;;  %v3563_v43 = vadd.f32 %v3562_v4, %v3561_v27  ;;  %v6827_v4 = vld [vmem:[#allocation98_spill] sm:$0xff] }
 0x666   : > { %v2212_v10 = vadd.f32 %v3563_v43, %v3507_v11  ;;  %v3564_v5 = vpop.f32.mrb[44].mxu1  ;;  %3686 = vmatprep.mubr.msk.f32.mxu0 %vm182_vm0, %v2245_v38 }
 0x667   : > { %v3565_v9 = vpop.f32.mrb[45].mxu1 }
 0x668   : > { %v2246_v42 = vmul.f32 %v3668_v46, %v2212_v10  ;;  %v3566_v31 = vadd.f32 %v3565_v9, %v3564_v5  ;;  %v6824_v46 = vld [vmem:[#allocation99_spill] sm:$0xff] }
 0x66a   : > { %v2217_v7 = vadd.f32 %v3566_v31, %v3510_v58  ;;  %v3567_v57 = vpop.f32.mrb[46].mxu1  ;;  %3687 = vmatmul.mubr.msk.f32.vlgmr.msra.gmra.mrb[56].mxu0 %vm182_vm0, %v2246_v42  ;;  %v6828_v31 = vld [vmem:[#allocation95_spill] sm:$0xff] }
 0x66b   : > { %v3568_v21 = vpop.f32.mrb[47].mxu1 }
 0x66c   : > { %v2247_v12 = vmul.f32 %v2217_v7, %v1750_v40  ;;  %v3569_v14 = vadd.f32 %v3568_v21, %v3567_v57  ;;  %v6825_v40 = vld [vmem:[#allocation100_spill] sm:$0xff] }
 0x66d   : > { %v6829_v21 = vld [vmem:[#allocation96_spill] sm:$0xff] }
 0x66e   : > { %v2222_v48 = vadd.f32 %v3569_v14, %v3513_v50  ;;  %v3570_v18 = vpop.f32.mrb[48].mxu1  ;;  %3689 = vmatprep.mubr.msk.f32.mxu0 %vm182_vm0, %v2247_v12 }
 0x66f   : > { %v3571_v22 = vpop.f32.mrb[49].mxu1 }
 0x670   : > { %v2248_v1 = vmul.f32 %v3671_v47, %v2222_v48  ;;  %v3572_v45 = vadd.f32 %v3571_v22, %v3570_v18 }
 0x672   : > { %v2227_v25 = vadd.f32 %v3572_v45, %v3516_v36  ;;  %v3573_v0 = vpop.f32.mrb[50].mxu1  ;;  %3690 = vmatmul.mubr.msk.f32.gmra.mrb[58].mxu0 %vm182_vm0, %v2248_v1  ;;  %v6822_v36 = vld [vmem:[#allocation101_spill] sm:$0xff] }
 0x673   : > { %v3574_v17 = vpop.f32.mrb[51].mxu1 }
 0x674   : > { %v2249_v23 = vmul.f32 %v2227_v25, %v1760_v51  ;;  %v3575_v34 = vadd.f32 %v3574_v17, %v3573_v0 }
 0x676   : > { %v2232_v15 = vadd.f32 %v3575_v34, %v3519_v19  ;;  %v3576_v54 = vpop.f32.mrb[52].mxu1  ;;  %3692 = vmatprep.mubr.msk.f32.mxu0 %vm182_vm0, %v2249_v23  ;;  %v6823_v19 = vld [vmem:[#allocation102_spill] sm:$0xff] }
 0x677   : > { %v3577_v3 = vpop.f32.mrb[53].mxu1 }
 0x678   : > { %v2250_v28 = vmul.f32 %v3674_v2, %v2232_v15  ;;  %v3578_v37 = vadd.f32 %v3577_v3, %v3576_v54 }
 0x67a   : > { %v2237_v11 = vadd.f32 %v3578_v37, %v3522_v6  ;;  %v3579_v32 = vpop.f32.mrb[54].mxu1  ;;  %3693 = vmatmul.mubr.msk.f32.gmra.mrb[60].mxu0 %vm182_vm0, %v2250_v28 }
 0x67b   : > { %v3580_v24 = vpop.f32.mrb[55].mxu1 }
 0x67c   : > { %v2251_v58 = vmul.f32 %v2237_v11, %v1770_v16  ;;  %v3581_v53 = vadd.f32 %v3580_v24, %v3579_v32 }
 0x67e   : > { %v2242_v59 = vadd.f32 %v3581_v53, %v3525_v55  ;;  %3695 = vmatprep.mubr.msk.f32.mxu0 %vm182_vm0, %v2251_v58 }
 0x680   : > { %v2252_v50 = vmul.f32 %v3677_v52, %v2242_v59 }
 0x682   : > { %3696 = vmatmul.mubr.msk.f32.gmra.mrb[62].mxu0 %vm182_vm0, %v2252_v50 }
 0x73d   : > { %v3688_v8 = vpop.f32.mrb[56].mxu0 }
 0x73e   : > { %v2388_v26 = vadd.f32 %v6822_v36, %v3688_v8  ;;  %v2348_v30 = vpop.f32.mrb[57].mxu0 }
 0x73f   : > { %v2387_v29 = vadd.f32 %v6823_v19, %v2348_v30 }
 0x740   : > { %v6369_v33 = vadd.f32 %v3225_v13, %v2388_v26 }
 0x741   : > { %v6371_v6 = vadd.f32 %v3225_v13, %v2387_v29 }
 0x742   : > { %v2418_v20 = vsel %vm182_vm0, %v6369_v33, 0.0 }
 0x743   : > { %2419 = vadd.xlane.f32.xlu1 %v2418_v20  ;;  %v2415_v35 = vsel %vm182_vm0, %v6371_v6, 0.0 }
 0x744   : > { %2416 = vadd.xlane.f32.xlu0 %v2415_v35 }
 0x745   : > { %v3691_v55 = vpop.f32.mrb[58].mxu0 }
 0x746   : > { %v2390_v39 = vadd.f32 %v6824_v46, %v3691_v55  ;;  %v2358_v47 = vpop.f32.mrb[59].mxu0 }
 0x747   : > { %v2389_v2 = vadd.f32 %v6825_v40, %v2358_v47 }
 0x748   : > { %v6379_v51 = vadd.f32 %v3225_v13, %v2390_v39 }
 0x749   : > { %v6381_v52 = vadd.f32 %v3225_v13, %v2389_v2 }
 0x74a   : > { %v2424_v16 = vsel %vm182_vm0, %v6379_v51, 0.0 }
 0x74b   : > { %2425 = vadd.xlane.f32.xlu0 %v2424_v16  ;;  %v2421_v27 = vsel %vm182_vm0, %v6381_v52, 0.0 }
 0x74d   : > { %v3694_v41 = vpop.f32.mrb[60].mxu0 }
 0x74e   : > { %v2392_v49 = vadd.f32 %v6826_v56, %v3694_v41  ;;  %v2368_v44 = vpop.f32.mrb[61].mxu0 }
 0x74f   : > { %v2391_v38 = vadd.f32 %v6827_v4, %v2368_v44  ;;  %2422 = vadd.xlane.f32.xlu0 %v2421_v27  ;;  %v2548_v4 = vld [vmem:[%s2547_s3] sm:$0xff] }
 0x750   : > { %v6389_v43 = vadd.f32 %v3225_v13, %v2392_v49 }
 0x751   : > { %v6391_v10 = vadd.f32 %v3225_v13, %v2391_v38  ;;  %v2549_v38 = vld [vmem:[%s2547_s3 + $0x8] sm:$0xff] }
 0x752   : > { %v2430_v5 = vsel %vm182_vm0, %v6389_v43, 0.0 }
 0x753   : > { %2431 = vadd.xlane.f32.xlu1 %v2430_v5  ;;  %v2427_v9 = vsel %vm182_vm0, %v6391_v10, 0.0  ;;  %v4032_v5 = vpack.c.bf16 %v2549_v38, %v2548_v4 }
 0x754   : > { %2428 = vadd.xlane.f32.xlu0 %v2427_v9  ;;  %v2550_v9 = vld [vmem:[%s2547_s3 + $0x10] sm:$0xff] }
 0x755   : > { %v3697_v42 = vpop.f32.mrb[62].mxu0  ;;  %4033 = vmatprep.subr.bf16.mxu0 %v4032_v5 }
 0x756   : > { %v2394_v7 = vadd.f32 %v6828_v31, %v3697_v42  ;;  %v2378_v57 = vpop.f32.mrb[63].mxu0  ;;  %v2551_v42 = vld [vmem:[%s2547_s3 + $0x18] sm:$0xff]  ;;  %4035 = vmatpush3.bf16.msra.mxu0 %v4032_v5 }
 0x757   : > { %v2393_v12 = vadd.f32 %v6829_v21, %v2378_v57  ;;  %v4036_v31 = vpack.c.bf16 %v2551_v42, %v2550_v9  ;;  %v2764_v57 = vld [vmem:[%s6463_s2 + $0x8] sm:$0xff] }
 0x758   : > { %v6399_v14 = vadd.f32 %v3225_v13, %v2394_v7  ;;  %v2763_v7 = vld [vmem:[%s6463_s2] sm:$0xff] }
 0x759   : > { %v6401_v48 = vadd.f32 %v3225_v13, %v2393_v12  ;;  %4037 = vmatprep.subr.bf16.mxu0 %v4036_v31  ;;  %v4040_v21 = vpack.c.bf16 %v2764_v57, %v2763_v7 }
 0x75a   : > { %v2436_v18 = vsel %vm182_vm0, %v6399_v14, 0.0  ;;  %4039 = vmatpush3.bf16.msra.mxu0 %v4036_v31 }
 0x75b   : > { %2437 = vadd.xlane.f32.xlu1 %v2436_v18  ;;  %v2433_v22 = vsel %vm182_vm0, %v6401_v48, 0.0  ;;  %4041 = vmatprep.subr.bf16.mxu1 %v4040_v21 }
 0x75c   : > { %2434 = vadd.xlane.f32.xlu0 %v2433_v22  ;;  %4043 = vmatpush3.bf16.msra.mxu1 %v4040_v21 }
 0x7d0   : > { %v2420_v1 = vpop.xlane.xlu1 %2419 }
 0x7d1   : > { %v2440_v45 = vmul.f32 0.03125, %v2420_v1  ;;  %v2417_v25 = vpop.xlane.xlu0 %2416 }
 0x7d2   : > { %v2439_v0 = vmul.f32 0.03125, %v2417_v25 }
 0x7d3   : > { %v6408_v17 = vsub.f32 %v6369_v33, %v2440_v45 }
 0x7d4   : > { %v6411_v23 = vsub.f32 %v6371_v6, %v2439_v0 }
 0x7d5   : > { %v2456_v34 = vmul.f32 %v6408_v17, %v6408_v17 }
 0x7d6   : > { %v2455_v15 = vmul.f32 %v6411_v23, %v6411_v23 }
 0x7d7   : > { %v2466_v54 = vsel %vm182_vm0, %v2456_v34, 0.0 }
 0x7d8   : > { %v2426_v3 = vpop.xlane.xlu0 %2425  ;;  %2467 = vadd.xlane.f32.xlu1 %v2466_v54  ;;  %v2463_v28 = vsel %vm182_vm0, %v2455_v15, 0.0 }
 0x7d9   : > { %v2442_v37 = vmul.f32 0.03125, %v2426_v3  ;;  %2464 = vadd.xlane.f32.xlu0 %v2463_v28 }
 0x7db   : > { %v6420_v11 = vsub.f32 %v6379_v51, %v2442_v37  ;;  %v3226_v37 = vld [vmem:[%s2411_s21] ss:$0 sm:$0xff] }
 0x7dc   : > { %v2423_v32 = vpop.xlane.xlu0 %2422 }
 0x7dd   : > { %v2441_v24 = vmul.f32 0.03125, %v2423_v32  ;;  %v2458_v58 = vmul.f32 %v6420_v11, %v6420_v11 }
 0x7df   : > { %v6425_v53 = vsub.f32 %v6381_v52, %v2441_v24  ;;  %v2472_v59 = vsel %vm182_vm0, %v2458_v58, 0.0 }
 0x7e0   : > { %v2432_v50 = vpop.xlane.xlu1 %2431  ;;  %2473 = vadd.xlane.f32.xlu1 %v2472_v59 }
 0x7e1   : > { %v2444_v8 = vmul.f32 0.03125, %v2432_v50  ;;  %v2429_v13 = vpop.xlane.xlu0 %2428  ;;  %v2457_v36 = vmul.f32 %v6425_v53, %v6425_v53 }
 0x7e2   : > { %v2443_v26 = vmul.f32 0.03125, %v2429_v13 }
 0x7e3   : > { %v6431_v30 = vsub.f32 %v6389_v43, %v2444_v8  ;;  %v2469_v19 = vsel %vm182_vm0, %v2457_v36, 0.0  ;;  %v3227_v36 = vld [vmem:[%s2413_s24] ss:$0 sm:$0xff] }
 0x7e4   : > { %v6435_v29 = vsub.f32 %v6391_v10, %v2443_v26  ;;  %2470 = vadd.xlane.f32.xlu0 %v2469_v19 }
 0x7e5   : > { %v2460_v20 = vmul.f32 %v6431_v30, %v6431_v30 }
 0x7e6   : > { %v2459_v35 = vmul.f32 %v6435_v29, %v6435_v29 }
 0x7e7   : > { %v2478_v55 = vsel %vm182_vm0, %v2460_v20, 0.0 }
 0x7e8   : > { %2479 = vadd.xlane.f32.xlu1 %v2478_v55  ;;  %v2438_v46 = vpop.xlane.xlu1 %2437  ;;  %v2475_v39 = vsel %vm182_vm0, %v2459_v35, 0.0 }
 0x7e9   : > { %v2446_v47 = vmul.f32 0.03125, %v2438_v46  ;;  %2476 = vadd.xlane.f32.xlu0 %v2475_v39  ;;  %v2435_v40 = vpop.xlane.xlu0 %2434 }
 0x7ea   : > { %v2445_v2 = vmul.f32 0.03125, %v2435_v40 }
 0x7eb   : > { %v6444_v16 = vsub.f32 %v6399_v14, %v2446_v47 }
 0x7ec   : > { %v6447_v41 = vsub.f32 %v6401_v48, %v2445_v2 }
 0x7ed   : > { %v2462_v56 = vmul.f32 %v6444_v16, %v6444_v16 }
 0x7ee   : > { %v2461_v49 = vmul.f32 %v6447_v41, %v6447_v41 }
 0x7ef   : > { %v2484_v44 = vsel %vm182_vm0, %v2462_v56, 0.0 }
 0x7f0   : > { %2485 = vadd.xlane.f32.xlu1 %v2484_v44  ;;  %v2481_v27 = vsel %vm182_vm0, %v2461_v49, 0.0 }
 0x7f1   : > { %2482 = vadd.xlane.f32.xlu0 %v2481_v27 }
 0x865   : > { %v2468_v12 = vpop.xlane.xlu1 %2467 }
 0x866   : > { %v2488_v18 = vmul.f32 0.03125, %v2468_v12  ;;  %v2465_v22 = vpop.xlane.xlu0 %2464 }
 0x867   : > { %v2487_v1 = vmul.f32 0.03125, %v2465_v22 }
 0x868   : > { %v2496_v45 = vadd.f32 1e-05, %v2488_v18 }
 0x869   : > { %v2495_v25 = vadd.f32 1e-05, %v2487_v1 }
 0x86a   : > { %4585 = vrsqrt.f32 %v2496_v45 }
 0x86b   : > { %4587 = vrsqrt.f32 %v2495_v25 }
 0x86d   : > { %v2474_v0 = vpop.xlane.xlu1 %2473 }
 0x86e   : > { %v2490_v34 = vmul.f32 0.03125, %v2474_v0 }
 0x870   : > { %v2498_v15 = vadd.f32 1e-05, %v2490_v34 }
 0x871   : > { %v2471_v54 = vpop.xlane.xlu0 %2470 }
 0x872   : > { %4589 = vrsqrt.f32 %v2498_v15  ;;  %v2489_v3 = vmul.f32 0.03125, %v2471_v54  ;;  %v2765_v15 = vld [vmem:[%s6463_s2 + $0x10] sm:$0xff]  ;;  %v2766_v54 = vld [vmem:[%s6463_s2 + $0x18] sm:$0xff] }
 0x874   : > { %v4586_v28 = vpop.eup %4585  ;;  %v2497_v32 = vadd.f32 1e-05, %v2489_v3  ;;  %v2767_v3 = vld [vmem:[%s6463_s2 + $0x20] sm:$0xff] }
 0x875   : > { %v4588_v24 = vpop.eup %4587  ;;  %v2512_v58 = vmul.f32 %v4586_v28, %v6408_v17  ;;  %v2480_v59 = vpop.xlane.xlu1 %2479  ;;  %v4044_v28 = vpack.c.bf16 %v2766_v54, %v2765_v15 }
 0x876   : > { %4591 = vrsqrt.f32 %v2497_v32  ;;  %v2492_v50 = vmul.f32 0.03125, %v2480_v59  ;;  %v2477_v8 = vpop.xlane.xlu0 %2476  ;;  %v2511_v13 = vmul.f32 %v4588_v24, %v6411_v23  ;;  %v2768_v32 = vld [vmem:[%s6463_s2 + $0x28] sm:$0xff]  ;;  %v2769_v24 = vld [vmem:[%s6463_s2 + $0x30] sm:$0xff] }
 0x877   : > { %v2526_v26 = vmul.f32 %v3226_v37, %v2512_v58  ;;  %v2491_v19 = vmul.f32 0.03125, %v2477_v8  ;;  %4045 = vmatprep.subr.bf16.mxu1 %v4044_v28  ;;  %v2771_v58 = vld [vmem:[%s6463_s2 + $0x40] sm:$0xff]  ;;  %v2772_v59 = vld [vmem:[%s6463_s2 + $0x48] sm:$0xff]  ;;  %v2773_v8 = vld [vmem:[%s6463_s2 + $0x50] sm:$0xff] }
 0x878   : > { %v2500_v20 = vadd.f32 1e-05, %v2492_v50  ;;  %v2525_v35 = vmul.f32 %v3226_v37, %v2511_v13  ;;  %4047 = vmatpush3.bf16.msra.mxu1 %v4044_v28  ;;  %v4056_v50 = vpack.c.bf16 %v2772_v59, %v2771_v58  ;;  %v2774_v13 = vld [vmem:[%s6463_s2 + $0x58] sm:$0xff] }
 0x879   : > { %v2499_v55 = vadd.f32 1e-05, %v2491_v19  ;;  %v2540_v39 = vadd.f32 %v3227_v36, %v2526_v26  ;;  %v2775_v26 = vld [vmem:[%s6463_s2 + $0x60] sm:$0xff]  ;;  %v2776_v19 = vld [vmem:[%s6463_s2 + $0x68] sm:$0xff] }
 0x87a   : > { %4593 = vrsqrt.f32 %v2500_v20  ;;  %v2539_v46 = vadd.f32 %v3227_v36, %v2525_v35  ;;  %v4064_v20 = vpack.c.bf16 %v2776_v19, %v2775_v26  ;;  %v2777_v35 = vld [vmem:[%s6463_s2 + $0x70] sm:$0xff] }
 0x87b   : > { %4595 = vrsqrt.f32 %v2499_v55  ;;  %v2778_v55 = vld [vmem:[%s6463_s2 + $0x78] sm:$0xff] }
 0x87c   : > { %v4590_v47 = vpop.eup %4589  ;;  %3706 = vmatprep.mubr.msk.f32.mxu0 %vm182_vm0, %v2539_v46  ;;  %v4068_v46 = vpack.c.bf16 %v2778_v55, %v2777_v35 }
 0x87d   : > { %v2486_v17 = vpop.xlane.xlu1 %2485  ;;  %3707 = vmatmul.mubr.msk.f32.vlgmr.msra.gmra.mrb[64].mxu0 %vm182_vm0, %v2540_v39  ;;  %v2514_v23 = vmul.f32 %v4590_v47, %v6420_v11  ;;  %v3228_v39 = vld [vmem:[%s2552_s27] ss:$0 sm:$0xff] }
 0x87e   : > { %v2494_v40 = vmul.f32 0.03125, %v2486_v17  ;;  %v2483_v2 = vpop.xlane.xlu0 %2482 }
 0x87f   : > { %v2493_v56 = vmul.f32 0.03125, %v2483_v2  ;;  %v2528_v38 = vmul.f32 %v3226_v37, %v2514_v23 }
 0x880   : > { %v4592_v49 = vpop.eup %4591  ;;  %v2502_v44 = vadd.f32 1e-05, %v2494_v40 }
 0x881   : > { %v2501_v27 = vadd.f32 1e-05, %v2493_v56  ;;  %v2513_v4 = vmul.f32 %v4592_v49, %v6425_v53  ;;  %v2542_v57 = vadd.f32 %v3227_v36, %v2528_v38 }
 0x882   : > { %4597 = vrsqrt.f32 %v2502_v44 }
 0x883   : > { %4599 = vrsqrt.f32 %v2501_v27  ;;  %v2527_v5 = vmul.f32 %v3226_v37, %v2513_v4 }
 0x884   : > { %v4594_v9 = vpop.eup %4593 }
 0x885   : > { %v4596_v42 = vpop.eup %4595  ;;  %v2541_v31 = vadd.f32 %v3227_v36, %v2527_v5  ;;  %v2516_v7 = vmul.f32 %v4594_v9, %v6431_v30 }
 0x886   : > { %v2515_v21 = vmul.f32 %v4596_v42, %v6435_v29 }
 0x887   : > { %3709 = vmatprep.mubr.msk.f32.mxu0 %vm182_vm0, %v2541_v31  ;;  %v2530_v11 = vmul.f32 %v3226_v37, %v2516_v7 }
 0x888   : > { %3710 = vmatmul.mubr.msk.f32.gmra.mrb[66].mxu0 %vm182_vm0, %v2542_v57  ;;  %v2529_v12 = vmul.f32 %v3226_v37, %v2515_v21 }
 0x889   : > { %v2544_v18 = vadd.f32 %v3227_v36, %v2530_v11 }
 0x88a   : > { %v2543_v53 = vadd.f32 %v3227_v36, %v2529_v12 }
 0x88c   : > { %v4598_v22 = vpop.eup %4597  ;;  %3712 = vmatprep.mubr.msk.f32.mxu0 %vm182_vm0, %v2543_v53 }
 0x88d   : > { %v4600_v1 = vpop.eup %4599  ;;  %3713 = vmatmul.mubr.msk.f32.gmra.mrb[68].mxu0 %vm182_vm0, %v2544_v18  ;;  %v2518_v30 = vmul.f32 %v4598_v22, %v6444_v16  ;;  %v4048_v16 = vpack.c.bf16 %v2768_v32, %v2767_v3 }
 0x88e   : > { %v2517_v29 = vmul.f32 %v4600_v1, %v6447_v41  ;;  %v2770_v41 = vld [vmem:[%s6463_s2 + $0x38] sm:$0xff] }
 0x88f   : > { %v2532_v45 = vmul.f32 %v3226_v37, %v2518_v30  ;;  %4049 = vmatprep.subr.bf16.mxu1 %v4048_v16 }
 0x890   : > { %v2531_v25 = vmul.f32 %v3226_v37, %v2517_v29  ;;  %v4052_v37 = vpack.c.bf16 %v2770_v41, %v2769_v24  ;;  %4051 = vmatpush3.bf16.msra.mxu1 %v4048_v16 }
 0x891   : > { %v2546_v34 = vadd.f32 %v3227_v36, %v2532_v45 }
 0x892   : > { %v2545_v0 = vadd.f32 %v3227_v36, %v2531_v25  ;;  %4053 = vmatprep.subr.bf16.mxu1 %v4052_v37  ;;  %v4060_v36 = vpack.c.bf16 %v2774_v13, %v2773_v8 }
 0x894   : > { %3715 = vmatprep.mubr.msk.f32.mxu0 %vm182_vm0, %v2545_v0  ;;  %4055 = vmatpush3.bf16.msra.mxu1 %v4052_v37 }
 0x895   : > { %3716 = vmatmul.mubr.msk.f32.gmra.mrb[70].mxu0 %vm182_vm0, %v2546_v34  ;;  %4057 = vmatprep.subr.bf16.mxu1 %v4056_v50 }
 0x896   :  { %3778 = vmatprep.mubr.msk.f32.mxu0 (%p166_p0), %vm4696_vm3, %v4697_v61 }
 0x898   : > { %4059 = vmatpush3.bf16.msra.mxu1 %v4056_v50 }
 0x899   : > { %4061 = vmatprep.subr.bf16.mxu1 %v4060_v36 }
 0x89c   : > { %4063 = vmatpush3.bf16.msra.mxu1 %v4060_v36 }
 0x89d   : > { %4065 = vmatprep.subr.bf16.mxu1 %v4064_v20 }
 0x8a0   : > { %4067 = vmatpush3.bf16.msra.mxu1 %v4064_v20 }
 0x8a1   : > { %4069 = vmatprep.subr.bf16.mxu1 %v4068_v46 }
 0x8a4   : > { %4071 = vmatpush3.bf16.msra.mxu1 %v4068_v46 }
 0x950   : > { %v3708_v47 = vpop.f32.mrb[64].mxu0 }
 0x951   : > { %v2656_v17 = vadd.f32 %v3708_v47, %v3228_v39  ;;  %v2650_v40 = vpop.f32.mrb[65].mxu0 }
 0x952   : > { %v2651_v2 = vadd.f32 %v3228_v39, %v2650_v40 }
 0x953   : > { %v2698_v23 = vmul.f32 0.044715, %v2656_v17  ;;  %v2690_v20 = vmul.f32 0.5, %v2656_v17 }
 0x954   : > { %v2697_v56 = vmul.f32 0.044715, %v2651_v2  ;;  %v2689_v59 = vmul.f32 0.5, %v2651_v2 }
 0x955   : > { %v2706_v49 = vmul.f32 %v2698_v23, %v2656_v17 }
 0x956   : > { %v2705_v44 = vmul.f32 %v2697_v56, %v2651_v2 }
 0x957   : > { %v2714_v27 = vmul.f32 %v2706_v49, %v2656_v17 }
 0x958   : > { %v2713_v4 = vmul.f32 %v2705_v44, %v2651_v2 }
 0x959   : > { %v2722_v38 = vadd.f32 %v2714_v27, %v2656_v17 }
 0x95a   : > { %v2721_v5 = vadd.f32 %v2713_v4, %v2651_v2 }
 0x95b   : > { %v2730_v9 = vmul.f32 0.7978846, %v2722_v38  ;;  %v3711_v42 = vpop.f32.mrb[66].mxu0 }
 0x95c   : > { %v2666_v31 = vadd.f32 %v3711_v42, %v3228_v39  ;;  %v2660_v7 = vpop.f32.mrb[67].mxu0  ;;  %v2729_v57 = vmul.f32 0.7978846, %v2721_v5 }
 0x95d   : > { %4601 = vtanh.f32 %v2730_v9  ;;  %v2661_v21 = vadd.f32 %v3228_v39, %v2660_v7 }
 0x95e   : > { %v2700_v11 = vmul.f32 0.044715, %v2666_v31  ;;  %4603 = vtanh.f32 %v2729_v57 }
 0x95f   : > { %v2699_v12 = vmul.f32 0.044715, %v2661_v21  ;;  %v2691_v7 = vmul.f32 0.5, %v2661_v21 }
 0x960   : > { %v2708_v53 = vmul.f32 %v2700_v11, %v2666_v31  ;;  %v3714_v18 = vpop.f32.mrb[68].mxu0 }
 0x961   : > { %v2707_v22 = vmul.f32 %v2699_v12, %v2661_v21  ;;  %v6509_v1 = vadd.f32 %v3714_v18, %v3228_v39  ;;  %v2670_v30 = vpop.f32.mrb[69].mxu0  ;;  %v2692_v12 = vmul.f32 0.5, %v2666_v31 }
 0x962   : > { %v2671_v29 = vadd.f32 %v3228_v39, %v2670_v30  ;;  %v2716_v45 = vmul.f32 %v2708_v53, %v2666_v31 }
 0x963   : > { %v2702_v25 = vmul.f32 0.044715, %v6509_v1  ;;  %v2715_v0 = vmul.f32 %v2707_v22, %v2661_v21 }
 0x964   : > { %v2701_v34 = vmul.f32 0.044715, %v2671_v29  ;;  %v2724_v15 = vadd.f32 %v2716_v45, %v2666_v31 }
 0x965   : > { %v2710_v54 = vmul.f32 %v2702_v25, %v6509_v1  ;;  %v2723_v3 = vadd.f32 %v2715_v0, %v2661_v21  ;;  %v2693_v25 = vmul.f32 0.5, %v2671_v29 }
 0x966   : > { %v2709_v28 = vmul.f32 %v2701_v34, %v2671_v29  ;;  %v2732_v32 = vmul.f32 0.7978846, %v2724_v15  ;;  %v2694_v34 = vmul.f32 0.5, %v6509_v1 }
 0x967   : > { %v4602_v16 = vpop.eup %4601  ;;  %v2731_v24 = vmul.f32 0.7978846, %v2723_v3  ;;  %v2718_v41 = vmul.f32 %v2710_v54, %v6509_v1 }
 0x968   : > { %v4604_v37 = vpop.eup %4603  ;;  %v3717_v58 = vpop.f32.mrb[70].mxu0  ;;  %v2746_v50 = vadd.f32 1.0, %v4602_v16  ;;  %4605 = vtanh.f32 %v2732_v32  ;;  %v2717_v8 = vmul.f32 %v2709_v28, %v2671_v29 }
 0x969   : > { %v2686_v13 = vadd.f32 %v3717_v58, %v3228_v39  ;;  %v2680_v36 = vpop.f32.mrb[71].mxu0  ;;  %v2745_v26 = vadd.f32 1.0, %v4604_v37  ;;  %4607 = vtanh.f32 %v2731_v24  ;;  %v2726_v19 = vadd.f32 %v2718_v41, %v6509_v1  ;;  %v3238_v1 = vld [vmem:[%s2892_s30] ss:$0 sm:$0xff] }
 0x96a   : > { %v2681_v35 = vadd.f32 %v3228_v39, %v2680_v36  ;;  %v2725_v55 = vadd.f32 %v2717_v8, %v2671_v29  ;;  %v2754_v56 = vmul.f32 %v2746_v50, %v2690_v20 }
 0x96b   : > { %v2704_v46 = vmul.f32 0.044715, %v2686_v13  ;;  %v2753_v47 = vmul.f32 %v2745_v26, %v2689_v59  ;;  %v2734_v40 = vmul.f32 0.7978846, %v2726_v19  ;;  %v2696_v16 = vmul.f32 0.5, %v2686_v13 }
 0x96c   : > { %v2703_v23 = vmul.f32 0.044715, %v2681_v35  ;;  %v2733_v49 = vmul.f32 0.7978846, %v2725_v55  ;;  %v2695_v28 = vmul.f32 0.5, %v2681_v35 }
 0x96d   : > { %v2712_v44 = vmul.f32 %v2704_v46, %v2686_v13  ;;  %3750 = vmatprep.mubr.f32.mxu1 %v2753_v47  ;;  %4609 = vtanh.f32 %v2734_v40 }
 0x96e   : > { %v2711_v2 = vmul.f32 %v2703_v23, %v2681_v35  ;;  %3751 = vmatmul.mubr.f32.vlgmr.msra.gmra.mrb[56].mxu1 %v2754_v56  ;;  %4611 = vtanh.f32 %v2733_v49 }
 0x96f   : > { %v2720_v27 = vmul.f32 %v2712_v44, %v2686_v13 }
 0x970   : > { %v2719_v4 = vmul.f32 %v2711_v2, %v2681_v35 }
 0x971   : > { %v2728_v38 = vadd.f32 %v2720_v27, %v2686_v13  ;;  %v2986_v27 = vld [vmem:[%s6580_s17 + $0x18] sm:$0xff] (%p166_p0) }
 0x972   : > { %v4606_v5 = vpop.eup %4605  ;;  %v2727_v9 = vadd.f32 %v2719_v4, %v2681_v35 }
 0x973   : > { %v4608_v17 = vpop.eup %4607  ;;  %v2748_v39 = vadd.f32 1.0, %v4606_v5  ;;  %v2736_v42 = vmul.f32 0.7978846, %v2728_v38  ;;  %v2908_v5 = vld [vmem:[%s6838_s8] sm:$0xff] (%p166_p0) }
 0x974   : > { %v2747_v57 = vadd.f32 1.0, %v4608_v17  ;;  %v2735_v11 = vmul.f32 0.7978846, %v2727_v9 }
 0x975   : > { %4613 = vtanh.f32 %v2736_v42  ;;  %v2756_v22 = vmul.f32 %v2748_v39, %v2692_v12 }
 0x976   : > { %v2755_v53 = vmul.f32 %v2747_v57, %v2691_v7  ;;  %4615 = vtanh.f32 %v2735_v11 }
 0x977   : > { %v4610_v18 = vpop.eup %4609 }
 0x978   : > { %v4612_v30 = vpop.eup %4611  ;;  %3753 = vmatprep.mubr.f32.mxu1 %v2755_v53  ;;  %v2750_v45 = vadd.f32 1.0, %v4610_v18 }
 0x979   : > { %3754 = vmatmul.mubr.f32.gmra.mrb[58].mxu1 %v2756_v22  ;;  %v2749_v0 = vadd.f32 1.0, %v4612_v30 }
 0x97a   : > { %v2758_v54 = vmul.f32 %v2750_v45, %v2694_v34 }
 0x97b   : > { %v2757_v15 = vmul.f32 %v2749_v0, %v2693_v25 }
 0x97d   : > { %3756 = vmatprep.mubr.f32.mxu1 %v2757_v15 }
 0x97e   : > { %3757 = vmatmul.mubr.f32.gmra.mrb[60].mxu1 %v2758_v54 }
 0x97f   : > { %v4614_v21 = vpop.eup %4613 }
 0x980   : > { %v4616_v31 = vpop.eup %4615  ;;  %v2752_v3 = vadd.f32 1.0, %v4614_v21 }
 0x981   : > { %v2751_v32 = vadd.f32 1.0, %v4616_v31 }
 0x982   : > { %v2760_v41 = vmul.f32 %v2752_v3, %v2696_v16 }
 0x983   : > { %v2759_v24 = vmul.f32 %v2751_v32, %v2695_v28 }
 0x985   : > { %3759 = vmatprep.mubr.f32.mxu1 %v2759_v24 }
 0x986   : > { %3760 = vmatmul.mubr.f32.gmra.mrb[62].mxu1 %v2760_v41 }
 0x987   :  { %3789 = vmatprep.mubr.msk.f32.mxu1 (%p166_p0), %vm4696_vm3, %v4697_v61 }
 0xa41   : > { %v3752_v29 = vpop.f32.mrb[56].mxu1 }
 0xa42   : > { %v2885_v37 = vadd.f32 %v3752_v29, %v6369_v33  ;;  %v2845_v58 = vpop.f32.mrb[57].mxu1 }
 0xa43   : > { %v2884_v59 = vadd.f32 %v2845_v58, %v6371_v6 }
 0xa44   : > { %v2901_v50 = vadd.f32 %v3238_v1, %v2885_v37  }
 0xa45   : > { %v2900_v8 = vadd.f32 %v3238_v1, %v2884_v59  }
 0xa46   : > { %v6836_v25 = vmov %v2901_v50 }
 0xa4c   : > { %v3755_v36 = vpop.f32.mrb[58].mxu1 }
 0xa4d   : > { %v2887_v13 = vadd.f32 %v3755_v36, %v6379_v51  ;;  %v2855_v26 = vpop.f32.mrb[59].mxu1 }
 0xa4e   : > { %v2886_v19 = vadd.f32 %v2855_v26, %v6381_v52  ;;  %v4073_v52 = vpack.c.bf16 (%p166_p0), %v2901_v50, %v2900_v8 }
 0xa4f   : > { %v2903_v20 = vadd.f32 %v3238_v1, %v2887_v13  }
 0xa50   : > { %v2902_v35 = vadd.f32 %v3238_v1, %v2886_v19  }
 0xa51   : > { %v3758_v55 = vpop.f32.mrb[60].mxu1  ;;  %v6834_v24 = vmov %v2903_v20 }
 0xa52   : > { %v2889_v46 = vadd.f32 %v3758_v55, %v6389_v43  ;;  %v2865_v47 = vpop.f32.mrb[61].mxu1  ;;  %v6835_v22 = vmov %v2902_v35  ;;  %v2983_v43 = vld [vmem:[%s6580_s17] sm:$0xff] (%p166_p0)  ;;  %v4076_v60 = vpack.c.bf16 (%p166_p0), %v2903_v20, %v2902_v35 }
 0xa53   : > { %v2888_v40 = vadd.f32 %v2865_v47, %v6391_v10  ;;  %v2984_v10 = vld [vmem:[%s6580_s17 + $0x8] sm:$0xff] (%p166_p0) }
 0xa54   : > { %v2905_v33 = vadd.f32 %v3238_v1, %v2889_v46   ;;  %v4085_v62 = vpack.c.bf16 (%p166_p0), %v2984_v10, %v2983_v43 }
 0xa55   : > { %v2904_v56 = vadd.f32 %v3238_v1, %v2888_v40  }
 0xa56   : > { %v6832_v19 = vmov %v2905_v33 }
 0xa57   : > { %v6833_v28 = vmov %v2904_v56  ;;  %v4079_v4 = vpack.c.bf16 (%p166_p0), %v2905_v33, %v2904_v56 }
 0xa59   : > { %v3761_v23 = vpop.f32.mrb[62].mxu1  ;;  %168 = sbr.rel (!%p166_p0) target bundleno = 51 (0x33), region = 111 }
 0xa5a   : > { %v2891_v6 = vadd.f32 %v3761_v23, %v6399_v14  ;;  %v2875_v49 = vpop.f32.mrb[63].mxu1  ;;  %v6837_v23 = vmov %v2900_v8  ;;  %v4695_v14 = vmov (%p166_p0), 0.0|0.0  }
 0xa5b   : > { %v2890_v44 = vadd.f32 %v2875_v49, %v6401_v48  ;;  %4072 = vmatprep.subr.bf16.mxu0 (%p166_p0), %v4695_v14  ;;  %4084 = vmatprep.subr.bf16.mxu1 (%p166_p0), %v4695_v14  ;;  %v2985_v48 = vld [vmem:[%s6580_s17 + $0x10] sm:$0xff] (%p166_p0) }
 0xa5c   : > { %v2907_v51 = vadd.f32 %v3238_v1, %v2891_v6   ;;  %4074 = vmatpush3.bf16.msra.mxu0 (%p166_p0), %v4073_v52  ;;  %4086 = vmatpush3.bf16.msra.mxu1 (%p166_p0), %v4085_v62  ;;  %v4088_v63 = vpack.c.bf16 (%p166_p0), %v2986_v27, %v2985_v48 }
 0xa5d   : > { %v2906_v2 = vadd.f32 %v3238_v1, %v2890_v44   ;;  %4075 = vmatprep.subr.bf16.mxu0 (%p166_p0), %v4695_v14  ;;  %4087 = vmatprep.subr.bf16.mxu1 (%p166_p0), %v4695_v14 }
 0xa5e   : > { %v6830_v18 = vmov %v2907_v51 }
 0xa5f   : > { %v6831_v21 = vmov %v2906_v2  ;;  %v4082_v38 = vpack.c.bf16 (%p166_p0), %v2907_v51, %v2906_v2 }
 0xa60   :  { %4077 = vmatpush3.bf16.msra.mxu0 %v4076_v60  ;;  %4089 = vmatpush3.bf16.msra.mxu1 %v4088_v63 }
 0xa61   :  { %4078 = vmatprep.subr.bf16.mxu0 %v4695_v14 }
 0xa64   :  { %4080 = vmatpush3.bf16.msra.mxu0 %v4079_v4 }
 0xa65   :  { %4081 = vmatprep.subr.bf16.mxu0 %v4695_v14 }
 0xa68   :  { %4083 = vmatpush3.bf16.msra.mxu0 %v4082_v38 }
 0xa6b   :  { %3779 = vmatmul.mubr.msk.f32.vlgmr.msra.gmra.mrb[0].mxu0 %vm2909_vm4, %v2908_v5 }
 0xb3e   :  { %v2979_v9 = vpop.f32.mrb[0].mxu0 }
 0xb3f   :  { %v3780_v17 = vpop.f32.mrb[1].mxu0  ;;  %3790 = vmatmul.mubr.msk.f32.vlgmr.msra.gmra.mrb[0].mxu1 %vm182_vm0, %v2979_v9 }
 0xc12   :  { %v3057_v39 = vpop.f32.mrb[0].mxu1 }
 0xc13   :  { %v3791_v42 = vpop.f32.mrb[1].mxu1  ;;  %v3061_v7 = vmul.f32 %v3057_v39, %v3057_v39 }
 0xc15   :  { %3062 = vadd.xlane.f32.xlu0 %v3061_v7 }
 0xca2   :  { %v3063_v57 = vpop.xlane.xlu0 %3062 }
 0xca3   :  { %v3064_v11 = vmax.f32 %v3063_v57, 1e-30 }
 0xca5   :  { %4617 = vrsqrt.f32 %v3064_v11 }
 0xcaf   :  { %v4618_v12 = vpop.eup %4617 }
 0xcb0   :  { %v3066_v53 = vmul.f32 %v4618_v12, %v3057_v39 }
 0xcb2   :  { %3067 = vst [vmem:[%s6581_s18] sm:$0xff] %v3066_v53 }

</bundles_post_ra>
